<compile_context>
chip_gen: v6e
topology: v6e:2x2x1
jax: 0.10.0
libtpu: 0.0.40
codegen_flags: <defaults>
</compile_context>

<pallas_src>
import functools
import math

import jax
import jax.numpy as jnp
from jax.experimental import pallas as pl
from jax.experimental.pallas import tpu as pltpu

SCALING_FACTOR = 0.18215
NUM_TIMESTEPS = 1000
LATENT_CH = 4
MODEL_CH = 32
TEMB_CH = 64
NUM_CLASSES = 10

ROW_TILE = 1024                      # M tile cap for streaming encoder GEMMs
VMEM_LIMIT = 32 * 1024 * 1024        # explicit cap: safe on v5e/v6e/v7x


def _cparams(grid_rank):
    return pltpu.CompilerParams(
        dimension_semantics=("parallel",) * grid_rank,
        vmem_limit_bytes=VMEM_LIMIT)


def _tile_rows(M):
    """Row tile + padded rows; aim for >=2 grid steps (v7x dual TensorCore)."""
    if M <= 8:
        return M, M
    half = (((M + 1) // 2) + 7) // 8 * 8
    tm = min(ROW_TILE, half)
    Mp = ((M + tm - 1) // tm) * tm
    return tm, Mp


# ----------------------------------------------------------------------------
# Kernel 1: streaming GEMM + SiLU (VAE encoder stages; weights VMEM-resident)
# ----------------------------------------------------------------------------
def _gemm_silu_kernel(a_ref, w_ref, b_ref, o_ref):
    out = jnp.dot(a_ref[...], w_ref[...], preferred_element_type=jnp.float32)
    out = out + b_ref[...]
    out = out * jax.nn.sigmoid(out)
    o_ref[...] = out.astype(o_ref.dtype)


def pallas_gemm_silu(a, w, b, out_dtype=jnp.bfloat16):
    """silu(A @ W + b).  A:[M,K] bf16, W:[K,N] bf16 (resident), b:[1,N] f32."""
    M, K = a.shape
    N = w.shape[1]
    tm, Mp = _tile_rows(M)
    if Mp != M:
        a = jnp.pad(a, ((0, Mp - M), (0, 0)))
    out = pl.pallas_call(
        _gemm_silu_kernel,
        out_shape=jax.ShapeDtypeStruct((Mp, N), out_dtype),
        grid_spec=pltpu.PrefetchScalarGridSpec(
            num_scalar_prefetch=0, grid=(Mp // tm,),
            in_specs=[pl.BlockSpec((tm, K), lambda i: (i, 0)),
                      pl.BlockSpec((K, N), lambda i: (0, 0)),
                      pl.BlockSpec((1, N), lambda i: (0, 0))],
            out_specs=pl.BlockSpec((tm, N), lambda i: (i, 0))),
        compiler_params=_cparams(1),
    )(a, w, b)
    return out if Mp == M else out[:M]


# ----------------------------------------------------------------------------
# Kernel 2: fully fused latent-diffusion step, gridded over batch.
#   moments -> reparameterize*sf -> q_sample -> temb MLP -> 4x conv3x3 -> MSE
# Activations use a "plane" layout: rows = H, lanes = W*C (lane-dense, 128 for
# the 32-channel layers).  Each conv is one dot against a block-diag im2col
# weight built on the host; padding / im2col happen on registers in VMEM.
# ----------------------------------------------------------------------------
def _fused_ldm_kernel(coef_ref, feats_ref, eps_ref, noise_ref, te_ref, y_ref,
                      wm_ref, wv_ref, bm_ref, bv_ref,
                      tw1_ref, tb1_ref, tw2_ref, tb2_ref, twp_ref, tbp_ref,
                      wi_ref, bi_ref, wa_ref, ba_ref, wb_ref, bb_ref,
                      wo_ref, bo_ref, ssq_ref, *, H, W, sf):
    f32 = jnp.float32
    bf16 = jnp.bfloat16
    b = pl.program_id(0)
    c1 = coef_ref[b, 0]                      # sqrt(acp_t)       (SMEM scalar)
    c2 = coef_ref[b, 1]                      # sqrt(1 - acp_t)

    # --- VAE moments -> reparameterize * sf -> q_sample (plane layout) ------
    feats = feats_ref[0]                                              # (H, W*128)
    mean = jnp.dot(feats, wm_ref[...], preferred_element_type=f32) + bm_ref[...]
    logv = jnp.dot(feats, wv_ref[...], preferred_element_type=f32) + bv_ref[...]
    logv = jnp.clip(logv, -30.0, 20.0)       # DiagonalGaussianDistribution
    lat = (mean + jnp.exp(0.5 * logv) * eps_ref[0]) * sf
    x_t = c1 * lat + c2 * noise_ref[0]                                # (H, W*4)

    # --- time + class conditioning (per-sample tiny MLP, fused) -------------
    h = jnp.dot(te_ref[0], tw1_ref[...], preferred_element_type=f32) + tb1_ref[...]
    h = h * jax.nn.sigmoid(h)
    h = jnp.dot(h, tw2_ref[...], preferred_element_type=f32) + tb2_ref[...]
    h = h + y_ref[0]
    h = h * jax.nn.sigmoid(h)
    tproj = jnp.dot(h, twp_ref[...], preferred_element_type=f32) + tbp_ref[...]  # (1, W*32)

    # --- 3x3 / stride 1 / pad 1 conv: one block-diag im2col dot per conv ----
    def conv3(x, C, w_ref_, b_ref_):
        xb = x.astype(bf16)
        zr = jnp.zeros((1, W * C), bf16)
        xp = jnp.concatenate([zr, xb, zr], axis=0)                    # (H+2, W*C)
        zc = jnp.zeros((H + 2, C), bf16)
        xp = jnp.concatenate([zc, xp, zc], axis=1)                    # (H+2,(W+2)*C)
        cols = jnp.concatenate(
            [xp[ki:ki + H, kj * C:(kj + W) * C]
             for ki in range(3) for kj in range(3)], axis=1)          # (H, 9*W*C)
        return jnp.dot(cols, w_ref_[...], preferred_element_type=f32) + b_ref_[...]

    h0 = conv3(x_t, LATENT_CH, wi_ref, bi_ref)                        # (H, W*32)
    h1 = conv3(h0, MODEL_CH, wa_ref, ba_ref)
    h1 = h1 * jax.nn.sigmoid(h1) + tproj                              # + temb
    h2 = conv3(h1, MODEL_CH, wb_ref, bb_ref) + h0                     # residual
    h2 = h2 * jax.nn.sigmoid(h2)
    eps_pred = conv3(h2, MODEL_CH, wo_ref, bo_ref)                    # (H, W*4)

    # --- fused per-sample sum of squared errors ------------------------------
    d = eps_pred - noise_ref[0]
    total = jnp.sum(d * d, axis=1, keepdims=True)                     # (H, 1)
    total = jnp.sum(total, axis=0, keepdims=True)                     # (1, 1)
    ssq_ref[...] = jnp.broadcast_to(total[None], ssq_ref.shape)


def pallas_fused_ldm(coefs, feats_plane, eps_plane, noise_plane, te, yemb,
                     weights, *, H, W, sf):
    """Returns per-sample sum((eps_pred - noise)^2), shape [B], f32."""
    B = feats_plane.shape[0]

    def wspec(x):
        zeros = (0,) * x.ndim
        return pl.BlockSpec(x.shape, lambda bb, _z=zeros: _z)

    def bspec(x):
        rest = (0,) * (x.ndim - 1)
        return pl.BlockSpec((1,) + x.shape[1:], lambda bb, _r=rest: (bb,) + _r)

    in_specs = [pl.BlockSpec(memory_space=pltpu.MemorySpace.SMEM),   # (B,2) coefs
                bspec(feats_plane), bspec(eps_plane), bspec(noise_plane),
                bspec(te), bspec(yemb)]
    args = [coefs, feats_plane, eps_plane, noise_plane, te, yemb]
    for key in ('wm', 'wv', 'bm', 'bv', 'tw1', 'tb1', 'tw2', 'tb2', 'twp',
                'tbp', 'wi', 'bi', 'wa', 'ba', 'wb', 'bb', 'wo', 'bo'):
        in_specs.append(wspec(weights[key]))
        args.append(weights[key])

    out = pl.pallas_call(
        functools.partial(_fused_ldm_kernel, H=H, W=W, sf=sf),
        out_shape=jax.ShapeDtypeStruct((B, 8, 128), jnp.float32),   # lane-dense
        grid_spec=pltpu.PrefetchScalarGridSpec(
            num_scalar_prefetch=0, grid=(B,),
            in_specs=in_specs,
            out_specs=pl.BlockSpec((1, 8, 128), lambda bb: (bb, 0, 0))),
        compiler_params=_cparams(1),
    )(*args)
    return out[:, 0, 0]


# ----------------------------------------------------------------------------
# Host-side glue (tiny reshapes / weight repacking only)
# ----------------------------------------------------------------------------
def space_to_depth2(x):
    """NHWC 2x2/stride-2 patchify -> [B*(H/2)*(W/2), 4*C] (no duplication)."""
    B, H, W, C = x.shape
    x = x.reshape(B, H // 2, 2, W // 2, 2, C)
    x = jnp.transpose(x, (0, 1, 3, 2, 4, 5))
    return x.reshape(B * (H // 2) * (W // 2), 4 * C)


def timestep_embedding(t, dim):
    half = dim // 2
    freqs = jnp.exp(-math.log(10000.0) *
                    jnp.arange(half, dtype=jnp.float32) / half)
    args = t.astype(jnp.float32)[:, None] * freqs[None, :]
    return jnp.concatenate([jnp.cos(args), jnp.sin(args)], axis=-1)


def _conv_blockdiag(w, cin, cout, W):
    """(9*cin, cout) im2col conv weight -> (9*W*cin, W*cout) block-diag bf16."""
    w9 = w.astype(jnp.float32).reshape(9, cin, cout)
    eye = jnp.eye(W, dtype=jnp.float32)
    blocks = [jnp.kron(eye, w9[k]) for k in range(9)]
    return jnp.concatenate(blocks, axis=0).astype(jnp.bfloat16)


def _moments_blockdiag(w, W):
    """(K, C) head weight -> (W*K, W*C) block-diag bf16 (plane layout)."""
    return jnp.kron(jnp.eye(W, dtype=jnp.float32),
                    w.astype(jnp.float32)).astype(jnp.bfloat16)


def _tile_lanes(v, W):
    """(1, C) f32 -> (1, W*C) f32 repeated per spatial column (plane layout)."""
    return jnp.tile(v.astype(jnp.float32), (1, W))


# ----------------------------------------------------------------------------
# Parameters (deterministic synthetic, natural layouts)
# ----------------------------------------------------------------------------
def init_params(key):
    ks = jax.random.split(key, 13)
    bf = jnp.bfloat16

    def w(k, shape):
        return jax.random.normal(k, shape, jnp.float32) / jnp.sqrt(shape[0])

    p = {}
    # VAE encoder: 3 -> 32 -> 64 -> 128 (2x2/s2 convs) -> 1x1 to (mean, logvar)
    p['enc_w1'] = w(ks[0], (4 * 3, 32)).astype(bf)
    p['enc_b1'] = jnp.zeros((1, 32), jnp.float32)
    p['enc_w2'] = w(ks[1], (4 * 32, 64)).astype(bf)
    p['enc_b2'] = jnp.zeros((1, 64), jnp.float32)
    p['enc_w3'] = w(ks[2], (4 * 64, 128)).astype(bf)
    p['enc_b3'] = jnp.zeros((1, 128), jnp.float32)
    p['enc_wm'] = w(ks[3], (128, LATENT_CH))
    p['enc_wv'] = w(ks[4], (128, LATENT_CH))
    p['enc_bm'] = jnp.zeros((1, LATENT_CH), jnp.float32)
    p['enc_bv'] = jnp.zeros((1, LATENT_CH), jnp.float32)
    # UNet: in=4, model_channels=32, out=4, temb=64, class-conditional
    p['t_w1'] = w(ks[5], (32, TEMB_CH));       p['t_b1'] = jnp.zeros((1, TEMB_CH), jnp.float32)
    p['t_w2'] = w(ks[6], (TEMB_CH, TEMB_CH));  p['t_b2'] = jnp.zeros((1, TEMB_CH), jnp.float32)
    p['y_emb'] = 0.02 * jax.random.normal(ks[7], (NUM_CLASSES, TEMB_CH), jnp.float32)
    p['r1_wt'] = w(ks[8], (TEMB_CH, MODEL_CH)); p['r1_bt'] = jnp.zeros((1, MODEL_CH), jnp.float32)
    p['ci_w'] = w(ks[9], (9 * LATENT_CH, MODEL_CH));  p['ci_b'] = jnp.zeros((1, MODEL_CH), jnp.float32)
    p['r1_wa'] = w(ks[10], (9 * MODEL_CH, MODEL_CH)); p['r1_ba'] = jnp.zeros((1, MODEL_CH), jnp.float32)
    p['r1_wb'] = w(ks[11], (9 * MODEL_CH, MODEL_CH)); p['r1_bb'] = jnp.zeros((1, MODEL_CH), jnp.float32)
    p['co_w'] = w(ks[12], (9 * MODEL_CH, LATENT_CH)); p['co_b'] = jnp.zeros((1, LATENT_CH), jnp.float32)
    return p


# ----------------------------------------------------------------------------
# Forward (mirrors StandardVAELatentDiffusionModel.forward -> losses dict)
# ----------------------------------------------------------------------------
def forward(params, images_nchw, class_labels, rng):
    B, _, Hin, Win = images_nchw.shape
    x = jnp.transpose(images_nchw, (0, 2, 3, 1)).astype(jnp.bfloat16)  # NHWC bf16
    k_eps, k_t, k_noise = jax.random.split(rng, 3)

    # --- frozen VAE encoder: three 2x2/s2 conv stages as streaming GEMMs ---
    h = pallas_gemm_silu(space_to_depth2(x), params['enc_w1'], params['enc_b1'])
    h = h.reshape(B, Hin // 2, Win // 2, 32)
    h = pallas_gemm_silu(space_to_depth2(h), params['enc_w2'], params['enc_b2'])
    h = h.reshape(B, Hin // 4, Win // 4, 64)
    feats = pallas_gemm_silu(space_to_depth2(h), params['enc_w3'], params['enc_b3'])
    hl, wl = Hin // 8, Win // 8
    feats_plane = feats.reshape(B, hl, wl * 128)                 # plane layout

    # --- diffusion schedule; per-sample scalars -> (B,2) SMEM table ---
    t = jax.random.randint(k_t, (B,), 0, NUM_TIMESTEPS)
    betas = jnp.linspace(1e-4, 0.02, NUM_TIMESTEPS, dtype=jnp.float32)
    acp = jnp.cumprod(1.0 - betas)
    coefs = jnp.stack([jnp.sqrt(acp[t]), jnp.sqrt(1.0 - acp[t])],
                      axis=1).astype(jnp.float32)                # (B, 2)

    eps = jax.random.normal(k_eps, (B, hl, wl * LATENT_CH), jnp.float32)
    noise = jax.random.normal(k_noise, (B, hl, wl * LATENT_CH), jnp.float32)

    te = timestep_embedding(t, 32).reshape(B, 1, 32)
    yemb = params['y_emb'][class_labels].reshape(B, 1, TEMB_CH)

    # --- repack weights for the fused kernel (plane / block-diag layouts) ---
    weights = {
        'wm': _moments_blockdiag(params['enc_wm'], wl),
        'wv': _moments_blockdiag(params['enc_wv'], wl),
        'bm': _tile_lanes(params['enc_bm'], wl),
        'bv': _tile_lanes(params['enc_bv'], wl),
        'tw1': params['t_w1'], 'tb1': params['t_b1'],
        'tw2': params['t_w2'], 'tb2': params['t_b2'],
        'twp': jnp.tile(params['r1_wt'].astype(jnp.float32), (1, wl)),
        'tbp': _tile_lanes(params['r1_bt'], wl),
        'wi': _conv_blockdiag(params['ci_w'], LATENT_CH, MODEL_CH, wl),
        'bi': _tile_lanes(params['ci_b'], wl),
        'wa': _conv_blockdiag(params['r1_wa'], MODEL_CH, MODEL_CH, wl),
        'ba': _tile_lanes(params['r1_ba'], wl),
        'wb': _conv_blockdiag(params['r1_wb'], MODEL_CH, MODEL_CH, wl),
        'bb': _tile_lanes(params['r1_bb'], wl),
        'wo': _conv_blockdiag(params['co_w'], MODEL_CH, LATENT_CH, wl),
        'bo': _tile_lanes(params['co_b'], wl),
    }

    # --- single fused kernel: moments/reparam/q_sample/temb/UNet/MSE ---
    ssq = pallas_fused_ldm(coefs, feats_plane, eps, noise, te, yemb, weights,
                           H=hl, W=wl, sf=SCALING_FACTOR)
    mse = ssq / float(hl * wl * LATENT_CH)                       # per-sample mean
    return {"loss": mse, "mse": mse}


# ----------------------------------------------------------------------------
if __name__ == "__main__":
    key = jax.random.PRNGKey(0)
    k_param, k_img, k_lbl, k_fwd = jax.random.split(key, 4)

    params = init_params(k_param)
    images = jax.random.uniform(k_img, (2, 3, 32, 32),
                                minval=-1.0, maxval=1.0, dtype=jnp.float32)
    labels = jax.random.randint(k_lbl, (2,), 0, NUM_CLASSES)

    losses = jax.jit(forward)(params, images, labels, k_fwd)
    jax.block_until_ready(losses)

    assert losses["loss"].shape == (2,)
    assert bool(jnp.all(jnp.isfinite(losses["loss"])))
    print("KERNEL_OK")
</pallas_src>

<mosaic_0001>
module attributes {stable_mosaic.version = 11 : i64} {
  func.func @_gemm_silu_kernel(%arg0: i32, %arg1: memref<256x12xbf16, #tpu.memory_space<vmem>>, %arg2: memref<12x32xbf16, #tpu.memory_space<vmem>>, %arg3: memref<1x32xf32, #tpu.memory_space<vmem>>, %arg4: memref<256x32xbf16, #tpu.memory_space<vmem>>) attributes {dimension_semantics = [#tpu.dimension_semantics<parallel>], iteration_bounds = array<i64: 2>, scalar_prefetch = 0 : i64, scratch_operands = 0 : i64, tpu.core_type = #tpu.core_type<tc>, window_params = [{transform_indices = @transform_0, window_bounds = array<i64: 256, 12>}, {pipeline_mode = #tpu.pipeline_mode<synchronous>, transform_indices = @transform_1, window_bounds = array<i64: 12, 32>}, {pipeline_mode = #tpu.pipeline_mode<synchronous>, transform_indices = @transform_2, window_bounds = array<i64: 1, 32>}, {transform_indices = @transform_3, window_bounds = array<i64: 256, 32>}]} {
    %c0 = arith.constant 0 : index
    %c0_0 = arith.constant 0 : index
    %0 = vector.load %arg1[%c0, %c0_0] : memref<256x12xbf16, #tpu.memory_space<vmem>>, vector<256x12xbf16>
    %c0_1 = arith.constant 0 : index
    %c0_2 = arith.constant 0 : index
    %1 = vector.load %arg2[%c0_1, %c0_2] : memref<12x32xbf16, #tpu.memory_space<vmem>>, vector<12x32xbf16>
    %cst = arith.constant dense<0.000000e+00> : vector<256x32xf32>
    %2 = tpu.matmul %0, %1, %cst {dimension_numbers = #tpu.dot_dimension_numbers<[1], [0], [0], [1], [0, 0, 1, 1], [], []>} : vector<256x12xbf16>, vector<12x32xbf16>, vector<256x32xf32> -> vector<256x32xf32>
    %c0_3 = arith.constant 0 : index
    %c0_4 = arith.constant 0 : index
    %3 = vector.load %arg3[%c0_3, %c0_4] : memref<1x32xf32, #tpu.memory_space<vmem>>, vector<1x32xf32>
    %4 = vector.broadcast %3 : vector<1x32xf32> to vector<256x32xf32>
    %5 = arith.addf %2, %4 : vector<256x32xf32>
    %6 = arith.negf %5 : vector<256x32xf32>
    %7 = math.exp %6 : vector<256x32xf32>
    %cst_5 = arith.constant 1.000000e+00 : f32
    %8 = vector.broadcast %cst_5 : f32 to vector<256x32xf32>
    %9 = arith.addf %8, %7 : vector<256x32xf32>
    %10 = arith.divf %8, %9 : vector<256x32xf32>
    %11 = arith.mulf %5, %10 : vector<256x32xf32>
    %12 = arith.truncf %11 : vector<256x32xf32> to vector<256x32xbf16>
    %c0_6 = arith.constant 0 : index
    %c0_7 = arith.constant 0 : index
    %13 = vector.load %arg4[%c0_6, %c0_7] : memref<256x32xbf16, #tpu.memory_space<vmem>>, vector<256x32xbf16>
    tpu.vector_store %arg4[%c0_6, %c0_7], %12 {strides = array<i32>} : memref<256x32xbf16, #tpu.memory_space<vmem>>, vector<256x32xbf16>,
    return
  }
  func.func @transform_0(%arg0: i32) -> (i32, i32) {
    %c0_i32 = arith.constant 0 : i32
    %c0_i32_0 = arith.constant 0 : i32
    return %arg0, %c0_i32 : i32, i32
  }
  func.func @transform_1(%arg0: i32) -> (i32, i32) {
    %c0_i32 = arith.constant 0 : i32
    %c0_i32_0 = arith.constant 0 : i32
    %c0_i32_1 = arith.constant 0 : i32
    return %c0_i32, %c0_i32_0 : i32, i32
  }
  func.func @transform_2(%arg0: i32) -> (i32, i32) {
    %c0_i32 = arith.constant 0 : i32
    %c0_i32_0 = arith.constant 0 : i32
    %c0_i32_1 = arith.constant 0 : i32
    return %c0_i32, %c0_i32_0 : i32, i32
  }
  func.func @transform_3(%arg0: i32) -> (i32, i32) {
    %c0_i32 = arith.constant 0 : i32
    %c0_i32_0 = arith.constant 0 : i32
    return %arg0, %c0_i32 : i32, i32
  }
}

module attributes {stable_mosaic.version = 11 : i64} {
  func.func @_gemm_silu_kernel(%arg0: i32, %arg1: memref<64x128xbf16, #tpu.memory_space<vmem>>, %arg2: memref<128x64xbf16, #tpu.memory_space<vmem>>, %arg3: memref<1x64xf32, #tpu.memory_space<vmem>>, %arg4: memref<64x64xbf16, #tpu.memory_space<vmem>>) attributes {dimension_semantics = [#tpu.dimension_semantics<parallel>], iteration_bounds = array<i64: 2>, scalar_prefetch = 0 : i64, scratch_operands = 0 : i64, tpu.core_type = #tpu.core_type<tc>, window_params = [{transform_indices = @transform_0, window_bounds = array<i64: 64, 128>}, {pipeline_mode = #tpu.pipeline_mode<synchronous>, transform_indices = @transform_1, window_bounds = array<i64: 128, 64>}, {pipeline_mode = #tpu.pipeline_mode<synchronous>, transform_indices = @transform_2, window_bounds = array<i64: 1, 64>}, {transform_indices = @transform_3, window_bounds = array<i64: 64, 64>}]} {
    %c0 = arith.constant 0 : index
    %c0_0 = arith.constant 0 : index
    %0 = vector.load %arg1[%c0, %c0_0] : memref<64x128xbf16, #tpu.memory_space<vmem>>, vector<64x128xbf16>
    %c0_1 = arith.constant 0 : index
    %c0_2 = arith.constant 0 : index
    %1 = vector.load %arg2[%c0_1, %c0_2] : memref<128x64xbf16, #tpu.memory_space<vmem>>, vector<128x64xbf16>
    %cst = arith.constant dense<0.000000e+00> : vector<64x64xf32>
    %2 = tpu.matmul %0, %1, %cst {dimension_numbers = #tpu.dot_dimension_numbers<[1], [0], [0], [1], [0, 0, 1, 1], [], []>} : vector<64x128xbf16>, vector<128x64xbf16>, vector<64x64xf32> -> vector<64x64xf32>
    %c0_3 = arith.constant 0 : index
    %c0_4 = arith.constant 0 : index
    %3 = vector.load %arg3[%c0_3, %c0_4] : memref<1x64xf32, #tpu.memory_space<vmem>>, vector<1x64xf32>
    %4 = vector.broadcast %3 : vector<1x64xf32> to vector<64x64xf32>
    %5 = arith.addf %2, %4 : vector<64x64xf32>
    %6 = arith.negf %5 : vector<64x64xf32>
    %7 = math.exp %6 : vector<64x64xf32>
    %cst_5 = arith.constant 1.000000e+00 : f32
    %8 = vector.broadcast %cst_5 : f32 to vector<64x64xf32>
    %9 = arith.addf %8, %7 : vector<64x64xf32>
    %10 = arith.divf %8, %9 : vector<64x64xf32>
    %11 = arith.mulf %5, %10 : vector<64x64xf32>
    %12 = arith.truncf %11 : vector<64x64xf32> to vector<64x64xbf16>
    %c0_6 = arith.constant 0 : index
    %c0_7 = arith.constant 0 : index
    %13 = vector.load %arg4[%c0_6, %c0_7] : memref<64x64xbf16, #tpu.memory_space<vmem>>, vector<64x64xbf16>
    tpu.vector_store %arg4[%c0_6, %c0_7], %12 {strides = array<i32>} : memref<64x64xbf16, #tpu.memory_space<vmem>>, vector<64x64xbf16>,
    return
  }
  func.func @transform_0(%arg0: i32) -> (i32, i32) {
    %c0_i32 = arith.constant 0 : i32
    %c0_i32_0 = arith.constant 0 : i32
    return %arg0, %c0_i32 : i32, i32
  }
  func.func @transform_1(%arg0: i32) -> (i32, i32) {
    %c0_i32 = arith.constant 0 : i32
    %c0_i32_0 = arith.constant 0 : i32
    %c0_i32_1 = arith.constant 0 : i32
    return %c0_i32, %c0_i32_0 : i32, i32
  }
  func.func @transform_2(%arg0: i32) -> (i32, i32) {
    %c0_i32 = arith.constant 0 : i32
    %c0_i32_0 = arith.constant 0 : i32
    %c0_i32_1 = arith.constant 0 : i32
    return %c0_i32, %c0_i32_0 : i32, i32
  }
  func.func @transform_3(%arg0: i32) -> (i32, i32) {
    %c0_i32 = arith.constant 0 : i32
    %c0_i32_0 = arith.constant 0 : i32
    return %arg0, %c0_i32 : i32, i32
  }
}

module attributes {stable_mosaic.version = 11 : i64} {
  func.func @_gemm_silu_kernel(%arg0: i32, %arg1: memref<16x256xbf16, #tpu.memory_space<vmem>>, %arg2: memref<256x128xbf16, #tpu.memory_space<vmem>>, %arg3: memref<1x128xf32, #tpu.memory_space<vmem>>, %arg4: memref<16x128xbf16, #tpu.memory_space<vmem>>) attributes {dimension_semantics = [#tpu.dimension_semantics<parallel>], iteration_bounds = array<i64: 2>, scalar_prefetch = 0 : i64, scratch_operands = 0 : i64, tpu.core_type = #tpu.core_type<tc>, window_params = [{transform_indices = @transform_0, window_bounds = array<i64: 16, 256>}, {pipeline_mode = #tpu.pipeline_mode<synchronous>, transform_indices = @transform_1, window_bounds = array<i64: 256, 128>}, {pipeline_mode = #tpu.pipeline_mode<synchronous>, transform_indices = @transform_2, window_bounds = array<i64: 1, 128>}, {transform_indices = @transform_3, window_bounds = array<i64: 16, 128>}]} {
    %c0 = arith.constant 0 : index
    %c0_0 = arith.constant 0 : index
    %0 = vector.load %arg1[%c0, %c0_0] : memref<16x256xbf16, #tpu.memory_space<vmem>>, vector<16x256xbf16>
    %c0_1 = arith.constant 0 : index
    %c0_2 = arith.constant 0 : index
    %1 = vector.load %arg2[%c0_1, %c0_2] : memref<256x128xbf16, #tpu.memory_space<vmem>>, vector<256x128xbf16>
    %cst = arith.constant dense<0.000000e+00> : vector<16x128xf32>
    %2 = tpu.matmul %0, %1, %cst {dimension_numbers = #tpu.dot_dimension_numbers<[1], [0], [0], [1], [0, 0, 1, 1], [], []>} : vector<16x256xbf16>, vector<256x128xbf16>, vector<16x128xf32> -> vector<16x128xf32>
    %c0_3 = arith.constant 0 : index
    %c0_4 = arith.constant 0 : index
    %3 = vector.load %arg3[%c0_3, %c0_4] : memref<1x128xf32, #tpu.memory_space<vmem>>, vector<1x128xf32>
    %4 = vector.broadcast %3 : vector<1x128xf32> to vector<16x128xf32>
    %5 = arith.addf %2, %4 : vector<16x128xf32>
    %6 = arith.negf %5 : vector<16x128xf32>
    %7 = math.exp %6 : vector<16x128xf32>
    %cst_5 = arith.constant 1.000000e+00 : f32
    %8 = vector.broadcast %cst_5 : f32 to vector<16x128xf32>
    %9 = arith.addf %8, %7 : vector<16x128xf32>
    %10 = arith.divf %8, %9 : vector<16x128xf32>
    %11 = arith.mulf %5, %10 : vector<16x128xf32>
    %12 = arith.truncf %11 : vector<16x128xf32> to vector<16x128xbf16>
    %c0_6 = arith.constant 0 : index
    %c0_7 = arith.constant 0 : index
    %13 = vector.load %arg4[%c0_6, %c0_7] : memref<16x128xbf16, #tpu.memory_space<vmem>>, vector<16x128xbf16>
    tpu.vector_store %arg4[%c0_6, %c0_7], %12 {strides = array<i32>} : memref<16x128xbf16, #tpu.memory_space<vmem>>, vector<16x128xbf16>,
    return
  }
  func.func @transform_0(%arg0: i32) -> (i32, i32) {
    %c0_i32 = arith.constant 0 : i32
    %c0_i32_0 = arith.constant 0 : i32
    return %arg0, %c0_i32 : i32, i32
  }
  func.func @transform_1(%arg0: i32) -> (i32, i32) {
    %c0_i32 = arith.constant 0 : i32
    %c0_i32_0 = arith.constant 0 : i32
    %c0_i32_1 = arith.constant 0 : i32
    return %c0_i32, %c0_i32_0 : i32, i32
  }
  func.func @transform_2(%arg0: i32) -> (i32, i32) {
    %c0_i32 = arith.constant 0 : i32
    %c0_i32_0 = arith.constant 0 : i32
    %c0_i32_1 = arith.constant 0 : i32
    return %c0_i32, %c0_i32_0 : i32, i32
  }
  func.func @transform_3(%arg0: i32) -> (i32, i32) {
    %c0_i32 = arith.constant 0 : i32
    %c0_i32_0 = arith.constant 0 : i32
    return %arg0, %c0_i32 : i32, i32
  }
}

module attributes {stable_mosaic.version = 11 : i64} {
  func.func @_fused_ldm_kernel(%arg0: i32, %arg1: memref<2x2xf32, #tpu.memory_space<smem>>, %arg2: memref<1x4x512xbf16, #tpu.memory_space<vmem>>, %arg3: memref<1x4x16xf32, #tpu.memory_space<vmem>>, %arg4: memref<1x4x16xf32, #tpu.memory_space<vmem>>, %arg5: memref<1x1x32xf32, #tpu.memory_space<vmem>>, %arg6: memref<1x1x64xf32, #tpu.memory_space<vmem>>, %arg7: memref<512x16xbf16, #tpu.memory_space<vmem>>, %arg8: memref<512x16xbf16, #tpu.memory_space<vmem>>, %arg9: memref<1x16xf32, #tpu.memory_space<vmem>>, %arg10: memref<1x16xf32, #tpu.memory_space<vmem>>, %arg11: memref<32x64xf32, #tpu.memory_space<vmem>>, %arg12: memref<1x64xf32, #tpu.memory_space<vmem>>, %arg13: memref<64x64xf32, #tpu.memory_space<vmem>>, %arg14: memref<1x64xf32, #tpu.memory_space<vmem>>, %arg15: memref<64x128xf32, #tpu.memory_space<vmem>>, %arg16: memref<1x128xf32, #tpu.memory_space<vmem>>, %arg17: memref<144x128xbf16, #tpu.memory_space<vmem>>, %arg18: memref<1x128xf32, #tpu.memory_space<vmem>>, %arg19: memref<1152x128xbf16, #tpu.memory_space<vmem>>, %arg20: memref<1x128xf32, #tpu.memory_space<vmem>>, %arg21: memref<1152x128xbf16, #tpu.memory_space<vmem>>, %arg22: memref<1x128xf32, #tpu.memory_space<vmem>>, %arg23: memref<1152x16xbf16, #tpu.memory_space<vmem>>, %arg24: memref<1x16xf32, #tpu.memory_space<vmem>>, %arg25: memref<1x8x128xf32, #tpu.memory_space<vmem>>) attributes {dimension_semantics = [#tpu.dimension_semantics<parallel>], iteration_bounds = array<i64: 2>, scalar_prefetch = 0 : i64, scratch_operands = 0 : i64, tpu.core_type = #tpu.core_type<tc>, window_params = [{transform_indices = @transform_0, window_bounds = array<i64: 2, 2>}, {transform_indices = @transform_1, window_bounds = array<i64: 1, 4, 512>}, {transform_indices = @transform_2, window_bounds = array<i64: 1, 4, 16>}, {transform_indices = @transform_3, window_bounds = array<i64: 1, 4, 16>}, {transform_indices = @transform_4, window_bounds = array<i64: 1, 1, 32>}, {transform_indices = @transform_5, window_bounds = array<i64: 1, 1, 64>}, {pipeline_mode = #tpu.pipeline_mode<synchronous>, transform_indices = @transform_6, window_bounds = array<i64: 512, 16>}, {pipeline_mode = #tpu.pipeline_mode<synchronous>, transform_indices = @transform_7, window_bounds = array<i64: 512, 16>}, {pipeline_mode = #tpu.pipeline_mode<synchronous>, transform_indices = @transform_8, window_bounds = array<i64: 1, 16>}, {pipeline_mode = #tpu.pipeline_mode<synchronous>, transform_indices = @transform_9, window_bounds = array<i64: 1, 16>}, {pipeline_mode = #tpu.pipeline_mode<synchronous>, transform_indices = @transform_10, window_bounds = array<i64: 32, 64>}, {pipeline_mode = #tpu.pipeline_mode<synchronous>, transform_indices = @transform_11, window_bounds = array<i64: 1, 64>}, {pipeline_mode = #tpu.pipeline_mode<synchronous>, transform_indices = @transform_12, window_bounds = array<i64: 64, 64>}, {pipeline_mode = #tpu.pipeline_mode<synchronous>, transform_indices = @transform_13, window_bounds = array<i64: 1, 64>}, {pipeline_mode = #tpu.pipeline_mode<synchronous>, transform_indices = @transform_14, window_bounds = array<i64: 64, 128>}, {pipeline_mode = #tpu.pipeline_mode<synchronous>, transform_indices = @transform_15, window_bounds = array<i64: 1, 128>}, {pipeline_mode = #tpu.pipeline_mode<synchronous>, transform_indices = @transform_16, window_bounds = array<i64: 144, 128>}, {pipeline_mode = #tpu.pipeline_mode<synchronous>, transform_indices = @transform_17, window_bounds = array<i64: 1, 128>}, {pipeline_mode = #tpu.pipeline_mode<synchronous>, transform_indices = @transform_18, window_bounds = array<i64: 1152, 128>}, {pipeline_mode = #tpu.pipeline_mode<synchronous>, transform_indices = @transform_19, window_bounds = array<i64: 1, 128>}, {pipeline_mode = #tpu.pipeline_mode<synchronous>, transform_indices = @transform_20, window_bounds = array<i64: 1152, 128>}, {pipeline_mode = #tpu.pipeline_mode<synchronous>, transform_indices = @transform_21, window_bounds = array<i64: 1, 128>}, {pipeline_mode = #tpu.pipeline_mode<synchronous>, transform_indices = @transform_22, window_bounds = array<i64: 1152, 16>}, {pipeline_mode = #tpu.pipeline_mode<synchronous>, transform_indices = @transform_23, window_bounds = array<i64: 1, 16>}, {transform_indices = @transform_24, window_bounds = array<i64: 1, 8, 128>}]} {
    %0 = arith.index_cast %arg0 : i32 to index
    %c0 = arith.constant 0 : index
    %1 = memref.load %arg1[%0, %c0] : memref<2x2xf32, #tpu.memory_space<smem>>
    %2 = arith.index_cast %arg0 : i32 to index
    %c1 = arith.constant 1 : index
    %3 = memref.load %arg1[%2, %c1] : memref<2x2xf32, #tpu.memory_space<smem>>
    %c0_0 = arith.constant 0 : index
    %c0_1 = arith.constant 0 : index
    %c0_2 = arith.constant 0 : index
    %4 = vector.load %arg2[%c0_0, %c0_1, %c0_2] : memref<1x4x512xbf16, #tpu.memory_space<vmem>>, vector<1x4x512xbf16>
    %5 = vector.shape_cast %4 : vector<1x4x512xbf16> to vector<4x512xbf16>
    %c0_3 = arith.constant 0 : index
    %c0_4 = arith.constant 0 : index
    %6 = vector.load %arg7[%c0_3, %c0_4] : memref<512x16xbf16, #tpu.memory_space<vmem>>, vector<512x16xbf16>
    %cst = arith.constant dense<0.000000e+00> : vector<4x16xf32>
    %7 = tpu.matmul %5, %6, %cst {dimension_numbers = #tpu.dot_dimension_numbers<[1], [0], [0], [1], [0, 0, 1, 1], [], []>} : vector<4x512xbf16>, vector<512x16xbf16>, vector<4x16xf32> -> vector<4x16xf32>
    %c0_5 = arith.constant 0 : index
    %c0_6 = arith.constant 0 : index
    %8 = vector.load %arg9[%c0_5, %c0_6] : memref<1x16xf32, #tpu.memory_space<vmem>>, vector<1x16xf32>
    %9 = vector.broadcast %8 : vector<1x16xf32> to vector<4x16xf32>
    %10 = arith.addf %7, %9 : vector<4x16xf32>
    %c0_7 = arith.constant 0 : index
    %c0_8 = arith.constant 0 : index
    %11 = vector.load %arg8[%c0_7, %c0_8] : memref<512x16xbf16, #tpu.memory_space<vmem>>, vector<512x16xbf16>
    %cst_9 = arith.constant dense<0.000000e+00> : vector<4x16xf32>
    %12 = tpu.matmul %5, %11, %cst_9 {dimension_numbers = #tpu.dot_dimension_numbers<[1], [0], [0], [1], [0, 0, 1, 1], [], []>} : vector<4x512xbf16>, vector<512x16xbf16>, vector<4x16xf32> -> vector<4x16xf32>
    %c0_10 = arith.constant 0 : index
    %c0_11 = arith.constant 0 : index
    %13 = vector.load %arg10[%c0_10, %c0_11] : memref<1x16xf32, #tpu.memory_space<vmem>>, vector<1x16xf32>
    %14 = vector.broadcast %13 : vector<1x16xf32> to vector<4x16xf32>
    %15 = arith.addf %12, %14 : vector<4x16xf32>
    %cst_12 = arith.constant -3.000000e+01 : f32
    %cst_13 = arith.constant 2.000000e+01 : f32
    %16 = vector.broadcast %cst_12 : f32 to vector<4x16xf32>
    %17 = arith.maximumf %16, %15 : vector<4x16xf32>
    %18 = vector.broadcast %cst_13 : f32 to vector<4x16xf32>
    %19 = arith.minimumf %18, %17 : vector<4x16xf32>
    %cst_14 = arith.constant 5.000000e-01 : f32
    %20 = vector.broadcast %cst_14 : f32 to vector<4x16xf32>
    %21 = arith.mulf %20, %19 : vector<4x16xf32>
    %22 = math.exp %21 : vector<4x16xf32>
    %c0_15 = arith.constant 0 : index
    %c0_16 = arith.constant 0 : index
    %c0_17 = arith.constant 0 : index
    %23 = vector.load %arg3[%c0_15, %c0_16, %c0_17] : memref<1x4x16xf32, #tpu.memory_space<vmem>>, vector<1x4x16xf32>
    %24 = vector.shape_cast %23 : vector<1x4x16xf32> to vector<4x16xf32>
    %25 = arith.mulf %22, %24 : vector<4x16xf32>
    %26 = arith.addf %10, %25 : vector<4x16xf32>
    %cst_18 = arith.constant 1.821500e-01 : f32
    %27 = vector.broadcast %cst_18 : f32 to vector<4x16xf32>
    %28 = arith.mulf %26, %27 : vector<4x16xf32>
    %29 = vector.broadcast %1 : f32 to vector<4x16xf32>
    %30 = arith.mulf %29, %28 : vector<4x16xf32>
    %c0_19 = arith.constant 0 : index
    %c0_20 = arith.constant 0 : index
    %c0_21 = arith.constant 0 : index
    %31 = vector.load %arg4[%c0_19, %c0_20, %c0_21] : memref<1x4x16xf32, #tpu.memory_space<vmem>>, vector<1x4x16xf32>
    %32 = vector.shape_cast %31 : vector<1x4x16xf32> to vector<4x16xf32>
    %33 = vector.broadcast %3 : f32 to vector<4x16xf32>
    %34 = arith.mulf %33, %32 : vector<4x16xf32>
    %35 = arith.addf %30, %34 : vector<4x16xf32>
    %c0_22 = arith.constant 0 : index
    %c0_23 = arith.constant 0 : index
    %c0_24 = arith.constant 0 : index
    %36 = vector.load %arg5[%c0_22, %c0_23, %c0_24] : memref<1x1x32xf32, #tpu.memory_space<vmem>>, vector<1x1x32xf32>
    %37 = vector.shape_cast %36 : vector<1x1x32xf32> to vector<1x32xf32>
    %c0_25 = arith.constant 0 : index
    %c0_26 = arith.constant 0 : index
    %38 = vector.load %arg11[%c0_25, %c0_26] : memref<32x64xf32, #tpu.memory_space<vmem>>, vector<32x64xf32>
    %cst_27 = arith.constant dense<0.000000e+00> : vector<1x64xf32>
    %39 = tpu.matmul %37, %38, %cst_27 {dimension_numbers = #tpu.dot_dimension_numbers<[1], [0], [0], [1], [0, 0, 1, 1], [], []>} : vector<1x32xf32>, vector<32x64xf32>, vector<1x64xf32> -> vector<1x64xf32>
    %c0_28 = arith.constant 0 : index
    %c0_29 = arith.constant 0 : index
    %40 = vector.load %arg12[%c0_28, %c0_29] : memref<1x64xf32, #tpu.memory_space<vmem>>, vector<1x64xf32>
    %41 = arith.addf %39, %40 : vector<1x64xf32>
    %42 = arith.negf %41 : vector<1x64xf32>
    %43 = math.exp %42 : vector<1x64xf32>
    %cst_30 = arith.constant 1.000000e+00 : f32
    %44 = vector.broadcast %cst_30 : f32 to vector<1x64xf32>
    %45 = arith.addf %44, %43 : vector<1x64xf32>
    %46 = arith.divf %44, %45 : vector<1x64xf32>
    %47 = arith.mulf %41, %46 : vector<1x64xf32>
    %c0_31 = arith.constant 0 : index
    %c0_32 = arith.constant 0 : index
    %48 = vector.load %arg13[%c0_31, %c0_32] : memref<64x64xf32, #tpu.memory_space<vmem>>, vector<64x64xf32>
    %cst_33 = arith.constant dense<0.000000e+00> : vector<1x64xf32>
    %49 = tpu.matmul %47, %48, %cst_33 {dimension_numbers = #tpu.dot_dimension_numbers<[1], [0], [0], [1], [0, 0, 1, 1], [], []>} : vector<1x64xf32>, vector<64x64xf32>, vector<1x64xf32> -> vector<1x64xf32>
    %c0_34 = arith.constant 0 : index
    %c0_35 = arith.constant 0 : index
    %50 = vector.load %arg14[%c0_34, %c0_35] : memref<1x64xf32, #tpu.memory_space<vmem>>, vector<1x64xf32>
    %51 = arith.addf %49, %50 : vector<1x64xf32>
    %c0_36 = arith.constant 0 : index
    %c0_37 = arith.constant 0 : index
    %c0_38 = arith.constant 0 : index
    %52 = vector.load %arg6[%c0_36, %c0_37, %c0_38] : memref<1x1x64xf32, #tpu.memory_space<vmem>>, vector<1x1x64xf32>
    %53 = vector.shape_cast %52 : vector<1x1x64xf32> to vector<1x64xf32>
    %54 = arith.addf %51, %53 : vector<1x64xf32>
    %55 = arith.negf %54 : vector<1x64xf32>
    %56 = math.exp %55 : vector<1x64xf32>
    %cst_39 = arith.constant 1.000000e+00 : f32
    %57 = vector.broadcast %cst_39 : f32 to vector<1x64xf32>
    %58 = arith.addf %57, %56 : vector<1x64xf32>
    %59 = arith.divf %57, %58 : vector<1x64xf32>
    %60 = arith.mulf %54, %59 : vector<1x64xf32>
    %c0_40 = arith.constant 0 : index
    %c0_41 = arith.constant 0 : index
    %61 = vector.load %arg15[%c0_40, %c0_41] : memref<64x128xf32, #tpu.memory_space<vmem>>, vector<64x128xf32>
    %cst_42 = arith.constant dense<0.000000e+00> : vector<1x128xf32>
    %62 = tpu.matmul %60, %61, %cst_42 {dimension_numbers = #tpu.dot_dimension_numbers<[1], [0], [0], [1], [0, 0, 1, 1], [], []>} : vector<1x64xf32>, vector<64x128xf32>, vector<1x128xf32> -> vector<1x128xf32>
    %c0_43 = arith.constant 0 : index
    %c0_44 = arith.constant 0 : index
    %63 = vector.load %arg16[%c0_43, %c0_44] : memref<1x128xf32, #tpu.memory_space<vmem>>, vector<1x128xf32>
    %64 = arith.addf %62, %63 : vector<1x128xf32>
    %65 = arith.truncf %35 : vector<4x16xf32> to vector<4x16xbf16>
    %cst_45 = arith.constant 0.000000e+00 : bf16
    %66 = vector.broadcast %cst_45 : bf16 to vector<1x16xbf16>
    %67 = tpu.concatenate %66, %65, %66 in 0 : vector<1x16xbf16>, vector<4x16xbf16>, vector<1x16xbf16> -> vector<6x16xbf16>
    %cst_46 = arith.constant 0.000000e+00 : bf16
    %68 = vector.broadcast %cst_46 : bf16 to vector<6x4xbf16>
    %69 = tpu.concatenate %68, %67, %68 in 1 : vector<6x4xbf16>, vector<6x16xbf16>, vector<6x4xbf16> -> vector<6x24xbf16>
    %70 = vector.extract_strided_slice %69 {offsets = [0, 0], sizes = [4, 16], strides = [1, 1]} : vector<6x24xbf16> to vector<4x16xbf16>
    %71 = vector.extract_strided_slice %69 {offsets = [0, 4], sizes = [4, 16], strides = [1, 1]} : vector<6x24xbf16> to vector<4x16xbf16>
    %72 = vector.extract_strided_slice %69 {offsets = [0, 8], sizes = [4, 16], strides = [1, 1]} : vector<6x24xbf16> to vector<4x16xbf16>
    %73 = vector.extract_strided_slice %69 {offsets = [1, 0], sizes = [4, 16], strides = [1, 1]} : vector<6x24xbf16> to vector<4x16xbf16>
    %74 = vector.extract_strided_slice %69 {offsets = [1, 4], sizes = [4, 16], strides = [1, 1]} : vector<6x24xbf16> to vector<4x16xbf16>
    %75 = vector.extract_strided_slice %69 {offsets = [1, 8], sizes = [4, 16], strides = [1, 1]} : vector<6x24xbf16> to vector<4x16xbf16>
    %76 = vector.extract_strided_slice %69 {offsets = [2, 0], sizes = [4, 16], strides = [1, 1]} : vector<6x24xbf16> to vector<4x16xbf16>
    %77 = vector.extract_strided_slice %69 {offsets = [2, 4], sizes = [4, 16], strides = [1, 1]} : vector<6x24xbf16> to vector<4x16xbf16>
    %78 = vector.extract_strided_slice %69 {offsets = [2, 8], sizes = [4, 16], strides = [1, 1]} : vector<6x24xbf16> to vector<4x16xbf16>
    %79 = tpu.concatenate %70, %71, %72, %73, %74, %75, %76, %77, %78 in 1 : vector<4x16xbf16>, vector<4x16xbf16>, vector<4x16xbf16>, vector<4x16xbf16>, vector<4x16xbf16>, vector<4x16xbf16>, vector<4x16xbf16>, vector<4x16xbf16>, vector<4x16xbf16> -> vector<4x144xbf16>
    %c0_47 = arith.constant 0 : index
    %c0_48 = arith.constant 0 : index
    %80 = vector.load %arg17[%c0_47, %c0_48] : memref<144x128xbf16, #tpu.memory_space<vmem>>, vector<144x128xbf16>
    %cst_49 = arith.constant dense<0.000000e+00> : vector<4x128xf32>
    %81 = tpu.matmul %79, %80, %cst_49 {dimension_numbers = #tpu.dot_dimension_numbers<[1], [0], [0], [1], [0, 0, 1, 1], [], []>} : vector<4x144xbf16>, vector<144x128xbf16>, vector<4x128xf32> -> vector<4x128xf32>
    %c0_50 = arith.constant 0 : index
    %c0_51 = arith.constant 0 : index
    %82 = vector.load %arg18[%c0_50, %c0_51] : memref<1x128xf32, #tpu.memory_space<vmem>>, vector<1x128xf32>
    %83 = vector.broadcast %82 : vector<1x128xf32> to vector<4x128xf32>
    %84 = arith.addf %81, %83 : vector<4x128xf32>
    %85 = arith.truncf %84 : vector<4x128xf32> to vector<4x128xbf16>
    %cst_52 = arith.constant 0.000000e+00 : bf16
    %86 = vector.broadcast %cst_52 : bf16 to vector<1x128xbf16>
    %87 = tpu.concatenate %86, %85, %86 in 0 : vector<1x128xbf16>, vector<4x128xbf16>, vector<1x128xbf16> -> vector<6x128xbf16>
    %cst_53 = arith.constant 0.000000e+00 : bf16
    %88 = vector.broadcast %cst_53 : bf16 to vector<6x32xbf16>
    %89 = tpu.concatenate %88, %87, %88 in 1 : vector<6x32xbf16>, vector<6x128xbf16>, vector<6x32xbf16> -> vector<6x192xbf16>
    %90 = vector.extract_strided_slice %89 {offsets = [0, 0], sizes = [4, 128], strides = [1, 1]} : vector<6x192xbf16> to vector<4x128xbf16>
    %91 = vector.extract_strided_slice %89 {offsets = [0, 32], sizes = [4, 128], strides = [1, 1]} : vector<6x192xbf16> to vector<4x128xbf16>
    %92 = vector.extract_strided_slice %89 {offsets = [0, 64], sizes = [4, 128], strides = [1, 1]} : vector<6x192xbf16> to vector<4x128xbf16>
    %93 = vector.extract_strided_slice %89 {offsets = [1, 0], sizes = [4, 128], strides = [1, 1]} : vector<6x192xbf16> to vector<4x128xbf16>
    %94 = vector.extract_strided_slice %89 {offsets = [1, 32], sizes = [4, 128], strides = [1, 1]} : vector<6x192xbf16> to vector<4x128xbf16>
    %95 = vector.extract_strided_slice %89 {offsets = [1, 64], sizes = [4, 128], strides = [1, 1]} : vector<6x192xbf16> to vector<4x128xbf16>
    %96 = vector.extract_strided_slice %89 {offsets = [2, 0], sizes = [4, 128], strides = [1, 1]} : vector<6x192xbf16> to vector<4x128xbf16>
    %97 = vector.extract_strided_slice %89 {offsets = [2, 32], sizes = [4, 128], strides = [1, 1]} : vector<6x192xbf16> to vector<4x128xbf16>
    %98 = vector.extract_strided_slice %89 {offsets = [2, 64], sizes = [4, 128], strides = [1, 1]} : vector<6x192xbf16> to vector<4x128xbf16>
    %99 = tpu.concatenate %90, %91, %92, %93, %94, %95, %96, %97, %98 in 1 : vector<4x128xbf16>, vector<4x128xbf16>, vector<4x128xbf16>, vector<4x128xbf16>, vector<4x128xbf16>, vector<4x128xbf16>, vector<4x128xbf16>, vector<4x128xbf16>, vector<4x128xbf16> -> vector<4x1152xbf16>
    %c0_54 = arith.constant 0 : index
    %c0_55 = arith.constant 0 : index
    %100 = vector.load %arg19[%c0_54, %c0_55] : memref<1152x128xbf16, #tpu.memory_space<vmem>>, vector<1152x128xbf16>
    %cst_56 = arith.constant dense<0.000000e+00> : vector<4x128xf32>
    %101 = tpu.matmul %99, %100, %cst_56 {dimension_numbers = #tpu.dot_dimension_numbers<[1], [0], [0], [1], [0, 0, 1, 1], [], []>} : vector<4x1152xbf16>, vector<1152x128xbf16>, vector<4x128xf32> -> vector<4x128xf32>
    %c0_57 = arith.constant 0 : index
    %c0_58 = arith.constant 0 : index
    %102 = vector.load %arg20[%c0_57, %c0_58] : memref<1x128xf32, #tpu.memory_space<vmem>>, vector<1x128xf32>
    %103 = vector.broadcast %102 : vector<1x128xf32> to vector<4x128xf32>
    %104 = arith.addf %101, %103 : vector<4x128xf32>
    %105 = arith.negf %104 : vector<4x128xf32>
    %106 = math.exp %105 : vector<4x128xf32>
    %cst_59 = arith.constant 1.000000e+00 : f32
    %107 = vector.broadcast %cst_59 : f32 to vector<4x128xf32>
    %108 = arith.addf %107, %106 : vector<4x128xf32>
    %109 = arith.divf %107, %108 : vector<4x128xf32>
    %110 = arith.mulf %104, %109 : vector<4x128xf32>
    %111 = vector.broadcast %64 : vector<1x128xf32> to vector<4x128xf32>
    %112 = arith.addf %110, %111 : vector<4x128xf32>
    %113 = arith.truncf %112 : vector<4x128xf32> to vector<4x128xbf16>
    %cst_60 = arith.constant 0.000000e+00 : bf16
    %114 = vector.broadcast %cst_60 : bf16 to vector<1x128xbf16>
    %115 = tpu.concatenate %114, %113, %114 in 0 : vector<1x128xbf16>, vector<4x128xbf16>, vector<1x128xbf16> -> vector<6x128xbf16>
    %cst_61 = arith.constant 0.000000e+00 : bf16
    %116 = vector.broadcast %cst_61 : bf16 to vector<6x32xbf16>
    %117 = tpu.concatenate %116, %115, %116 in 1 : vector<6x32xbf16>, vector<6x128xbf16>, vector<6x32xbf16> -> vector<6x192xbf16>
    %118 = vector.extract_strided_slice %117 {offsets = [0, 0], sizes = [4, 128], strides = [1, 1]} : vector<6x192xbf16> to vector<4x128xbf16>
    %119 = vector.extract_strided_slice %117 {offsets = [0, 32], sizes = [4, 128], strides = [1, 1]} : vector<6x192xbf16> to vector<4x128xbf16>
    %120 = vector.extract_strided_slice %117 {offsets = [0, 64], sizes = [4, 128], strides = [1, 1]} : vector<6x192xbf16> to vector<4x128xbf16>
    %121 = vector.extract_strided_slice %117 {offsets = [1, 0], sizes = [4, 128], strides = [1, 1]} : vector<6x192xbf16> to vector<4x128xbf16>
    %122 = vector.extract_strided_slice %117 {offsets = [1, 32], sizes = [4, 128], strides = [1, 1]} : vector<6x192xbf16> to vector<4x128xbf16>
    %123 = vector.extract_strided_slice %117 {offsets = [1, 64], sizes = [4, 128], strides = [1, 1]} : vector<6x192xbf16> to vector<4x128xbf16>
    %124 = vector.extract_strided_slice %117 {offsets = [2, 0], sizes = [4, 128], strides = [1, 1]} : vector<6x192xbf16> to vector<4x128xbf16>
    %125 = vector.extract_strided_slice %117 {offsets = [2, 32], sizes = [4, 128], strides = [1, 1]} : vector<6x192xbf16> to vector<4x128xbf16>
    %126 = vector.extract_strided_slice %117 {offsets = [2, 64], sizes = [4, 128], strides = [1, 1]} : vector<6x192xbf16> to vector<4x128xbf16>
    %127 = tpu.concatenate %118, %119, %120, %121, %122, %123, %124, %125, %126 in 1 : vector<4x128xbf16>, vector<4x128xbf16>, vector<4x128xbf16>, vector<4x128xbf16>, vector<4x128xbf16>, vector<4x128xbf16>, vector<4x128xbf16>, vector<4x128xbf16>, vector<4x128xbf16> -> vector<4x1152xbf16>
    %c0_62 = arith.constant 0 : index
    %c0_63 = arith.constant 0 : index
    %128 = vector.load %arg21[%c0_62, %c0_63] : memref<1152x128xbf16, #tpu.memory_space<vmem>>, vector<1152x128xbf16>
    %cst_64 = arith.constant dense<0.000000e+00> : vector<4x128xf32>
    %129 = tpu.matmul %127, %128, %cst_64 {dimension_numbers = #tpu.dot_dimension_numbers<[1], [0], [0], [1], [0, 0, 1, 1], [], []>} : vector<4x1152xbf16>, vector<1152x128xbf16>, vector<4x128xf32> -> vector<4x128xf32>
    %c0_65 = arith.constant 0 : index
    %c0_66 = arith.constant 0 : index
    %130 = vector.load %arg22[%c0_65, %c0_66] : memref<1x128xf32, #tpu.memory_space<vmem>>, vector<1x128xf32>
    %131 = vector.broadcast %130 : vector<1x128xf32> to vector<4x128xf32>
    %132 = arith.addf %129, %131 : vector<4x128xf32>
    %133 = arith.addf %132, %84 : vector<4x128xf32>
    %134 = arith.negf %133 : vector<4x128xf32>
    %135 = math.exp %134 : vector<4x128xf32>
    %cst_67 = arith.constant 1.000000e+00 : f32
    %136 = vector.broadcast %cst_67 : f32 to vector<4x128xf32>
    %137 = arith.addf %136, %135 : vector<4x128xf32>
    %138 = arith.divf %136, %137 : vector<4x128xf32>
    %139 = arith.mulf %133, %138 : vector<4x128xf32>
    %140 = arith.truncf %139 : vector<4x128xf32> to vector<4x128xbf16>
    %cst_68 = arith.constant 0.000000e+00 : bf16
    %141 = vector.broadcast %cst_68 : bf16 to vector<1x128xbf16>
    %142 = tpu.concatenate %141, %140, %141 in 0 : vector<1x128xbf16>, vector<4x128xbf16>, vector<1x128xbf16> -> vector<6x128xbf16>
    %cst_69 = arith.constant 0.000000e+00 : bf16
    %143 = vector.broadcast %cst_69 : bf16 to vector<6x32xbf16>
    %144 = tpu.concatenate %143, %142, %143 in 1 : vector<6x32xbf16>, vector<6x128xbf16>, vector<6x32xbf16> -> vector<6x192xbf16>
    %145 = vector.extract_strided_slice %144 {offsets = [0, 0], sizes = [4, 128], strides = [1, 1]} : vector<6x192xbf16> to vector<4x128xbf16>
    %146 = vector.extract_strided_slice %144 {offsets = [0, 32], sizes = [4, 128], strides = [1, 1]} : vector<6x192xbf16> to vector<4x128xbf16>
    %147 = vector.extract_strided_slice %144 {offsets = [0, 64], sizes = [4, 128], strides = [1, 1]} : vector<6x192xbf16> to vector<4x128xbf16>
    %148 = vector.extract_strided_slice %144 {offsets = [1, 0], sizes = [4, 128], strides = [1, 1]} : vector<6x192xbf16> to vector<4x128xbf16>
    %149 = vector.extract_strided_slice %144 {offsets = [1, 32], sizes = [4, 128], strides = [1, 1]} : vector<6x192xbf16> to vector<4x128xbf16>
    %150 = vector.extract_strided_slice %144 {offsets = [1, 64], sizes = [4, 128], strides = [1, 1]} : vector<6x192xbf16> to vector<4x128xbf16>
    %151 = vector.extract_strided_slice %144 {offsets = [2, 0], sizes = [4, 128], strides = [1, 1]} : vector<6x192xbf16> to vector<4x128xbf16>
    %152 = vector.extract_strided_slice %144 {offsets = [2, 32], sizes = [4, 128], strides = [1, 1]} : vector<6x192xbf16> to vector<4x128xbf16>
    %153 = vector.extract_strided_slice %144 {offsets = [2, 64], sizes = [4, 128], strides = [1, 1]} : vector<6x192xbf16> to vector<4x128xbf16>
    %154 = tpu.concatenate %145, %146, %147, %148, %149, %150, %151, %152, %153 in 1 : vector<4x128xbf16>, vector<4x128xbf16>, vector<4x128xbf16>, vector<4x128xbf16>, vector<4x128xbf16>, vector<4x128xbf16>, vector<4x128xbf16>, vector<4x128xbf16>, vector<4x128xbf16> -> vector<4x1152xbf16>
    %c0_70 = arith.constant 0 : index
    %c0_71 = arith.constant 0 : index
    %155 = vector.load %arg23[%c0_70, %c0_71] : memref<1152x16xbf16, #tpu.memory_space<vmem>>, vector<1152x16xbf16>
    %cst_72 = arith.constant dense<0.000000e+00> : vector<4x16xf32>
    %156 = tpu.matmul %154, %155, %cst_72 {dimension_numbers = #tpu.dot_dimension_numbers<[1], [0], [0], [1], [0, 0, 1, 1], [], []>} : vector<4x1152xbf16>, vector<1152x16xbf16>, vector<4x16xf32> -> vector<4x16xf32>
    %c0_73 = arith.constant 0 : index
    %c0_74 = arith.constant 0 : index
    %157 = vector.load %arg24[%c0_73, %c0_74] : memref<1x16xf32, #tpu.memory_space<vmem>>, vector<1x16xf32>
    %158 = vector.broadcast %157 : vector<1x16xf32> to vector<4x16xf32>
    %159 = arith.addf %156, %158 : vector<4x16xf32>
    %c0_75 = arith.constant 0 : index
    %c0_76 = arith.constant 0 : index
    %c0_77 = arith.constant 0 : index
    %160 = vector.load %arg4[%c0_75, %c0_76, %c0_77] : memref<1x4x16xf32, #tpu.memory_space<vmem>>, vector<1x4x16xf32>
    %161 = vector.shape_cast %160 : vector<1x4x16xf32> to vector<4x16xf32>
    %162 = arith.subf %159, %161 : vector<4x16xf32>
    %163 = arith.mulf %162, %162 : vector<4x16xf32>
    %cst_78 = arith.constant dense<0.000000e+00> : vector<4xf32>
    %164 = vector.multi_reduction <add>, %163, %cst_78 [1] : vector<4x16xf32> to vector<4xf32>
    %165 = vector.shape_cast %164 : vector<4xf32> to vector<4x1xf32>
    %cst_79 = arith.constant dense<0.000000e+00> : vector<1xf32>
    %166 = vector.multi_reduction <add>, %165, %cst_79 [0] : vector<4x1xf32> to vector<1xf32>
    %167 = vector.shape_cast %166 : vector<1xf32> to vector<1x1xf32>
    %168 = vector.shape_cast %167 : vector<1x1xf32> to vector<1x1x1xf32>
    %169 = vector.shape_cast %168 : vector<1x1x1xf32> to vector<1x1x1xf32>
    %170 = vector.broadcast %169 : vector<1x1x1xf32> to vector<1x8x128xf32>
    %c0_80 = arith.constant 0 : index
    %c0_81 = arith.constant 0 : index
    %c0_82 = arith.constant 0 : index
    %171 = vector.load %arg25[%c0_80, %c0_81, %c0_82] : memref<1x8x128xf32, #tpu.memory_space<vmem>>, vector<1x8x128xf32>
    tpu.vector_store %arg25[%c0_80, %c0_81, %c0_82], %170 {strides = array<i32>} : memref<1x8x128xf32, #tpu.memory_space<vmem>>, vector<1x8x128xf32>,
    return
  }
  func.func @transform_0(%arg0: i32) -> (i32, i32) {
    %c0_i32 = arith.constant 0 : i32
    %c0_i32_0 = arith.constant 0 : i32
    %c0_i32_1 = arith.constant 0 : i32
    return %c0_i32, %c0_i32_0 : i32, i32
  }
  func.func @transform_1(%arg0: i32) -> (i32, i32, i32) {
    %c0_i32 = arith.constant 0 : i32
    %c0_i32_0 = arith.constant 0 : i32
    %c0_i32_1 = arith.constant 0 : i32
    return %arg0, %c0_i32, %c0_i32_0 : i32, i32, i32
  }
  func.func @transform_2(%arg0: i32) -> (i32, i32, i32) {
    %c0_i32 = arith.constant 0 : i32
    %c0_i32_0 = arith.constant 0 : i32
    %c0_i32_1 = arith.constant 0 : i32
    return %arg0, %c0_i32, %c0_i32_0 : i32, i32, i32
  }
  func.func @transform_3(%arg0: i32) -> (i32, i32, i32) {
    %c0_i32 = arith.constant 0 : i32
    %c0_i32_0 = arith.constant 0 : i32
    %c0_i32_1 = arith.constant 0 : i32
    return %arg0, %c0_i32, %c0_i32_0 : i32, i32, i32
  }
  func.func @transform_4(%arg0: i32) -> (i32, i32, i32) {
    %c0_i32 = arith.constant 0 : i32
    %c0_i32_0 = arith.constant 0 : i32
    %c0_i32_1 = arith.constant 0 : i32
    return %arg0, %c0_i32, %c0_i32_0 : i32, i32, i32
  }
  func.func @transform_5(%arg0: i32) -> (i32, i32, i32) {
    %c0_i32 = arith.constant 0 : i32
    %c0_i32_0 = arith.constant 0 : i32
    %c0_i32_1 = arith.constant 0 : i32
    return %arg0, %c0_i32, %c0_i32_0 : i32, i32, i32
  }
  func.func @transform_6(%arg0: i32) -> (i32, i32) {
    %c0_i32 = arith.constant 0 : i32
    %c0_i32_0 = arith.constant 0 : i32
    %c0_i32_1 = arith.constant 0 : i32
    return %c0_i32, %c0_i32_0 : i32, i32
  }
  func.func @transform_7(%arg0: i32) -> (i32, i32) {
    %c0_i32 = arith.constant 0 : i32
    %c0_i32_0 = arith.constant 0 : i32
    %c0_i32_1 = arith.constant 0 : i32
    return %c0_i32, %c0_i32_0 : i32, i32
  }
  func.func @transform_8(%arg0: i32) -> (i32, i32) {
    %c0_i32 = arith.constant 0 : i32
    %c0_i32_0 = arith.constant 0 : i32
    %c0_i32_1 = arith.constant 0 : i32
    return %c0_i32, %c0_i32_0 : i32, i32
  }
  func.func @transform_9(%arg0: i32) -> (i32, i32) {
    %c0_i32 = arith.constant 0 : i32
    %c0_i32_0 = arith.constant 0 : i32
    %c0_i32_1 = arith.constant 0 : i32
    return %c0_i32, %c0_i32_0 : i32, i32
  }
  func.func @transform_10(%arg0: i32) -> (i32, i32) {
    %c0_i32 = arith.constant 0 : i32
    %c0_i32_0 = arith.constant 0 : i32
    %c0_i32_1 = arith.constant 0 : i32
    return %c0_i32, %c0_i32_0 : i32, i32
  }
  func.func @transform_11(%arg0: i32) -> (i32, i32) {
    %c0_i32 = arith.constant 0 : i32
    %c0_i32_0 = arith.constant 0 : i32
    %c0_i32_1 = arith.constant 0 : i32
    return %c0_i32, %c0_i32_0 : i32, i32
  }
  func.func @transform_12(%arg0: i32) -> (i32, i32) {
    %c0_i32 = arith.constant 0 : i32
    %c0_i32_0 = arith.constant 0 : i32
    %c0_i32_1 = arith.constant 0 : i32
    return %c0_i32, %c0_i32_0 : i32, i32
  }
  func.func @transform_13(%arg0: i32) -> (i32, i32) {
    %c0_i32 = arith.constant 0 : i32
    %c0_i32_0 = arith.constant 0 : i32
    %c0_i32_1 = arith.constant 0 : i32
    return %c0_i32, %c0_i32_0 : i32, i32
  }
  func.func @transform_14(%arg0: i32) -> (i32, i32) {
    %c0_i32 = arith.constant 0 : i32
    %c0_i32_0 = arith.constant 0 : i32
    %c0_i32_1 = arith.constant 0 : i32
    return %c0_i32, %c0_i32_0 : i32, i32
  }
  func.func @transform_15(%arg0: i32) -> (i32, i32) {
    %c0_i32 = arith.constant 0 : i32
    %c0_i32_0 = arith.constant 0 : i32
    %c0_i32_1 = arith.constant 0 : i32
    return %c0_i32, %c0_i32_0 : i32, i32
  }
  func.func @transform_16(%arg0: i32) -> (i32, i32) {
    %c0_i32 = arith.constant 0 : i32
    %c0_i32_0 = arith.constant 0 : i32
    %c0_i32_1 = arith.constant 0 : i32
    return %c0_i32, %c0_i32_0 : i32, i32
  }
  func.func @transform_17(%arg0: i32) -> (i32, i32) {
    %c0_i32 = arith.constant 0 : i32
    %c0_i32_0 = arith.constant 0 : i32
    %c0_i32_1 = arith.constant 0 : i32
    return %c0_i32, %c0_i32_0 : i32, i32
  }
  func.func @transform_18(%arg0: i32) -> (i32, i32) {
    %c0_i32 = arith.constant 0 : i32
    %c0_i32_0 = arith.constant 0 : i32
    %c0_i32_1 = arith.constant 0 : i32
    return %c0_i32, %c0_i32_0 : i32, i32
  }
  func.func @transform_19(%arg0: i32) -> (i32, i32) {
    %c0_i32 = arith.constant 0 : i32
    %c0_i32_0 = arith.constant 0 : i32
    %c0_i32_1 = arith.constant 0 : i32
    return %c0_i32, %c0_i32_0 : i32, i32
  }
  func.func @transform_20(%arg0: i32) -> (i32, i32) {
    %c0_i32 = arith.constant 0 : i32
    %c0_i32_0 = arith.constant 0 : i32
    %c0_i32_1 = arith.constant 0 : i32
    return %c0_i32, %c0_i32_0 : i32, i32
  }
  func.func @transform_21(%arg0: i32) -> (i32, i32) {
    %c0_i32 = arith.constant 0 : i32
    %c0_i32_0 = arith.constant 0 : i32
    %c0_i32_1 = arith.constant 0 : i32
    return %c0_i32, %c0_i32_0 : i32, i32
  }
  func.func @transform_22(%arg0: i32) -> (i32, i32) {
    %c0_i32 = arith.constant 0 : i32
    %c0_i32_0 = arith.constant 0 : i32
    %c0_i32_1 = arith.constant 0 : i32
    return %c0_i32, %c0_i32_0 : i32, i32
  }
  func.func @transform_23(%arg0: i32) -> (i32, i32) {
    %c0_i32 = arith.constant 0 : i32
    %c0_i32_0 = arith.constant 0 : i32
    %c0_i32_1 = arith.constant 0 : i32
    return %c0_i32, %c0_i32_0 : i32, i32
  }
  func.func @transform_24(%arg0: i32) -> (i32, i32, i32) {
    %c0_i32 = arith.constant 0 : i32
    %c0_i32_0 = arith.constant 0 : i32
    %c0_i32_1 = arith.constant 0 : i32
    return %arg0, %c0_i32, %c0_i32_0 : i32, i32, i32
  }
}

</mosaic_0001>

<bundles_post_ra>
// kernel: forward.7
= control target key start
LH: loop header
LB: loop body
LE: loop exit
PB: predicated region body
PF: predicated region fallthrough
CT: control target
= control target key end

     0   :  { %s676_s12 = smov 0   ;;  %s741_s0 = inlined_call_operand.vmem [shape: bf16[128,128], index: 0, kind: input, shape index: {}]   ;;  %s742_s1 = inlined_call_operand.vmem [shape: bf16[128,64], index: 1, kind: input, shape index: {}]   ;;  %s743_s2 = inlined_call_operand.vmem [shape: f32[1,64], index: 2, kind: input, shape index: {}]   ;;  %s744_s3 = inlined_call_operand.vmem [shape: bf16[128,64], index: 3, kind: output, shape index: {}]  }
   0x1 LB: > { %s496_s13 = sadd.s32 4294967295, %s654_s12   ;;  %p500_p0 = scmp.ge.s32.totalorder %s654_s12, 1  ;;  %s654_s12 = sphi %s676_s12, %s13_s12  }
   0x2   : > { %p138_p1 = scmp.lt.s32.totalorder %s654_s12, 3 }
   0x4   : > { %p139_p2 = pnand %p500_p0, %p138_p1 }
   0x5   : > { %s501_s16 = sshll.u32 (!%p139_p2), %s496_s13, 3 }
   0x6   : > { %142 = sbr.rel (%p139_p2) target bundleno = 283 (0x11b), region = 32  ;;  %p163_p3 = scmp.lt.s32.totalorder (!%p139_p2), %s501_s16, 15 }
   0xb   : > { %v604_v0 = vld [vmem:[%s742_s1 + $0x38] sm:$0xff]   ;;  %v605_v1 = vld [vmem:[%s742_s1 + $0x30] sm:$0xff]   ;;  %s746_s16 = smov (!%p163_p3, %s501_s16), 15  ;;  %v606_v2 = vld [vmem:[%s742_s1 + $0x28] sm:$0xff]   ;;  %vm431_vm0 = vcmask 519168  }
   0xc   : > { %556 = vmatprep.subr.bf16.mxu0 %v604_v0  ;;  %580 = vmatprep.subr.bf16.mxu1 %v604_v0  ;;  %s502_s21 = sshll.u32 %s746_s16, 2  ;;  %v607_v3 = vld [vmem:[%s742_s1 + $0x20] sm:$0xff]   ;;  %v608_v6 = vld [vmem:[%s742_s1 + $0x18] sm:$0xff]   ;;  %v609_v7 = vld [vmem:[%s742_s1 + $0x10] sm:$0xff]  }
   0xd   : > { %557 = vmatpush3.bf16.msra.mxu0 %v604_v0  ;;  %588 = vmatpush3.bf16.msra.mxu1 %v604_v0  ;;  %s701_s24 = scalar_lea.vmem %s741_s0, %s502_s21  ;;  %v610_v8 = vld [vmem:[%s742_s1 + $0x8] sm:$0xff]   ;;  %v611_v9 = vld [vmem:[%s742_s1] sm:$0xff]   ;;  %s172_s13 = scalar_lea.vmem %s744_s3, %s502_s21 }
   0xe   : > { %558 = vmatprep.subr.bf16.mxu0 %v605_v1  ;;  %581 = vmatprep.subr.bf16.mxu1 %v605_v1  ;;  %v612_v4 = vld [vmem:[%s701_s24] sm:$0xff]   ;;  %v613_v5 = vld [vmem:[%s701_s24 + $0x10] sm:$0xff]   ;;  %v614_v10 = vld [vmem:[%s701_s24 + $0x8] sm:$0xff]  }
   0xf   : > { %572 = vmatprep.mubr.bf16.mxu0 %v612_v4  ;;  %576 = vmatprep.mubr.bf16.mxu1 %v613_v5  ;;  %v615_v11 = vld [vmem:[%s701_s24 + $0x18] sm:$0xff]   ;;  %v505_v12 = vld [vmem:[%s743_s2] ss:$0 sm:$0xff] }
  0x11   : > { %559 = vmatpush3.bf16.msra.mxu0 %v605_v1  ;;  %589 = vmatpush3.bf16.msra.mxu1 %v605_v1 }
  0x12   : > { %560 = vmatprep.subr.bf16.mxu0 %v606_v2  ;;  %582 = vmatprep.subr.bf16.mxu1 %v606_v2 }
  0x15   : > { %561 = vmatpush3.bf16.msra.mxu0 %v606_v2  ;;  %590 = vmatpush3.bf16.msra.mxu1 %v606_v2 }
  0x16   : > { %562 = vmatprep.subr.bf16.mxu0 %v607_v3  ;;  %583 = vmatprep.subr.bf16.mxu1 %v607_v3 }
  0x19   : > { %563 = vmatpush3.bf16.msra.mxu0 %v607_v3  ;;  %591 = vmatpush3.bf16.msra.mxu1 %v607_v3 }
  0x1a   : > { %564 = vmatprep.subr.bf16.mxu0 %v608_v6  ;;  %584 = vmatprep.subr.bf16.mxu1 %v608_v6 }
  0x1d   : > { %565 = vmatpush3.bf16.msra.mxu0 %v608_v6  ;;  %592 = vmatpush3.bf16.msra.mxu1 %v608_v6 }
  0x1e   : > { %566 = vmatprep.subr.bf16.mxu0 %v609_v7  ;;  %585 = vmatprep.subr.bf16.mxu1 %v609_v7 }
  0x21   : > { %567 = vmatpush3.bf16.msra.mxu0 %v609_v7  ;;  %593 = vmatpush3.bf16.msra.mxu1 %v609_v7 }
  0x22   : > { %568 = vmatprep.subr.bf16.mxu0 %v610_v8  ;;  %586 = vmatprep.subr.bf16.mxu1 %v610_v8 }
  0x25   : > { %569 = vmatpush3.bf16.msra.mxu0 %v610_v8  ;;  %594 = vmatpush3.bf16.msra.mxu1 %v610_v8 }
  0x26   : > { %570 = vmatprep.subr.bf16.mxu0 %v611_v9  ;;  %587 = vmatprep.subr.bf16.mxu1 %v611_v9 }
  0x29   : > { %571 = vmatpush3.bf16.msra.mxu0 %v611_v9  ;;  %595 = vmatpush3.bf16.msra.mxu1 %v611_v9 }
  0x2c   : > { %573 = vmatmul.mubr.bf16.vlgmr.msra.gmra.mxu0 %v614_v10  ;;  %577 = vmatmul.mubr.bf16.vlgmr.msra.gmra.mxu1 %v615_v11 }
  0xec   : > { %v574_v13 = vpop.f32.mrf.mxu0  ;;  %v578_v14 = vpop.f32.mrf.mxu1 }
  0xed   : > { %v321_v15 = vadd.f32 %v574_v13, %v505_v12  ;;  %v337_v16 = vadd.f32 %v578_v14, %v505_v12 }
  0xee   : > { %v312_v17 = vpop.f32.mrf.mxu0  ;;  %v328_v18 = vpop.f32.mrf.mxu1 }
  0xef   : > { %v520_v19 = vmul.f32 -1.442695, %v321_v15  ;;  %v524_v20 = vmul.f32 -1.442695, %v337_v16  ;;  %v313_v21 = vadd.f32 %v505_v12, %v312_v17  ;;  %v329_v22 = vadd.f32 %v505_v12, %v328_v18 }
  0xf0   : > { %v575_v23 = vpop.f32.mrf.mxu0  ;;  %v579_v24 = vpop.f32.mrf.mxu1 }
  0xf1   : > { %616 = vpow2.f32 %v520_v19  ;;  %v518_v25 = vmul.f32 -1.442695, %v313_v21  ;;  %v522_v26 = vmul.f32 -1.442695, %v329_v22  ;;  %v324_v27 = vadd.f32 %v575_v23, %v505_v12 }
  0xf2   : > { %618 = vpow2.f32 %v524_v20  ;;  %v340_v28 = vadd.f32 %v579_v24, %v505_v12  ;;  %v315_v29 = vpop.f32.mrf.mxu0  ;;  %v331_v30 = vpop.f32.mrf.mxu1 }
  0xf3   : > { %620 = vpow2.f32 %v518_v25  ;;  %v521_v31 = vmul.f32 -1.442695, %v324_v27  ;;  %v316_v32 = vadd.f32 %v505_v12, %v315_v29  ;;  %v332_v33 = vadd.f32 %v505_v12, %v331_v30 }
  0xf4   : > { %622 = vpow2.f32 %v522_v26  ;;  %v525_v34 = vmul.f32 -1.442695, %v340_v28 }
  0xf5   : > { %624 = vpow2.f32 %v521_v31  ;;  %v519_v35 = vmul.f32 -1.442695, %v316_v32  ;;  %v523_v36 = vmul.f32 -1.442695, %v332_v33 }
  0xf6   : > { %626 = vpow2.f32 %v525_v34 }
  0xf7   : > { %628 = vpow2.f32 %v519_v35 }
  0xf8   : > { %630 = vpow2.f32 %v523_v36 }
  0xfe   : > { %v617_v37 = vpop.eup %616 }
  0xff   : > { %v619_v38 = vpop.eup %618  ;;  %v369_v39 = vadd.f32 1.0, %v617_v37 }
 0x100   : > { %v621_v40 = vpop.eup %620  ;;  %v373_v41 = vadd.f32 1.0, %v619_v38 }
 0x101   : > { %v623_v42 = vpop.eup %622  ;;  %632 = vrcp.f32 %v369_v39  ;;  %v367_v43 = vadd.f32 1.0, %v621_v40 }
 0x102   : > { %v625_v44 = vpop.eup %624  ;;  %634 = vrcp.f32 %v373_v41  ;;  %v371_v45 = vadd.f32 1.0, %v623_v42 }
 0x103   : > { %v627_v46 = vpop.eup %626  ;;  %636 = vrcp.f32 %v367_v43  ;;  %v370_v47 = vadd.f32 1.0, %v625_v44 }
 0x104   : > { %v629_v48 = vpop.eup %628  ;;  %638 = vrcp.f32 %v371_v45  ;;  %v374_v49 = vadd.f32 1.0, %v627_v46 }
 0x105   : > { %v631_v50 = vpop.eup %630  ;;  %640 = vrcp.f32 %v370_v47  ;;  %v368_v51 = vadd.f32 1.0, %v629_v48 }
 0x106   : > { %642 = vrcp.f32 %v374_v49  ;;  %v372_v52 = vadd.f32 1.0, %v631_v50 }
 0x107   : > { %644 = vrcp.f32 %v368_v51 }
 0x108   : > { %646 = vrcp.f32 %v372_v52 }
 0x10e   : > { %v633_v53 = vpop.eup %632 }
 0x10f   : > { %v635_v54 = vpop.eup %634  ;;  %v393_v55 = vmul.f32 %v633_v53, %v321_v15 }
 0x110   : > { %v637_v56 = vpop.eup %636  ;;  %v397_v57 = vmul.f32 %v635_v54, %v337_v16 }
 0x111   : > { %v639_v58 = vpop.eup %638  ;;  %v538_v59 = vpack.c.bf16 %v393_v55, %v393_v55  ;;  %v391_v60 = vmul.f32 %v637_v56, %v313_v21 }
 0x112   : > { %v641_v61 = vpop.eup %640  ;;  %v542_v62 = vpack.c.bf16 %v397_v57, %v397_v57  ;;  %v395_v63 = vmul.f32 %v639_v58, %v329_v22 }
 0x113   : > { %v643_v0 = vpop.eup %642  ;;  %434 = vst.msk [vmem:[%s172_s13 + $0x8] sm:$0xf] %vm431_vm0, %v538_v59  ;;  %v536_v1 = vpack.c.bf16 %v391_v60, %v391_v60  ;;  %v394_v2 = vmul.f32 %v641_v61, %v324_v27 }
 0x114   : > { %v645_v3 = vpop.eup %644  ;;  %438 = vst.msk [vmem:[%s172_s13 + $0x18] sm:$0xf] %vm431_vm0, %v542_v62  ;;  %v540_v4 = vpack.c.bf16 %v395_v63, %v395_v63  ;;  %v398_v5 = vmul.f32 %v643_v0, %v340_v28 }
 0x115   : > { %v647_v6 = vpop.eup %646  ;;  %432 = vst.msk [vmem:[%s172_s13] sm:$0xf] %vm431_vm0, %v536_v1  ;;  %v539_v7 = vpack.c.bf16 %v394_v2, %v394_v2  ;;  %v392_v8 = vmul.f32 %v645_v3, %v316_v32 }
 0x116   : > { %436 = vst.msk [vmem:[%s172_s13 + $0x10] sm:$0xf] %vm431_vm0, %v540_v4  ;;  %v543_v9 = vpack.c.bf16 %v398_v5, %v398_v5  ;;  %v396_v10 = vmul.f32 %v647_v6, %v332_v33 }
 0x117   : > { %435 = vst.msk [vmem:[%s172_s13 + $0xc] sm:$0xf] %vm431_vm0, %v539_v7  ;;  %v537_v11 = vpack.c.bf16 %v392_v8, %v392_v8 }
 0x118   : > { %439 = vst.msk [vmem:[%s172_s13 + $0x1c] sm:$0xf] %vm431_vm0, %v543_v9  ;;  %v541_v12 = vpack.c.bf16 %v396_v10, %v396_v10 }
 0x119   : > { %433 = vst.msk [vmem:[%s172_s13 + $0x4] sm:$0xf] %vm431_vm0, %v537_v11 }
 0x11a   : > { %437 = vst.msk [vmem:[%s172_s13 + $0x14] sm:$0xf] %vm431_vm0, %v541_v12 }
 0x11b PF: > { %s13_s12 = sadd.s32 1, %s654_s12  }
 0x11c   : > { %p10_p4 = scmp.ge.s32.totalorder %s13_s12, 4  }
 0x11e   :  { %12 = sbr.rel (!%p10_p4) target bundleno = 1 (0x1), region = 62 }

// kernel: forward.6
= control target key start
LH: loop header
LB: loop body
LE: loop exit
PB: predicated region body
PF: predicated region fallthrough
CT: control target
= control target key end

     0   :  { %s1333_s12 = smov 0   ;;  %s1625_s0 = inlined_call_operand.vmem [shape: bf16[512,12], index: 0, kind: input, shape index: {}]   ;;  %s1626_s1 = inlined_call_operand.vmem [shape: bf16[12,32], index: 1, kind: input, shape index: {}]   ;;  %s1627_s2 = inlined_call_operand.vmem [shape: f32[1,32], index: 2, kind: input, shape index: {}]   ;;  %s1628_s3 = inlined_call_operand.vmem [shape: bf16[512,32], index: 3, kind: output, shape index: {}]  }
   0x1 LB: > { %s956_s13 = sadd.s32 4294967295, %s1311_s12   ;;  %p960_p0 = scmp.ge.s32.totalorder %s1311_s12, 1  ;;  %s1311_s12 = sphi %s1333_s12, %s13_s12  }
   0x2   : > { %p138_p1 = scmp.lt.s32.totalorder %s1311_s12, 3 }
   0x4   : > { %p139_p2 = pnand %p960_p0, %p138_p1 }
   0x5   : > { %s961_s16 = sshll.u32 (!%p139_p2), %s956_s13, 5 }
   0x6   : > { %142 = sbr.rel (%p139_p2) target bundleno = 295 (0x127), region = 32  ;;  %p163_p3 = scmp.lt.s32.totalorder (!%p139_p2), %s961_s16, 63 }
   0xb   : > { %v1160_v0 = vld [vmem:[%s1626_s1] sm:$0x3f]   ;;  %vm350_vm0 = vcmask 1045504   ;;  %s1630_s16 = smov (!%p163_p3, %s961_s16), 63  ;;  %vm301_vm1 = vcmask 97280   ;;  %vm867_vm2 = vcmask 257024  }
   0xc   : > { %1150 = vmatprep.subr.msk.bf16.mxu0 %vm350_vm0, %v1160_v0  ;;  %1151 = vmatprep.subr.msk.bf16.mxu1 %vm350_vm0, %v1160_v0  ;;  %v352_v1 = vsel %vm350_vm0, %v1160_v0, 0  ;;  %s962_s17 = sshll.u32 %s1630_s16, 2  ;;  %v1389_v18 = vld [vmem:[%s1627_s2] ss:$0 sm:$0xff] }
   0xd   : > { %1115 = vmatpush3.bf16.msra.mxu0 %v352_v1  ;;  %1149 = vmatpush3.bf16.msra.mxu1 %v352_v1  ;;  %s1352_s20 = scalar_lea.vmem %s1625_s0, %s962_s17  ;;  %s1501_s25 = scalar_lea.vmem %s1628_s3, %s962_s17 }
   0xe   : > { %v1161_v2 = vld [vmem:[%s1352_s20] sm:$0xff]   ;;  %v1163_v4 = vld [vmem:[%s1352_s20 + $0x8] sm:$0xff]   ;;  %v1165_v6 = vld [vmem:[%s1352_s20 + $0x10] sm:$0xff]  }
   0xf   : > { %v1162_v3 = vld [vmem:[%s1352_s20 + $0x40] sm:$0xff]   ;;  %1116 = vmatprep.mubr.msk.bf16.mxu0 %vm301_vm1, %v1161_v2  ;;  %v1164_v5 = vld [vmem:[%s1352_s20 + $0x48] sm:$0xff]   ;;  %v1166_v7 = vld [vmem:[%s1352_s20 + $0x50] sm:$0xff]  }
  0x10   : > { %1132 = vmatprep.mubr.msk.bf16.mxu1 %vm301_vm1, %v1162_v3  ;;  %1117 = vmatmul.mubr.msk.bf16.vlgmr.msra.gmra.mxu0 %vm301_vm1, %v1163_v4  ;;  %v1167_v8 = vld [vmem:[%s1352_s20 + $0x18] sm:$0xff]   ;;  %v1169_v10 = vld [vmem:[%s1352_s20 + $0x20] sm:$0xff]   ;;  %v1171_v12 = vld [vmem:[%s1352_s20 + $0x28] sm:$0xff]  }
  0x11   : > { %1133 = vmatmul.mubr.msk.bf16.vlgmr.msra.gmra.mxu1 %vm301_vm1, %v1164_v5  ;;  %1120 = vmatprep.mubr.msk.bf16.mxu0 %vm301_vm1, %v1165_v6  ;;  %v1168_v9 = vld [vmem:[%s1352_s20 + $0x58] sm:$0xff]   ;;  %v1170_v11 = vld [vmem:[%s1352_s20 + $0x60] sm:$0xff]   ;;  %v1172_v13 = vld [vmem:[%s1352_s20 + $0x68] sm:$0xff]  }
  0x12   : > { %1136 = vmatprep.mubr.msk.bf16.mxu1 %vm301_vm1, %v1166_v7  ;;  %v1173_v14 = vld [vmem:[%s1352_s20 + $0x30] sm:$0xff]   ;;  %v1175_v16 = vld [vmem:[%s1352_s20 + $0x38] sm:$0xff]  }
  0x13   : > { %v1174_v15 = vld [vmem:[%s1352_s20 + $0x70] sm:$0xff]   ;;  %v1176_v17 = vld [vmem:[%s1352_s20 + $0x78] sm:$0xff]  }
  0x18   : > { %1121 = vmatmul.mubr.msk.bf16.gmra.mxu0 %vm301_vm1, %v1167_v8 }
  0x19   : > { %1137 = vmatmul.mubr.msk.bf16.gmra.mxu1 %vm301_vm1, %v1168_v9  ;;  %1124 = vmatprep.mubr.msk.bf16.mxu0 %vm301_vm1, %v1169_v10 }
  0x1a   : > { %1140 = vmatprep.mubr.msk.bf16.mxu1 %vm301_vm1, %v1170_v11 }
  0x20   : > { %1125 = vmatmul.mubr.msk.bf16.gmra.mxu0 %vm301_vm1, %v1171_v12 }
  0x21   : > { %1141 = vmatmul.mubr.msk.bf16.gmra.mxu1 %vm301_vm1, %v1172_v13  ;;  %1128 = vmatprep.mubr.msk.bf16.mxu0 %vm301_vm1, %v1173_v14 }
  0x22   : > { %1144 = vmatprep.mubr.msk.bf16.mxu1 %vm301_vm1, %v1174_v15 }
  0x28   : > { %1129 = vmatmul.mubr.msk.bf16.gmra.mxu0 %vm301_vm1, %v1175_v16 }
  0x29   : > { %1145 = vmatmul.mubr.msk.bf16.gmra.mxu1 %vm301_vm1, %v1176_v17 }
  0xd0   : > { %v1118_v19 = vpop.f32.mrf.mxu0 }
  0xd1   : > { %v1392_v20 = vadd.f32 %v1118_v19, %v1389_v18  ;;  %v1134_v21 = vpop.f32.mrf.mxu1 }
  0xd2   : > { %v1395_v22 = vadd.f32 %v1134_v21, %v1389_v18  ;;  %v388_v23 = vpop.f32.mrf.mxu0 }
  0xd3   : > { %v1001_v24 = vmul.f32 -1.442695, %v1392_v20  ;;  %v1399_v25 = vadd.f32 %v1389_v18, %v388_v23  ;;  %v452_v26 = vpop.f32.mrf.mxu1 }
  0xd4   : > { %v1017_v27 = vmul.f32 -1.442695, %v1395_v22  ;;  %v1403_v28 = vadd.f32 %v1389_v18, %v452_v26  ;;  %v1119_v29 = vpop.f32.mrf.mxu0 }
  0xd5   : > { %1177 = vpow2.f32 %v1001_v24  ;;  %v999_v30 = vmul.f32 -1.442695, %v1399_v25  ;;  %v1407_v31 = vadd.f32 %v1119_v29, %v1389_v18  ;;  %v1135_v32 = vpop.f32.mrf.mxu1 }
  0xd6   : > { %1179 = vpow2.f32 %v1017_v27  ;;  %v1015_v33 = vmul.f32 -1.442695, %v1403_v28  ;;  %v1411_v34 = vadd.f32 %v1135_v32, %v1389_v18  ;;  %v391_v35 = vpop.f32.mrf.mxu0 }
  0xd7   : > { %1181 = vpow2.f32 %v999_v30  ;;  %v1002_v36 = vmul.f32 -1.442695, %v1407_v31  ;;  %v1415_v37 = vadd.f32 %v1389_v18, %v391_v35  ;;  %v455_v38 = vpop.f32.mrf.mxu1 }
  0xd8   : > { %1183 = vpow2.f32 %v1015_v33  ;;  %v1018_v39 = vmul.f32 -1.442695, %v1411_v34  ;;  %v1419_v40 = vadd.f32 %v1389_v18, %v455_v38  ;;  %v1122_v41 = vpop.f32.mrf.mxu0 }
  0xd9   : > { %1185 = vpow2.f32 %v1002_v36  ;;  %v1000_v42 = vmul.f32 -1.442695, %v1415_v37  ;;  %v1423_v43 = vadd.f32 %v1122_v41, %v1389_v18  ;;  %v1138_v44 = vpop.f32.mrf.mxu1 }
  0xda   : > { %1187 = vpow2.f32 %v1018_v39  ;;  %v1016_v45 = vmul.f32 -1.442695, %v1419_v40  ;;  %v1427_v46 = vadd.f32 %v1138_v44, %v1389_v18  ;;  %v404_v47 = vpop.f32.mrf.mxu0 }
  0xdb   : > { %1189 = vpow2.f32 %v1000_v42  ;;  %v1005_v48 = vmul.f32 -1.442695, %v1423_v43  ;;  %v1431_v49 = vadd.f32 %v1389_v18, %v404_v47  ;;  %v468_v50 = vpop.f32.mrf.mxu1 }
  0xdc   : > { %1191 = vpow2.f32 %v1016_v45  ;;  %v1021_v51 = vmul.f32 -1.442695, %v1427_v46  ;;  %v1435_v52 = vadd.f32 %v1389_v18, %v468_v50  ;;  %v1123_v53 = vpop.f32.mrf.mxu0 }
  0xdd   : > { %1193 = vpow2.f32 %v1005_v48  ;;  %v1003_v54 = vmul.f32 -1.442695, %v1431_v49  ;;  %v1439_v55 = vadd.f32 %v1123_v53, %v1389_v18  ;;  %v1139_v56 = vpop.f32.mrf.mxu1 }
  0xde   : > { %1195 = vpow2.f32 %v1021_v51  ;;  %v1019_v57 = vmul.f32 -1.442695, %v1435_v52  ;;  %v1443_v58 = vadd.f32 %v1139_v56, %v1389_v18  ;;  %v407_v59 = vpop.f32.mrf.mxu0 }
  0xdf   : > { %1197 = vpow2.f32 %v1003_v54  ;;  %v1006_v60 = vmul.f32 -1.442695, %v1439_v55  ;;  %v1447_v61 = vadd.f32 %v1389_v18, %v407_v59  ;;  %v471_v62 = vpop.f32.mrf.mxu1 }
  0xe0   : > { %1199 = vpow2.f32 %v1019_v57  ;;  %v1022_v63 = vmul.f32 -1.442695, %v1443_v58  ;;  %v1451_v0 = vadd.f32 %v1389_v18, %v471_v62  ;;  %v1126_v1 = vpop.f32.mrf.mxu0 }
  0xe1   : > { %1201 = vpow2.f32 %v1006_v60  ;;  %v1004_v2 = vmul.f32 -1.442695, %v1447_v61  ;;  %v1142_v3 = vpop.f32.mrf.mxu1  ;;  %v1456_v26 = vadd.f32 %v1126_v1, %v1389_v18 }
  0xe2   : > { %v1178_v4 = vpop.eup %1177  ;;  %1203 = vpow2.f32 %v1022_v63  ;;  %v1020_v5 = vmul.f32 -1.442695, %v1451_v0  ;;  %v420_v6 = vpop.f32.mrf.mxu0  ;;  %v1459_v36 = vadd.f32 %v1142_v3, %v1389_v18 }
  0xe3   : > { %v1180_v7 = vpop.eup %1179  ;;  %v613_v8 = vadd.f32 1.0, %v1178_v4  ;;  %1205 = vpow2.f32 %v1004_v2  ;;  %v484_v9 = vpop.f32.mrf.mxu1  ;;  %v1462_v41 = vadd.f32 %v1389_v18, %v420_v6  ;;  %v1009_v45 = vmul.f32 -1.442695, %v1456_v26 }
  0xe4   : > { %v1182_v10 = vpop.eup %1181  ;;  %v629_v11 = vadd.f32 1.0, %v1180_v7  ;;  %1207 = vpow2.f32 %v1020_v5  ;;  %v1127_v12 = vpop.f32.mrf.mxu0  ;;  %v1466_v51 = vadd.f32 %v1389_v18, %v484_v9  ;;  %v1025_v59 = vmul.f32 -1.442695, %v1459_v36 }
  0xe5   : > { %v1184_v13 = vpop.eup %1183  ;;  %1209 = vrcp.f32 %v613_v8  ;;  %v611_v14 = vadd.f32 1.0, %v1182_v10  ;;  %v1143_v15 = vpop.f32.mrf.mxu1  ;;  %v1469_v53 = vadd.f32 %v1127_v12, %v1389_v18  ;;  %v1007_v1 = vmul.f32 -1.442695, %v1462_v41 }
  0xe6   : > { %v1186_v16 = vpop.eup %1185  ;;  %1211 = vrcp.f32 %v629_v11  ;;  %v627_v17 = vadd.f32 1.0, %v1184_v13  ;;  %v423_v27 = vpop.f32.mrf.mxu0  ;;  %v1473_v60 = vadd.f32 %v1143_v15, %v1389_v18  ;;  %v1023_v10 = vmul.f32 -1.442695, %v1466_v51 }
  0xe7   : > { %v1188_v19 = vpop.eup %1187  ;;  %1213 = vrcp.f32 %v611_v14  ;;  %v614_v21 = vadd.f32 1.0, %v1186_v16  ;;  %v487_v32 = vpop.f32.mrf.mxu1  ;;  %v1477_v2 = vadd.f32 %v1389_v18, %v423_v27  ;;  %v1010_v11 = vmul.f32 -1.442695, %v1469_v53 }
  0xe8   : > { %v1190_v23 = vpop.eup %1189  ;;  %1215 = vrcp.f32 %v627_v17  ;;  %v630_v24 = vadd.f32 1.0, %v1188_v19  ;;  %v1130_v47 = vpop.f32.mrf.mxu0  ;;  %v1480_v5 = vadd.f32 %v1389_v18, %v487_v32  ;;  %v1026_v15 = vmul.f32 -1.442695, %v1473_v60 }
  0xe9   : > { %v1192_v29 = vpop.eup %1191  ;;  %1217 = vrcp.f32 %v614_v21  ;;  %v612_v30 = vadd.f32 1.0, %v1190_v23  ;;  %v1146_v54 = vpop.f32.mrf.mxu1  ;;  %v1483_v6 = vadd.f32 %v1130_v47, %v1389_v18  ;;  %v1008_v21 = vmul.f32 -1.442695, %v1477_v2 }
  0xea   : > { %v1194_v33 = vpop.eup %1193  ;;  %1219 = vrcp.f32 %v630_v24  ;;  %v628_v35 = vadd.f32 1.0, %v1192_v29  ;;  %v436_v7 = vpop.f32.mrf.mxu0  ;;  %v1489_v16 = vadd.f32 %v1146_v54, %v1389_v18  ;;  %v1024_v29 = vmul.f32 -1.442695, %v1480_v5 }
  0xeb   : > { %v1196_v38 = vpop.eup %1195  ;;  %1221 = vrcp.f32 %v612_v30  ;;  %v617_v39 = vadd.f32 1.0, %v1194_v33  ;;  %v500_v12 = vpop.f32.mrf.mxu1  ;;  %v1494_v23 = vadd.f32 %v1389_v18, %v436_v7 }
  0xec   : > { %v1198_v42 = vpop.eup %1197  ;;  %1223 = vrcp.f32 %v628_v35  ;;  %v633_v44 = vadd.f32 1.0, %v1196_v38  ;;  %v1131_v30 = vpop.f32.mrf.mxu0  ;;  %v1508_v38 = vadd.f32 %v1389_v18, %v500_v12  ;;  %v1029_v47 = vmul.f32 -1.442695, %v1489_v16 }
  0xed   : > { %v1200_v48 = vpop.eup %1199  ;;  %1225 = vrcp.f32 %v617_v39  ;;  %v615_v50 = vadd.f32 1.0, %v1198_v42  ;;  %v1147_v39 = vpop.f32.mrf.mxu1 }
  0xee   : > { %v1202_v56 = vpop.eup %1201  ;;  %1227 = vrcp.f32 %v633_v44  ;;  %v631_v57 = vadd.f32 1.0, %v1200_v48 }
  0xef   : > { %v1204_v62 = vpop.eup %1203  ;;  %1229 = vrcp.f32 %v615_v50  ;;  %v618_v63 = vadd.f32 1.0, %v1202_v56 }
  0xf0   : > { %v1206_v3 = vpop.eup %1205  ;;  %1231 = vrcp.f32 %v631_v57  ;;  %v634_v4 = vadd.f32 1.0, %v1204_v62  ;;  %v1520_v57 = vadd.f32 %v1131_v30, %v1389_v18 }
  0xf1   : > { %v1208_v8 = vpop.eup %1207  ;;  %1233 = vrcp.f32 %v618_v63  ;;  %v616_v9 = vadd.f32 1.0, %v1206_v3  ;;  %v503_v3 = vpop.f32.mrf.mxu1 }
  0xf2   : > { %v1210_v13 = vpop.eup %1209  ;;  %1235 = vrcp.f32 %v634_v4  ;;  %v632_v14 = vadd.f32 1.0, %v1208_v8  ;;  %v1530_v8 = vadd.f32 %v1147_v39, %v1389_v18 }
  0xf3   : > { %v1212_v17 = vpop.eup %1211  ;;  %v709_v19 = vmul.f32 %v1210_v13, %v1392_v20  ;;  %1237 = vrcp.f32 %v616_v9  ;;  %v1013_v20 = vmul.f32 -1.442695, %v1483_v6 }
  0xf4   : > { %v1214_v24 = vpop.eup %1213  ;;  %v725_v27 = vmul.f32 %v1212_v17, %v1395_v22  ;;  %1239 = vrcp.f32 %v632_v14  ;;  %v1542_v14 = vadd.f32 %v1389_v18, %v503_v3 }
  0xf5   : > { %v1216_v32 = vpop.eup %1215  ;;  %v1067_v33 = vpack.c.bf16 %v709_v19, %v709_v19  ;;  %v707_v35 = vmul.f32 %v1214_v24, %v1399_v25  ;;  %1241 = vpow2.f32 %v1009_v45  ;;  %v1011_v45 = vmul.f32 -1.442695, %v1494_v23 }
  0xf6   : > { %v1218_v42 = vpop.eup %1217  ;;  %v1083_v44 = vpack.c.bf16 %v725_v27, %v725_v27  ;;  %v723_v22 = vmul.f32 %v1216_v32, %v1403_v28  ;;  %1243 = vpow2.f32 %v1025_v59  ;;  %v439_v59 = vpop.f32.mrf.mxu0  ;;  %v1014_v19 = vmul.f32 -1.442695, %v1520_v57 }
  0xf7   : > { %v1220_v48 = vpop.eup %1219  ;;  %870 = vst.msk [vmem:[%s1501_s25 + $0x8] sm:$0xf] %vm867_vm2, %v1067_v33  ;;  %v1065_v50 = vpack.c.bf16 %v707_v35, %v707_v35  ;;  %v710_v25 = vmul.f32 %v1218_v42, %v1407_v31  ;;  %1245 = vpow2.f32 %v1007_v1  ;;  %v1027_v1 = vmul.f32 -1.442695, %v1508_v38 }
  0xf8   : > { %v1222_v54 = vpop.eup %1221  ;;  %886 = vst.msk [vmem:[%s1501_s25 + $0x48] sm:$0xf] %vm867_vm2, %v1083_v44  ;;  %v1081_v56 = vpack.c.bf16 %v723_v22, %v723_v22  ;;  %v726_v28 = vmul.f32 %v1220_v48, %v1411_v34  ;;  %1247 = vpow2.f32 %v1023_v10  ;;  %v1028_v33 = vmul.f32 -1.442695, %v1542_v14 }
  0xf9   : > { %v1224_v62 = vpop.eup %1223  ;;  %868 = vst.msk [vmem:[%s1501_s25] sm:$0xf] %vm867_vm2, %v1065_v50  ;;  %v1068_v31 = vpack.c.bf16 %v710_v25, %v710_v25  ;;  %v708_v63 = vmul.f32 %v1222_v54, %v1415_v37  ;;  %1249 = vpow2.f32 %v1010_v11  ;;  %v1536_v11 = vadd.f32 %v1389_v18, %v439_v59 }
  0xfa   : > { %v1226_v4 = vpop.eup %1225  ;;  %884 = vst.msk [vmem:[%s1501_s25 + $0x40] sm:$0xf] %vm867_vm2, %v1081_v56  ;;  %v1084_v34 = vpack.c.bf16 %v726_v28, %v726_v28  ;;  %v724_v7 = vmul.f32 %v1224_v62, %v1419_v40  ;;  %1251 = vpow2.f32 %v1026_v15  ;;  %v1030_v18 = vmul.f32 -1.442695, %v1530_v8 }
  0xfb   : > { %v1228_v9 = vpop.eup %1227  ;;  %871 = vst.msk [vmem:[%s1501_s25 + $0xc] sm:$0xf] %vm867_vm2, %v1068_v31  ;;  %v1066_v37 = vpack.c.bf16 %v708_v63, %v708_v63  ;;  %v713_v10 = vmul.f32 %v1226_v4, %v1423_v43  ;;  %1253 = vpow2.f32 %v1008_v21 }
  0xfc   : > { %v1230_v12 = vpop.eup %1229  ;;  %887 = vst.msk [vmem:[%s1501_s25 + $0x4c] sm:$0xf] %vm867_vm2, %v1084_v34  ;;  %v1082_v40 = vpack.c.bf16 %v724_v7, %v724_v7  ;;  %v729_v13 = vmul.f32 %v1228_v9, %v1427_v46  ;;  %1255 = vpow2.f32 %v1024_v29 }
  0xfd   : > { %v1232_v15 = vpop.eup %1231  ;;  %869 = vst.msk [vmem:[%s1501_s25 + $0x4] sm:$0xf] %vm867_vm2, %v1066_v37  ;;  %v1071_v43 = vpack.c.bf16 %v713_v10, %v713_v10  ;;  %v711_v17 = vmul.f32 %v1230_v12, %v1431_v49  ;;  %1257 = vpow2.f32 %v1013_v20  ;;  %v1012_v20 = vmul.f32 -1.442695, %v1536_v11 }
  0xfe   : > { %v1234_v21 = vpop.eup %1233  ;;  %885 = vst.msk [vmem:[%s1501_s25 + $0x44] sm:$0xf] %vm867_vm2, %v1082_v40  ;;  %v1087_v24 = vpack.c.bf16 %v729_v13, %v729_v13  ;;  %v727_v46 = vmul.f32 %v1232_v15, %v1435_v52  ;;  %1259 = vpow2.f32 %v1029_v47 }
  0xff   : > { %v1236_v27 = vpop.eup %1235  ;;  %874 = vst.msk [vmem:[%s1501_s25 + $0x18] sm:$0xf] %vm867_vm2, %v1071_v43  ;;  %v1069_v29 = vpack.c.bf16 %v711_v17, %v711_v17  ;;  %v714_v49 = vmul.f32 %v1234_v21, %v1439_v55  ;;  %1261 = vpow2.f32 %v1011_v45 }
 0x100   : > { %v1238_v30 = vpop.eup %1237  ;;  %890 = vst.msk [vmem:[%s1501_s25 + $0x58] sm:$0xf] %vm867_vm2, %v1087_v24  ;;  %v1085_v32 = vpack.c.bf16 %v727_v46, %v727_v46  ;;  %v730_v52 = vmul.f32 %v1236_v27, %v1443_v58  ;;  %1263 = vpow2.f32 %v1027_v1 }
 0x101   : > { %v1240_v35 = vpop.eup %1239  ;;  %872 = vst.msk [vmem:[%s1501_s25 + $0x10] sm:$0xf] %vm867_vm2, %v1069_v29  ;;  %v1072_v39 = vpack.c.bf16 %v714_v49, %v714_v49  ;;  %v712_v55 = vmul.f32 %v1238_v30, %v1447_v61  ;;  %1265 = vpow2.f32 %v1014_v19 }
 0x102   : > { %v1242_v42 = vpop.eup %1241  ;;  %888 = vst.msk [vmem:[%s1501_s25 + $0x50] sm:$0xf] %vm867_vm2, %v1085_v32  ;;  %v1088_v44 = vpack.c.bf16 %v730_v52, %v730_v52  ;;  %v728_v22 = vmul.f32 %v1240_v35, %v1451_v0  ;;  %1267 = vpow2.f32 %v1030_v18 }
 0x103   : > { %v1244_v58 = vpop.eup %1243  ;;  %875 = vst.msk [vmem:[%s1501_s25 + $0x1c] sm:$0xf] %vm867_vm2, %v1072_v39  ;;  %v1070_v47 = vpack.c.bf16 %v712_v55, %v712_v55  ;;  %v621_v48 = vadd.f32 1.0, %v1242_v42  ;;  %1269 = vpow2.f32 %v1012_v20 }
 0x104   : > { %v1246_v50 = vpop.eup %1245  ;;  %891 = vst.msk [vmem:[%s1501_s25 + $0x5c] sm:$0xf] %vm867_vm2, %v1088_v44  ;;  %v1086_v61 = vpack.c.bf16 %v728_v22, %v728_v22  ;;  %v637_v25 = vadd.f32 1.0, %v1244_v58  ;;  %1271 = vpow2.f32 %v1028_v33 }
 0x105   : > { %v1248_v45 = vpop.eup %1247  ;;  %873 = vst.msk [vmem:[%s1501_s25 + $0x14] sm:$0xf] %vm867_vm2, %v1070_v47  ;;  %1273 = vrcp.f32 %v621_v48  ;;  %v619_v54 = vadd.f32 1.0, %v1246_v50 }
 0x106   : > { %v1250_v0 = vpop.eup %1249  ;;  %889 = vst.msk [vmem:[%s1501_s25 + $0x54] sm:$0xf] %vm867_vm2, %v1086_v61  ;;  %1275 = vrcp.f32 %v637_v25  ;;  %v635_v56 = vadd.f32 1.0, %v1248_v45 }
 0x107   : > { %v1252_v28 = vpop.eup %1251  ;;  %1277 = vrcp.f32 %v619_v54  ;;  %v622_v59 = vadd.f32 1.0, %v1250_v0 }
 0x108   : > { %v1254_v62 = vpop.eup %1253  ;;  %1279 = vrcp.f32 %v635_v56  ;;  %v638_v31 = vadd.f32 1.0, %v1252_v28 }
 0x109   : > { %v1256_v63 = vpop.eup %1255  ;;  %1281 = vrcp.f32 %v622_v59  ;;  %v620_v1 = vadd.f32 1.0, %v1254_v62 }
 0x10a   : > { %v1258_v3 = vpop.eup %1257  ;;  %1283 = vrcp.f32 %v638_v31  ;;  %v636_v4 = vadd.f32 1.0, %v1256_v63 }
 0x10b   : > { %v1260_v34 = vpop.eup %1259  ;;  %1285 = vrcp.f32 %v620_v1  ;;  %v625_v7 = vadd.f32 1.0, %v1258_v3 }
 0x10c   : > { %v1262_v9 = vpop.eup %1261  ;;  %1287 = vrcp.f32 %v636_v4  ;;  %v641_v37 = vadd.f32 1.0, %v1260_v34 }
 0x10d   : > { %v1264_v10 = vpop.eup %1263  ;;  %1289 = vrcp.f32 %v625_v7  ;;  %v623_v12 = vadd.f32 1.0, %v1262_v9 }
 0x10e   : > { %v1266_v40 = vpop.eup %1265  ;;  %1291 = vrcp.f32 %v641_v37  ;;  %v639_v13 = vadd.f32 1.0, %v1264_v10 }
 0x10f   : > { %v1268_v15 = vpop.eup %1267  ;;  %1293 = vrcp.f32 %v623_v12  ;;  %v626_v43 = vadd.f32 1.0, %v1266_v40 }
 0x110   : > { %v1270_v17 = vpop.eup %1269  ;;  %1295 = vrcp.f32 %v639_v13  ;;  %v642_v19 = vadd.f32 1.0, %v1268_v15 }
 0x111   : > { %v1272_v21 = vpop.eup %1271  ;;  %1297 = vrcp.f32 %v626_v43  ;;  %v624_v24 = vadd.f32 1.0, %v1270_v17 }
 0x112   : > { %v1274_v46 = vpop.eup %1273  ;;  %1299 = vrcp.f32 %v642_v19  ;;  %v640_v18 = vadd.f32 1.0, %v1272_v21 }
 0x113   : > { %v1276_v27 = vpop.eup %1275  ;;  %v717_v29 = vmul.f32 %v1274_v46, %v1456_v26  ;;  %1301 = vrcp.f32 %v624_v24 }
 0x114   : > { %v1278_v49 = vpop.eup %1277  ;;  %v733_v20 = vmul.f32 %v1276_v27, %v1459_v36  ;;  %1303 = vrcp.f32 %v640_v18 }
 0x115   : > { %v1280_v30 = vpop.eup %1279  ;;  %v1075_v32 = vpack.c.bf16 %v717_v29, %v717_v29  ;;  %v715_v52 = vmul.f32 %v1278_v49, %v1462_v41 }
 0x116   : > { %v1282_v33 = vpop.eup %1281  ;;  %v1091_v35 = vpack.c.bf16 %v733_v20, %v733_v20  ;;  %v731_v39 = vmul.f32 %v1280_v30, %v1466_v51 }
 0x117   : > { %v1284_v55 = vpop.eup %1283  ;;  %878 = vst.msk [vmem:[%s1501_s25 + $0x28] sm:$0xf] %vm867_vm2, %v1075_v32  ;;  %v1073_v26 = vpack.c.bf16 %v715_v52, %v715_v52  ;;  %v718_v42 = vmul.f32 %v1282_v33, %v1469_v53 }
 0x118   : > { %v1286_v44 = vpop.eup %1285  ;;  %894 = vst.msk [vmem:[%s1501_s25 + $0x68] sm:$0xf] %vm867_vm2, %v1091_v35  ;;  %v1089_v36 = vpack.c.bf16 %v731_v39, %v731_v39  ;;  %v734_v22 = vmul.f32 %v1284_v55, %v1473_v60 }
 0x119   : > { %v1288_v41 = vpop.eup %1287  ;;  %876 = vst.msk [vmem:[%s1501_s25 + $0x20] sm:$0xf] %vm867_vm2, %v1073_v26  ;;  %v1076_v58 = vpack.c.bf16 %v718_v42, %v718_v42  ;;  %v716_v51 = vmul.f32 %v1286_v44, %v1477_v2 }
 0x11a   : > { %v1290_v47 = vpop.eup %1289  ;;  %892 = vst.msk [vmem:[%s1501_s25 + $0x60] sm:$0xf] %vm867_vm2, %v1089_v36  ;;  %v1092_v48 = vpack.c.bf16 %v734_v22, %v734_v22  ;;  %v732_v53 = vmul.f32 %v1288_v41, %v1480_v5 }
 0x11b   : > { %v1292_v50 = vpop.eup %1291  ;;  %879 = vst.msk [vmem:[%s1501_s25 + $0x2c] sm:$0xf] %vm867_vm2, %v1076_v58  ;;  %v1074_v61 = vpack.c.bf16 %v716_v51, %v716_v51  ;;  %v721_v60 = vmul.f32 %v1290_v47, %v1483_v6 }
 0x11c   : > { %v1294_v25 = vpop.eup %1293  ;;  %895 = vst.msk [vmem:[%s1501_s25 + $0x6c] sm:$0xf] %vm867_vm2, %v1092_v48  ;;  %v1090_v45 = vpack.c.bf16 %v732_v53, %v732_v53  ;;  %v737_v2 = vmul.f32 %v1292_v50, %v1489_v16 }
 0x11d   : > { %v1296_v54 = vpop.eup %1295  ;;  %877 = vst.msk [vmem:[%s1501_s25 + $0x24] sm:$0xf] %vm867_vm2, %v1074_v61  ;;  %v1079_v0 = vpack.c.bf16 %v721_v60, %v721_v60  ;;  %v719_v5 = vmul.f32 %v1294_v25, %v1494_v23 }
 0x11e   : > { %v1298_v56 = vpop.eup %1297  ;;  %893 = vst.msk [vmem:[%s1501_s25 + $0x64] sm:$0xf] %vm867_vm2, %v1090_v45  ;;  %v1095_v28 = vpack.c.bf16 %v737_v2, %v737_v2  ;;  %v735_v6 = vmul.f32 %v1296_v54, %v1508_v38 }
 0x11f   : > { %v1300_v59 = vpop.eup %1299  ;;  %882 = vst.msk [vmem:[%s1501_s25 + $0x38] sm:$0xf] %vm867_vm2, %v1079_v0  ;;  %v1077_v16 = vpack.c.bf16 %v719_v5, %v719_v5  ;;  %v722_v62 = vmul.f32 %v1298_v56, %v1520_v57 }
 0x120   : > { %v1302_v31 = vpop.eup %1301  ;;  %898 = vst.msk [vmem:[%s1501_s25 + $0x78] sm:$0xf] %vm867_vm2, %v1095_v28  ;;  %v1093_v23 = vpack.c.bf16 %v735_v6, %v735_v6  ;;  %v738_v63 = vmul.f32 %v1300_v59, %v1530_v8 }
 0x121   : > { %v1304_v1 = vpop.eup %1303  ;;  %880 = vst.msk [vmem:[%s1501_s25 + $0x30] sm:$0xf] %vm867_vm2, %v1077_v16  ;;  %v1080_v38 = vpack.c.bf16 %v722_v62, %v722_v62  ;;  %v720_v3 = vmul.f32 %v1302_v31, %v1536_v11 }
 0x122   : > { %896 = vst.msk [vmem:[%s1501_s25 + $0x70] sm:$0xf] %vm867_vm2, %v1093_v23  ;;  %v1096_v4 = vpack.c.bf16 %v738_v63, %v738_v63  ;;  %v736_v34 = vmul.f32 %v1304_v1, %v1542_v14 }
 0x123   : > { %883 = vst.msk [vmem:[%s1501_s25 + $0x3c] sm:$0xf] %vm867_vm2, %v1080_v38  ;;  %v1078_v57 = vpack.c.bf16 %v720_v3, %v720_v3 }
 0x124   : > { %899 = vst.msk [vmem:[%s1501_s25 + $0x7c] sm:$0xf] %vm867_vm2, %v1096_v4  ;;  %v1094_v7 = vpack.c.bf16 %v736_v34, %v736_v34 }
 0x125   : > { %881 = vst.msk [vmem:[%s1501_s25 + $0x34] sm:$0xf] %vm867_vm2, %v1078_v57 }
 0x126   : > { %897 = vst.msk [vmem:[%s1501_s25 + $0x74] sm:$0xf] %vm867_vm2, %v1094_v7 }
 0x127 PF: > { %s13_s12 = sadd.s32 1, %s1311_s12  }
 0x128   : > { %p10_p4 = scmp.ge.s32.totalorder %s13_s12, 4  }
 0x12a   :  { %12 = sbr.rel (!%p10_p4) target bundleno = 1 (0x1), region = 62 }

// kernel: forward.8
= control target key start
LH: loop header
LB: loop body
LE: loop exit
PB: predicated region body
PF: predicated region fallthrough
CT: control target
= control target key end

     0   :  { %s574_s12 = smov 0   ;;  %s646_s0 = inlined_call_operand.vmem [shape: bf16[32,256], index: 0, kind: input, shape index: {}]   ;;  %s647_s1 = inlined_call_operand.vmem [shape: bf16[256,128], index: 1, kind: input, shape index: {}]   ;;  %s648_s2 = inlined_call_operand.vmem [shape: f32[1,128], index: 2, kind: input, shape index: {}]   ;;  %s649_s3 = inlined_call_operand.vmem [shape: bf16[32,128], index: 3, kind: output, shape index: {}]  }
   0x1 LB: > { %s446_s13 = sadd.s32 4294967295, %s552_s12   ;;  %p450_p0 = scmp.ge.s32.totalorder %s552_s12, 1  ;;  %s552_s12 = sphi %s574_s12, %s13_s12  }
   0x2   : > { %p139_p1 = scmp.lt.s32.totalorder %s552_s12, 3 }
   0x4   : > { %p140_p2 = pnand %p450_p0, %p139_p1 }
   0x5   : > { %s451_s16 = sshll.u32 (!%p140_p2), %s446_s13, 1 }
   0x6   : > { %143 = sbr.rel (%p140_p2) target bundleno = 284 (0x11c), region = 32  ;;  %p165_p3 = scmp.lt.s32.totalorder (!%p140_p2), %s451_s16, 3 }
   0xb   : > { %v519_v0 = vld [vmem:[%s647_s1 + $0x78] sm:$0xff]   ;;  %v521_v2 = vld [vmem:[%s647_s1 + $0x70] sm:$0xff]   ;;  %v523_v4 = vld [vmem:[%s647_s1 + $0x68] sm:$0xff]   ;;  %s651_s16 = smov (!%p165_p3, %s451_s16), 3 }
   0xc   : > { %v520_v1 = vld [vmem:[%s647_s1 + $0x38] sm:$0xff]   ;;  %489 = vmatprep.subr.bf16.mxu0 %v519_v0  ;;  %v522_v3 = vld [vmem:[%s647_s1 + $0x30] sm:$0xff]   ;;  %v524_v5 = vld [vmem:[%s647_s1 + $0x28] sm:$0xff]   ;;  %s481_s4 = sshll.u32 %s651_s16, 3  ;;  %s455_s28 = sshll.u32 %s651_s16, 2 }
   0xd   : > { %490 = vmatpush3.bf16.msra.mxu0 %v520_v1  ;;  %v525_v6 = vld [vmem:[%s647_s1 + $0x60] sm:$0xff]   ;;  %v527_v8 = vld [vmem:[%s647_s1 + $0x58] sm:$0xff]   ;;  %s169_s9 = scalar_lea.vmem %s646_s0, %s481_s4  ;;  %v529_v10 = vld [vmem:[%s647_s1 + $0x50] sm:$0xff]   ;;  %s175_s4 = scalar_lea.vmem %s649_s3, %s455_s28 }
   0xe   : > { %491 = vmatprep.subr.bf16.mxu0 %v521_v2  ;;  %v526_v7 = vld [vmem:[%s647_s1 + $0x20] sm:$0xff]   ;;  %v528_v9 = vld [vmem:[%s647_s1 + $0x18] sm:$0xff]   ;;  %v530_v12 = vld [vmem:[%s647_s1 + $0x10] sm:$0xff]  }
   0xf   : > { %v537_v11 = vld [vmem:[%s169_s9 + $0x4] ss:$8 sps:$4 sm:$0xff]   ;;  %v535_v17 = vld [vmem:[%s169_s9] ss:$8 sps:$4 sm:$0xff]  }
  0x10   : > { %357 = vmatprep.mubr.bf16.mxu0 %v537_v11  ;;  %v531_v13 = vld [vmem:[%s647_s1 + $0x48] sm:$0xff]   ;;  %v533_v15 = vld [vmem:[%s647_s1 + $0x40] sm:$0xff]  }
  0x11   : > { %492 = vmatpush3.bf16.msra.mxu0 %v522_v3  ;;  %v532_v14 = vld [vmem:[%s647_s1 + $0x8] sm:$0xff]   ;;  %v534_v16 = vld [vmem:[%s647_s1] sm:$0xff]  }
  0x12   : > { %493 = vmatprep.subr.bf16.mxu0 %v523_v4  ;;  %v456_v19 = vld [vmem:[%s648_s2] ss:$0 sm:$0xff] }
  0x15   : > { %494 = vmatpush3.bf16.msra.mxu0 %v524_v5 }
  0x16   : > { %495 = vmatprep.subr.bf16.mxu0 %v525_v6 }
  0x19   : > { %496 = vmatpush3.bf16.msra.mxu0 %v526_v7 }
  0x1a   : > { %497 = vmatprep.subr.bf16.mxu0 %v527_v8 }
  0x1d   : > { %498 = vmatpush3.bf16.msra.mxu0 %v528_v9 }
  0x1e   : > { %499 = vmatprep.subr.bf16.mxu0 %v529_v10 }
  0x21   : > { %500 = vmatpush3.bf16.msra.mxu0 %v530_v12 }
  0x22   : > { %501 = vmatprep.subr.bf16.mxu0 %v531_v13 }
  0x25   : > { %502 = vmatpush3.bf16.msra.mxu0 %v532_v14 }
  0x26   : > { %503 = vmatprep.subr.bf16.mxu0 %v533_v15 }
  0x29   : > { %504 = vmatpush3.bf16.msra.mxu0 %v534_v16 }
  0x2c   : > { %358 = vmatmul.mubr.bf16.vlgmr.msra.gmra.mxu0 %v535_v17 }
  0xec   : > { %v505_v18 = vpop.f32.mrf.mxu0 }
  0xee   : > { %v506_v20 = vpop.f32.mrf.mxu0 }
  0xef   : > { %v507_v21 = vadd.f32 %v506_v20, %v505_v18 }
  0xf0   : > { %v508_v22 = vpop.f32.mrf.mxu0 }
  0xf1   : > { %v360_v23 = vadd.f32 %v507_v21, %v456_v19 }
  0xf2   : > { %v509_v24 = vpop.f32.mrf.mxu0 }
  0xf3   : > { %v475_v25 = vmul.f32 -1.442695, %v360_v23  ;;  %v510_v26 = vadd.f32 %v509_v24, %v508_v22 }
  0xf5   : > { %538 = vpow2.f32 %v475_v25  ;;  %v363_v27 = vadd.f32 %v510_v26, %v456_v19 }
  0xf7   : > { %v476_v28 = vmul.f32 -1.442695, %v363_v27 }
  0xf9   : > { %540 = vpow2.f32 %v476_v28 }
 0x102   : > { %v539_v29 = vpop.eup %538 }
 0x103   : > { %v372_v30 = vadd.f32 1.0, %v539_v29 }
 0x105   : > { %542 = vrcp.f32 %v372_v30 }
 0x106   : > { %v541_v31 = vpop.eup %540 }
 0x107   : > { %v373_v32 = vadd.f32 1.0, %v541_v31 }
 0x109   : > { %544 = vrcp.f32 %v373_v32 }
 0x112   : > { %v543_v33 = vpop.eup %542 }
 0x113   : > { %v378_v35 = vmul.f32 %v543_v33, %v360_v23 }
 0x116   : > { %v545_v34 = vpop.eup %544 }
 0x117   : > { %v379_v36 = vmul.f32 %v545_v34, %v363_v27 }
 0x119   : > { %v487_v37 = vpack.c.bf16 %v379_v36, %v378_v35 }
 0x11b   : > { %488 = vst [vmem:[%s175_s4] sm:$0xff] %v487_v37  }
 0x11c PF: > { %s13_s12 = sadd.s32 1, %s552_s12  }
 0x11d   : > { %p10_p4 = scmp.ge.s32.totalorder %s13_s12, 4  }
 0x11f   :  { %12 = sbr.rel (!%p10_p4) target bundleno = 1 (0x1), region = 62 }

// kernel: forward.9
= control target key start
LH: loop header
LB: loop body
LE: loop exit
PB: predicated region body
PF: predicated region fallthrough
CT: control target
= control target key end

     0   :  { %s7272_s0 = inlined_call_operand.vmem [shape: f32[2,2], index: 0, kind: input, shape index: {}]   ;;  %s7273_s1 = inlined_call_operand.vmem [shape: bf16[2,4,512], index: 1, kind: input, shape index: {}]   ;;  %s7274_s2 = inlined_call_operand.vmem [shape: f32[2,4,16], index: 2, kind: input, shape index: {}]   ;;  %s7275_s3 = inlined_call_operand.vmem [shape: f32[2,4,16], index: 3, kind: input, shape index: {}]   ;;  %s7276_s4 = inlined_call_operand.vmem [shape: f32[2,1,32], index: 4, kind: input, shape index: {}]   ;;  %s7277_s5 = inlined_call_operand.vmem [shape: f32[2,1,64], index: 5, kind: input, shape index: {}]   ;;  %s7278_s6 = inlined_call_operand.vmem [shape: bf16[512,16], index: 6, kind: input, shape index: {}]   ;;  %s7279_s7 = inlined_call_operand.vmem [shape: bf16[512,16], index: 7, kind: input, shape index: {}]   ;;  %s7280_s8 = inlined_call_operand.vmem [shape: f32[1,16], index: 8, kind: input, shape index: {}]   ;;  %s7281_s9 = inlined_call_operand.vmem [shape: f32[1,16], index: 9, kind: input, shape index: {}]   ;;  %s7282_s10 = inlined_call_operand.vmem [shape: f32[32,64], index: 10, kind: input, shape index: {}]   ;;  %s7283_s11 = inlined_call_operand.vmem [shape: f32[1,64], index: 11, kind: input, shape index: {}]   ;;  %s7284_s12 = inlined_call_operand.vmem [shape: f32[64,64], index: 12, kind: input, shape index: {}]   ;;  %s7285_s13 = inlined_call_operand.vmem [shape: f32[1,64], index: 13, kind: input, shape index: {}]   ;;  %s7286_s14 = inlined_call_operand.vmem [shape: f32[64,128], index: 14, kind: input, shape index: {}]   ;;  %s7287_s15 = inlined_call_operand.vmem [shape: f32[1,128], index: 15, kind: input, shape index: {}]   ;;  %s7288_s16 = inlined_call_operand.vmem [shape: bf16[144,128], index: 16, kind: input, shape index: {}]   ;;  %s7289_s17 = inlined_call_operand.vmem [shape: f32[1,128], index: 17, kind: input, shape index: {}]   ;;  %s7290_s18 = inlined_call_operand.vmem [shape: bf16[1152,128], index: 18, kind: input, shape index: {}]   ;;  %s7291_s19 = inlined_call_operand.vmem [shape: f32[1,128], index: 19, kind: input, shape index: {}]   ;;  %s7292_s20 = inlined_call_operand.vmem [shape: bf16[1152,128], index: 20, kind: input, shape index: {}]   ;;  %s7293_s21 = inlined_call_operand.vmem [shape: f32[1,128], index: 21, kind: input, shape index: {}]   ;;  %s7294_s22 = inlined_call_operand.vmem [shape: bf16[1152,16], index: 22, kind: input, shape index: {}]   ;;  %s7295_s23 = inlined_call_operand.vmem [shape: f32[1,16], index: 23, kind: input, shape index: {}]   ;;  %s7296_s24 = inlined_call_operand.vmem [shape: f32[2,8,128], index: 24, kind: output, shape index: {}]  }
   0x1   :  { %7303 = sst [smem:[#allocation6_spill]] %s7272_s0 }
   0x2   :  { %7304 = sst [smem:[#allocation7_spill]] %s7273_s1 }
   0x3   :  { %7305 = sst [smem:[#allocation8_spill]] %s7274_s2 }
   0x4   :  { %7306 = sst [smem:[#allocation9_spill]] %s7275_s3 }
   0x5   :  { %7307 = sst [smem:[#allocation10_spill]] %s7276_s4 }
   0x6   :  { %7308 = sst [smem:[#allocation11_spill]] %s7277_s5 }
   0x7   :  { %7309 = sst [smem:[#allocation12_spill]] %s7278_s6 }
   0x8   :  { %7310 = sst [smem:[#allocation13_spill]] %s7279_s7 }
   0x9   :  { %7311 = sst [smem:[#allocation14_spill]] %s7280_s8 }
   0xa   :  { %7312 = sst [smem:[#allocation15_spill]] %s7281_s9 }
   0xb   :  { %7313 = sst [smem:[#allocation16_spill]] %s7282_s10 }
   0xc   :  { %7314 = sst [smem:[#allocation17_spill]] %s7295_s23 }
   0xd   :  { %7315 = sst [smem:[#allocation18_spill]] %s7296_s24 }
   0xe   :  { %29 = vsyncpa [#allocation3], 0  ;;  %s6050_s5 = smov 0  }
   0xf LB: > { %7316 = sst [smem:[#allocation5_spill]] %s5907_s5  ;;  %s6056_s26 = sadd.s32 4294967295, %s5907_s5   ;;  %s5907_s5 = sphi %s6050_s5, %s35_s5  }
  0x10   : > { %p4705_p0 = scmp.ge.s32.totalorder %s5907_s5, 1  ;;  %p595_p1 = scmp.lt.s32.totalorder %s5907_s5, 3 }
  0x11   : > { %s7317_s6 = sld [smem:[#allocation6_spill]]  ;;  %p5547_p3 = scmp.eq.s32.totalorder %s6056_s26, 0 }
  0x12   : > { %p6063_p2 = pnand %p4705_p0, %p595_p1 }
  0x14   : > { %p5543_p4 = pneg %p6063_p2 }
  0x16   : > { %p5544_p5 = pnand %p5547_p3, %p5543_p4 }
  0x17   : > { %s608_s2 = sshll.u32 %s7317_s6, 4  ;;  %s609_s2 = int_to_ptr.vmem [resolvable:$true] %s608_s2 }
  0x18   : > { %s5882_s0 = scalar_lea.vmem %s609_s2, 32  ;;  %p5884_p7 = pneg %p5544_p5 }
  0x19   : > { %p5883_p6 = scmp.ne.s32.totalorder %s609_s2, %s5882_s0  ;;  %p5890_p10 = scmp.lt.s32.totalorder %s609_s2, %s609_s2 }
  0x1a   : > { %p5891_p11 = scmp.lt.s32.totalorder %s5882_s0, %s5882_s0 }
  0x1b   : > { %p5885_p8 = pnand %p5884_p7, %p5883_p6 }
  0x1c   : > { %p5892_p12 = por %p5891_p11, %p5890_p10 }
  0x1d   : > { %p5886_p9 = pneg %p5885_p8 }
  0x1f   : > { %p5893_p13 = pnand %p5892_p12, %p5886_p9 }
  0x21   : > { %5896 = shalt.err (!%p5893_p13)
}
  0x22   : > { %s5909_s7 = smov [#allocation2]   ;;  %709 = sbr.rel (%p6063_p2) target bundleno = 2534 (0x9e6), region = 116 }
  0x23   : > { %5546 = dma.vmem_to_smem (!%p5544_p5), %s609_s2, 32, %s5909_s7, [#allocation3]  }
  0x27   : > { %5902 = dma.done.wait (%p5547_p3), [#allocation3], 32  }
  0x28   : > { %5904 = vsyncadd (%p5547_p3), [#allocation3], 4294967264 }
  0x29   : > { %715 = sfence }
  0x2a   : > { %s7319_s25 = sld [smem:[#allocation12_spill]]  ;;  %p789_p0 = scmp.lt.s32.totalorder %s6056_s26, 1  ;;  %v894_v28 = vlaneseq  ;;  %v5910_v36 = vmov 1983009808   ;;  %vm5912_vm0 = vmmov 0   ;;  %vm1547_vm1 = vcmask 261120  }
  0x2b   : > { %s7320_s27 = sld [smem:[#allocation7_spill]]  ;;  %v892_v37 = vunpack.c.l.s4 %v5910_v36  ;;  %s4715_s30 = sshll.u32 %s6056_s26, 7  ;;  %vm1811_vm2 = vcmask 1040384   ;;  %vm1812_vm3 = vsmask.f32 256  ;;  %vm1815_vm4 = vcmask 1042432  }
  0x2c   : > { %s6149_s0 = scalar_select %p789_p0, %s6056_s26, 1  ;;  %v6184_v33 = vshrl.u32 %v894_v28, 7  ;;  %vm1816_vm5 = vsmask.f32 2304  ;;  %vm6344_vm6 = vmand %vm1811_vm2, %vm1812_vm3  ;;  %vm1637_vm8 = vcmask 523264   ;;  %vm1822_vm9 = vcmask 31744  }
  0x2d   : > { %s7321_s3 = sld [smem:[#allocation13_spill]]  ;;  %v893_v39 = vunpack.c.0.s8 %v892_v37  ;;  %s815_s8 = sadd.s32 1, %s4715_s30  ;;  %vm6348_vm7 = vmand %vm1815_vm4, %vm1816_vm5  ;;  %vm1826_vm10 = vcmask 162816   ;;  %vm1852_vm11 = vcmask 130048   ;;  %vm1857_vm12 = vcmask 392192  }
  0x2e   : > { %s7300_s6 = sshll.u32 %s6149_s0, 3  ;;  %s7322_s10 = sld [smem:[#allocation16_spill]]  ;;  %vm1862_vm13 = vcmask 654336   ;;  %vm1865_vm14 = vcmask 785408   ;;  %vm1868_vm15 = vcmask 916480   ;;  %vm6595_vm2 = vmneg %vm1547_vm1 }
  0x2f   : > { %v896_v41 = vsub.s32 %v893_v39, %v6184_v33  ;;  %s7324_s9 = sld [smem:[#allocation15_spill]]  ;;  %s4712_s5 = sshll.u32 %s6149_s0, 2 }
  0x30   : > { %v5573_v0 = vld [vmem:[%s7319_s25 + $0x78] sm:$0xff]   ;;  %v5577_v4 = vld [vmem:[%s7319_s25 + $0x70] sm:$0xff]   ;;  %v5581_v8 = vld [vmem:[%s7319_s25 + $0x68] sm:$0xff]   ;;  %s7325_s1 = sld [smem:[#allocation14_spill]]  ;;  %s5916_s23 = smov 12  }
  0x31   : > { %v5574_v1 = vld [vmem:[%s7319_s25 + $0xf8] sm:$0xff]   ;;  %5028 = vmatprep.subr.bf16.mxu0 %v5573_v0  ;;  %v5578_v5 = vld [vmem:[%s7319_s25 + $0xf0] sm:$0xff]   ;;  %v5582_v9 = vld [vmem:[%s7319_s25 + $0xe8] sm:$0xff]   ;;  %s793_s28 = scalar_lea.vmem %s7320_s27, %s7300_s6  ;;  %s816_s27 = sld [smem:[#allocation2 + %s815_s8]] }
  0x32   : > { %v5575_v2 = vld [vmem:[%s7319_s25 + $0x38] sm:$0xff]   ;;  %5050 = vmatprep.subr.bf16.mxu1 %v5574_v1  ;;  %v5579_v6 = vld [vmem:[%s7319_s25 + $0x30] sm:$0xff]   ;;  %v5583_v10 = vld [vmem:[%s7319_s25 + $0x28] sm:$0xff]   ;;  %s7326_s29 = sld [smem:[#allocation8_spill]]  ;;  %s5917_s8 = smov 96  }
  0x33   : > { %v5576_v3 = vld [vmem:[%s7319_s25 + $0xb8] sm:$0xff]   ;;  %5029 = vmatpush3.bf16.msra.mxu0 %v5575_v2  ;;  %v5580_v7 = vld [vmem:[%s7319_s25 + $0xb0] sm:$0xff]   ;;  %v5584_v11 = vld [vmem:[%s7319_s25 + $0xa8] sm:$0xff]   ;;  %s814_s6 = sld [smem:[#allocation2 + %s4715_s30]]  ;;  %s5918_s4 = smov 48  }
  0x34   : > { %5051 = vmatpush3.bf16.msra.mxu1 %v5576_v3  ;;  %5030 = vmatprep.subr.bf16.mxu0 %v5577_v4  ;;  %v5585_v12 = vld [vmem:[%s7319_s25 + $0x60] sm:$0xff]   ;;  %v5589_v16 = vld [vmem:[%s7319_s25 + $0x58] sm:$0xff]   ;;  %v5593_v20 = vld [vmem:[%s7319_s25 + $0x50] sm:$0xff]  }
  0x35   : > { %5052 = vmatprep.subr.bf16.mxu1 %v5578_v5  ;;  %v5586_v13 = vld [vmem:[%s7319_s25 + $0xe0] sm:$0xff]   ;;  %v5590_v17 = vld [vmem:[%s7319_s25 + $0xd8] sm:$0xff]   ;;  %v5594_v21 = vld [vmem:[%s7319_s25 + $0xd0] sm:$0xff]  }
  0x36   : > { %v5587_v14 = vld [vmem:[%s7319_s25 + $0x20] sm:$0xff]   ;;  %v5591_v18 = vld [vmem:[%s7319_s25 + $0x18] sm:$0xff]   ;;  %v5595_v22 = vld [vmem:[%s7319_s25 + $0x10] sm:$0xff]  }
  0x37   : > { %5031 = vmatpush3.bf16.msra.mxu0 %v5579_v6  ;;  %v5588_v15 = vld [vmem:[%s7319_s25 + $0xa0] sm:$0xff]   ;;  %v5592_v19 = vld [vmem:[%s7319_s25 + $0x98] sm:$0xff]   ;;  %v5596_v23 = vld [vmem:[%s7319_s25 + $0x90] sm:$0xff]  }
  0x38   : > { %5053 = vmatpush3.bf16.msra.mxu1 %v5580_v7  ;;  %5032 = vmatprep.subr.bf16.mxu0 %v5581_v8  ;;  %v5597_v24 = vld [vmem:[%s7319_s25 + $0x48] sm:$0xff]   ;;  %v5601_v29 = vld [vmem:[%s7319_s25 + $0x40] sm:$0xff]   ;;  %v5606_v35 = vld [vmem:[%s7321_s3 + $0x78] sm:$0xff]   ;;  %s797_s7 = scalar_lea.vmem %s7326_s29, %s4712_s5  ;;  %s7336_s29 = sshll.u32 %s6149_s0, 3 }
  0x39   : > { %5054 = vmatprep.subr.bf16.mxu1 %v5582_v9  ;;  %v5598_v25 = vld [vmem:[%s7319_s25 + $0xc8] sm:$0xff]   ;;  %v5602_v30 = vld [vmem:[%s7319_s25 + $0xc0] sm:$0xff]   ;;  %v5607_v38 = vld [vmem:[%s7321_s3 + $0xf8] sm:$0xff]  }
  0x3a   : > { %v5599_v26 = vld [vmem:[%s7319_s25 + $0x8] sm:$0xff]   ;;  %v5603_v31 = vld [vmem:[%s7319_s25] sm:$0xff]   ;;  %v5608_v44 = vld [vmem:[%s7321_s3 + $0x38] sm:$0xff]  }
  0x3b   : > { %5033 = vmatpush3.bf16.msra.mxu0 %v5583_v10  ;;  %v5600_v27 = vld [vmem:[%s7319_s25 + $0x88] sm:$0xff]   ;;  %v5604_v32 = vld [vmem:[%s7319_s25 + $0x80] sm:$0xff]   ;;  %v5609_v45 = vld [vmem:[%s7321_s3 + $0xb8] sm:$0xff]  }
  0x3c   : > { %5055 = vmatpush3.bf16.msra.mxu1 %v5584_v11  ;;  %5034 = vmatprep.subr.bf16.mxu0 %v5585_v12  ;;  %v817_v34 = vld [vmem:[%s793_s28] sm:$0xff]  ;;  %v5610_v48 = vld [vmem:[%s7321_s3 + $0x70] sm:$0xff]   ;;  %v5614_v52 = vld [vmem:[%s7321_s3 + $0x68] sm:$0xff]   ;;  %s7323_s28 = sld [smem:[#allocation10_spill]] }
  0x3d   : > { %5056 = vmatprep.subr.bf16.mxu1 %v5586_v13  ;;  %v890_v40 = vcombine.high %v817_v34, %v817_v34  ;;  %v6193_v42 = vrot.slane %v817_v34, %v896_v41  ;;  %v5611_v49 = vld [vmem:[%s7321_s3 + $0xf0] sm:$0xff]   ;;  %v5615_v53 = vld [vmem:[%s7321_s3 + $0xe8] sm:$0xff]   ;;  %v5618_v56 = vld [vmem:[%s7321_s3 + $0x60] sm:$0xff]   ;;  %v5911_v13 = vmov 0.0  }
  0x3e   : > { %v5612_v50 = vld [vmem:[%s7321_s3 + $0x30] sm:$0xff]   ;;  %v5616_v54 = vld [vmem:[%s7321_s3 + $0x28] sm:$0xff]   ;;  %v5619_v57 = vld [vmem:[%s7321_s3 + $0xe0] sm:$0xff]  }
  0x3f   : > { %5035 = vmatpush3.bf16.msra.mxu0 %v5587_v14  ;;  %v6195_v43 = vrot.slane %v890_v40, %v896_v41  ;;  %v905_v46 = vcombine.high %v6193_v42, %v6193_v42  ;;  %v5613_v51 = vld [vmem:[%s7321_s3 + $0xb0] sm:$0xff]   ;;  %v5617_v55 = vld [vmem:[%s7321_s3 + $0xa8] sm:$0xff]   ;;  %v5620_v58 = vld [vmem:[%s7321_s3 + $0x20] sm:$0xff]  }
  0x40   : > { %5057 = vmatpush3.bf16.msra.mxu1 %v5588_v15  ;;  %5036 = vmatprep.subr.bf16.mxu0 %v5589_v16  ;;  %v5621_v59 = vld [vmem:[%s7321_s3 + $0xa0] sm:$0xff]   ;;  %v5622_v60 = vld [vmem:[%s7321_s3 + $0x58] sm:$0xff]   ;;  %v5626_v0 = vld [vmem:[%s7321_s3 + $0x50] sm:$0xff]  }
  0x41   : > { %5058 = vmatprep.subr.bf16.mxu1 %v5590_v17  ;;  %v906_v47 = vcombine.high %v6195_v43, %v6195_v43  ;;  %1135 = vmatprep.mubr.bf16.mxu0 %v905_v46  ;;  %v5623_v61 = vld [vmem:[%s7321_s3 + $0xd8] sm:$0xff]   ;;  %v5627_v1 = vld [vmem:[%s7321_s3 + $0xd0] sm:$0xff]   ;;  %v5630_v4 = vld [vmem:[%s7321_s3 + $0x48] sm:$0xff]  }
  0x42   : > { %v5624_v62 = vld [vmem:[%s7321_s3 + $0x18] sm:$0xff]   ;;  %v5628_v2 = vld [vmem:[%s7321_s3 + $0x10] sm:$0xff]   ;;  %v5631_v5 = vld [vmem:[%s7321_s3 + $0xc8] sm:$0xff]   ;;  %s804_s2 = scalar_lea.vmem %s7323_s28, %s6149_s0  ;;  %s5919_s28 = smov 60  }
  0x43   : > { %5037 = vmatpush3.bf16.msra.mxu0 %v5591_v18  ;;  %1175 = vmatprep.mubr.bf16.mxu1 %v906_v47  ;;  %v5625_v63 = vld [vmem:[%s7321_s3 + $0x98] sm:$0xff]   ;;  %v5629_v3 = vld [vmem:[%s7321_s3 + $0x90] sm:$0xff]   ;;  %v5632_v6 = vld [vmem:[%s7321_s3 + $0x8] sm:$0xff]  }
  0x44   : > { %5059 = vmatpush3.bf16.msra.mxu1 %v5592_v19  ;;  %5038 = vmatprep.subr.bf16.mxu0 %v5593_v20  ;;  %v5633_v7 = vld [vmem:[%s7321_s3 + $0x88] sm:$0xff]   ;;  %v5634_v8 = vld [vmem:[%s7321_s3 + $0x40] sm:$0xff]   ;;  %v1545_v12 = vld [vmem:[%s7322_s10 + $0x18] sm:$0xff] }
  0x45   : > { %5060 = vmatprep.subr.bf16.mxu1 %v5594_v21  ;;  %v5635_v9 = vld [vmem:[%s7321_s3 + $0xc0] sm:$0xff]   ;;  %v1544_v14 = vld [vmem:[%s7322_s10 + $0x10] sm:$0xff]  ;;  %v1543_v15 = vld [vmem:[%s7322_s10 + $0x8] sm:$0xff] }
  0x46   : > { %v5636_v10 = vld [vmem:[%s7321_s3] sm:$0xff]  }
  0x47   : > { %5039 = vmatpush3.bf16.msra.mxu0 %v5595_v22  ;;  %v5637_v11 = vld [vmem:[%s7321_s3 + $0x80] sm:$0xff]   ;;  %s5922_s3 = smov 108  }
  0x48   : > { %5061 = vmatpush3.bf16.msra.mxu1 %v5596_v23  ;;  %5040 = vmatprep.subr.bf16.mxu0 %v5597_v24  ;;  %v1542_v16 = vld [vmem:[%s7322_s10] sm:$0xff]  ;;  %s7327_s10 = sld [smem:[#allocation9_spill]] }
  0x49   : > { %5062 = vmatprep.subr.bf16.mxu1 %v5598_v25  ;;  %v1541_v17 = vld [vmem:[%s804_s2] sm:$0x1]  ;;  %s7335_s2 = sld [smem:[#allocation17_spill]] }
  0x4a   : > { %v4749_v28 = vld [vmem:[%s7324_s9] ss:$0 sm:$0xff]  ;;  %s5913_s9 = smov 4  }
  0x4b   : > { %5041 = vmatpush3.bf16.msra.mxu0 %v5599_v26 }
  0x4c   : > { %5063 = vmatpush3.bf16.msra.mxu1 %v5600_v27  ;;  %5042 = vmatprep.subr.bf16.mxu0 %v5601_v29 }
  0x4d   : > { %5064 = vmatprep.subr.bf16.mxu1 %v5602_v30 }
  0x4e   : > { %s6338_s26 = scalar_lea.vmem %s7327_s10, %s4712_s5  ;;  %s5915_s10 = smov 24  }
  0x4f   : > { %5043 = vmatpush3.bf16.msra.mxu0 %v5603_v31 }
  0x50   : > { %5065 = vmatpush3.bf16.msra.mxu1 %v5604_v32  ;;  %5072 = vmatprep.subr.bf16.mxu0 %v5606_v35 }
  0x51   : > { %5094 = vmatprep.subr.bf16.mxu1 %v5607_v38 }
  0x52   : > { %1136 = vmatmul.mubr.bf16.vlgmr.msra.gmra.mxu0 %v6193_v42 }
  0x53   : > { %1176 = vmatmul.mubr.bf16.vlgmr.msra.gmra.mxu1 %v6195_v43  ;;  %5073 = vmatpush3.bf16.msra.mxu0 %v5608_v44 }
  0x54   : > { %5095 = vmatpush3.bf16.msra.mxu1 %v5609_v45  ;;  %5074 = vmatprep.subr.bf16.mxu0 %v5610_v48  ;;  %v4716_v45 = vld [vmem:[%s7325_s1] ss:$0 sm:$0xff]  ;;  %s7332_s1 = sld [smem:[#allocation11_spill]] }
  0x55   : > { %5096 = vmatprep.subr.bf16.mxu1 %v5611_v49  ;;  %1478 = vmatprep.mubr.bf16.mxu0 %v905_v46  ;;  %v1531_v48 = vld [vmem:[%s797_s7] sm:$0xf]  ;;  %s5920_s7 = smov 72  }
  0x56   : > { %1518 = vmatprep.mubr.bf16.mxu1 %v906_v47 }
  0x57   : > { %5075 = vmatpush3.bf16.msra.mxu0 %v5612_v50  ;;  %v1546_v50 = vld [vmem:[%s7283_s11] sm:$0x1] }
  0x58   : > { %5097 = vmatpush3.bf16.msra.mxu1 %v5613_v51  ;;  %5076 = vmatprep.subr.bf16.mxu0 %v5614_v52 }
  0x59   : > { %5098 = vmatprep.subr.bf16.mxu1 %v5615_v53  ;;  %v1537_v53 = vld [vmem:[%s6338_s26] sm:$0xf] }
  0x5b   : > { %5077 = vmatpush3.bf16.msra.mxu0 %v5616_v54  ;;  %v1538_v54 = vstv %s816_s27  ;;  %s807_s27 = scalar_lea.vmem %s7332_s1, %s6149_s0 }
  0x5c   : > { %5099 = vmatpush3.bf16.msra.mxu1 %v5617_v55  ;;  %5078 = vmatprep.subr.bf16.mxu0 %v5618_v56 }
  0x5d   : > { %5100 = vmatprep.subr.bf16.mxu1 %v5619_v57 }
  0x5f   : > { %5079 = vmatpush3.bf16.msra.mxu0 %v5620_v58  ;;  %v1535_v58 = vstv %s814_s6 }
  0x60   : > { %5101 = vmatpush3.bf16.msra.mxu1 %v5621_v59  ;;  %5080 = vmatprep.subr.bf16.mxu0 %v5622_v60 }
  0x61   : > { %5102 = vmatprep.subr.bf16.mxu1 %v5623_v61  ;;  %v1539_v61 = vmul.f32 %v1538_v54, %v1537_v53 }
  0x63   : > { %5081 = vmatpush3.bf16.msra.mxu0 %v5624_v62 }
  0x64   : > { %5103 = vmatpush3.bf16.msra.mxu1 %v5625_v63  ;;  %5082 = vmatprep.subr.bf16.mxu0 %v5626_v0 }
  0x65   : > { %5104 = vmatprep.subr.bf16.mxu1 %v5627_v1 }
  0x67   : > { %5083 = vmatpush3.bf16.msra.mxu0 %v5628_v2 }
  0x68   : > { %5105 = vmatpush3.bf16.msra.mxu1 %v5629_v3  ;;  %5084 = vmatprep.subr.bf16.mxu0 %v5630_v4 }
  0x69   : > { %5106 = vmatprep.subr.bf16.mxu1 %v5631_v5  ;;  %v5794_v5 = vld [vmem:[%s7294_s22 + $0x70] sm:$0xff]  }
  0x6b   : > { %5085 = vmatpush3.bf16.msra.mxu0 %v5632_v6 }
  0x6c   : > { %5107 = vmatpush3.bf16.msra.mxu1 %v5633_v7  ;;  %5086 = vmatprep.subr.bf16.mxu0 %v5634_v8  ;;  %v5795_v7 = vld [vmem:[%s7294_s22 + $0xb8] sm:$0xff]  }
  0x6d   : > { %5108 = vmatprep.subr.bf16.mxu1 %v5635_v9 }
  0x6f   : > { %5087 = vmatpush3.bf16.msra.mxu0 %v5636_v10 }
  0x70   : > { %5109 = vmatpush3.bf16.msra.mxu1 %v5637_v11  ;;  %5430 = vmatprep.subr.mxu0 %v5911_v13 }
  0x71   : > { %5441 = vmatprep.subr.mxu1 %v5911_v13 }
  0x72   : > { %1479 = vmatmul.mubr.bf16.vlgmr.msra.gmra.mxu0 %v6193_v42 }
  0x73   : > { %1519 = vmatmul.mubr.bf16.vlgmr.msra.gmra.mxu1 %v6195_v43  ;;  %5431 = vmatpush3.msra.mxu0 %v1545_v12  ;;  %v1635_v12 = vld [vmem:[%s7284_s12 + $0x38] sm:$0xff] }
  0x74   : > { %5438 = vmatprep.mubr.msk.f32.mxu0 %vm5912_vm0, %v5911_v13  ;;  %5432 = vmatprep.subr.mxu0 %v5911_v13 }
  0x75   : > { %5457 = vmatprep.mubr.msk.f32.mxu1 %vm5912_vm0, %v5911_v13  ;;  %5433 = vmatpush3.msra.mxu0 %v1544_v14  ;;  %v1634_v14 = vld [vmem:[%s7284_s12 + $0x30] sm:$0xff] }
  0x76   : > { %5434 = vmatprep.subr.mxu0 %v5911_v13  ;;  %5442 = vmatpush3.msra.mxu1 %v1635_v12 }
  0x77   : > { %5435 = vmatpush3.msra.mxu0 %v1543_v15  ;;  %5443 = vmatprep.subr.mxu1 %v5911_v13  ;;  %v1633_v15 = vld [vmem:[%s7284_s12 + $0x28] sm:$0xff] }
  0x78   : > { %5436 = vmatprep.subr.mxu0 %v5911_v13  ;;  %5444 = vmatpush3.msra.mxu1 %v1634_v14 }
  0x79   : > { %5437 = vmatpush3.msra.mxu0 %v1542_v16  ;;  %5445 = vmatprep.subr.mxu1 %v5911_v13  ;;  %v1632_v16 = vld [vmem:[%s7284_s12 + $0x20] sm:$0xff] }
  0x7a   : > { %5460 = vmatprep.subr.mxu0 %v5911_v13  ;;  %5439 = vmatmul.mubr.msk.f32.vlgmr.msra.gmra.mxu0 %vm1547_vm1, %v1541_v17  ;;  %v1631_v17 = vld [vmem:[%s7284_s12 + $0x18] sm:$0xff] }
  0x7b   : > { %5476 = vmatprep.mubr.msk.f32.mxu0 %vm5912_vm0, %v5911_v13  ;;  %5446 = vmatpush3.msra.mxu1 %v1633_v15  ;;  %v4787_v15 = vld [vmem:[%s7289_s17] ss:$0 sm:$0xff] }
  0x7c   : > { %5447 = vmatprep.subr.mxu1 %v5911_v13 }
  0x7d   : > { %5448 = vmatpush3.msra.mxu1 %v1632_v16 }
  0x7e   : > { %5449 = vmatprep.subr.mxu1 %v5911_v13 }
  0x7f   : > { %5450 = vmatpush3.msra.mxu1 %v1631_v17 }
  0x80   : > { %5451 = vmatprep.subr.mxu1 %v5911_v13 }
 0x112   : > { %v5044_v18 = vpop.f32.mrf.mxu0 }
 0x113   : > { %v5066_v19 = vpop.f32.mrf.mxu1 }
 0x114   : > { %v5045_v20 = vpop.f32.mrf.mxu0 }
 0x115   : > { %v5067_v21 = vpop.f32.mrf.mxu1  ;;  %v5046_v44 = vadd.f32 %v5045_v20, %v5044_v18  ;;  %v1630_v18 = vld [vmem:[%s7284_s12 + $0x10] sm:$0xff]  ;;  %v1628_v20 = vld [vmem:[%s7284_s12] sm:$0xff] }
 0x116   : > { %v5047_v22 = vpop.f32.mrf.mxu0  ;;  %v5068_v47 = vadd.f32 %v5067_v21, %v5066_v19  ;;  %v1629_v19 = vld [vmem:[%s7284_s12 + $0x8] sm:$0xff]  ;;  %5452 = vmatpush3.msra.mxu1 %v1630_v18 }
 0x117   : > { %v5069_v23 = vpop.f32.mrf.mxu1  ;;  %v1138_v46 = vadd.f32 %v5046_v44, %v4716_v45  ;;  %5453 = vmatprep.subr.mxu1 %v5911_v13  ;;  %v5638_v22 = vld [vmem:[%s7288_s16 + $0x38] sm:$0xff]   ;;  %v1725_v44 = vld [vmem:[%s7286_s14 + $0x28] sm:$0xff]  ;;  %v1724_v45 = vld [vmem:[%s7286_s14 + $0x20] sm:$0xff] }
 0x118   : > { %v5048_v24 = vpop.f32.mrf.mxu0  ;;  %5454 = vmatpush3.msra.mxu1 %v1629_v19 }
 0x119   : > { %v5070_v25 = vpop.f32.mrf.mxu1  ;;  %v1178_v51 = vadd.f32 %v5068_v47, %v1138_v46  ;;  %5455 = vmatprep.subr.mxu1 %v5911_v13  ;;  %v5914_v24 = vmov 0   ;;  %v1723_v46 = vld [vmem:[%s7286_s14 + $0x18] sm:$0xff]  ;;  %v1722_v47 = vld [vmem:[%s7286_s14 + $0x10] sm:$0xff] }
 0x11a   : > { %5456 = vmatpush3.msra.mxu1 %v1628_v20  ;;  %v5639_v25 = vld [vmem:[%s7288_s16 + $0x30] sm:$0xff]  }
 0x11b   : > { %1954 = vmatprep.subr.bf16.mxu1 %v5914_v24 }
 0x132   : > { %v5088_v26 = vpop.f32.mrf.mxu0 }
 0x133   : > { %v5110_v27 = vpop.f32.mrf.mxu1 }
 0x134   : > { %v5089_v29 = vpop.f32.mrf.mxu0 }
 0x135   : > { %v5111_v30 = vpop.f32.mrf.mxu1  ;;  %v5090_v31 = vadd.f32 %v5089_v29, %v5088_v26  ;;  %v5640_v26 = vld [vmem:[%s7288_s16 + $0x28] sm:$0xff]   ;;  %v5643_v29 = vld [vmem:[%s7288_s16 + $0x10] sm:$0xff]  }
 0x136   : > { %v5091_v32 = vpop.f32.mrf.mxu0  ;;  %v5112_v36 = vadd.f32 %v5111_v30, %v5110_v27  ;;  %v5641_v27 = vld [vmem:[%s7288_s16 + $0x20] sm:$0xff]   ;;  %v5644_v30 = vld [vmem:[%s7288_s16 + $0x8] sm:$0xff]  }
 0x137   : > { %v5113_v34 = vpop.f32.mrf.mxu1  ;;  %v1481_v35 = vadd.f32 %v5090_v31, %v4749_v28  ;;  %v5642_v28 = vld [vmem:[%s7288_s16 + $0x18] sm:$0xff]   ;;  %v5645_v31 = vld [vmem:[%s7288_s16] sm:$0xff]  }
 0x138   : > { %v5092_v37 = vpop.f32.mrf.mxu0  ;;  %v5646_v34 = vld [vmem:[%s7288_s16 + $0x40] sm:$0xff]  }
 0x139   : > { %v5114_v38 = vpop.f32.mrf.mxu1  ;;  %v1521_v39 = vadd.f32 %v5112_v36, %v1481_v35 }
 0x13a   : > { %v1617_v55 = vpop.f32.mrf.mxu0 }
 0x13b   : > { %v1526_v40 = vmax.f32 %v1521_v39, -30.0  ;;  %v1618_v57 = vadd.f32 %v1617_v55, %v1546_v50  ;;  %v1636_v50 = vld [vmem:[%s7285_s13] sm:$0x1] }
 0x13c   : > { %v5440_v59 = vpop.f32.mrf.mxu0 }
 0x13d   : > { %v1527_v41 = vmin.f32 %v1526_v40, 20.0  ;;  %v4783_v62 = vmul.f32 -1.442695, %v1618_v57 }
 0x13f   : > { %v1528_v42 = vmul.f32 0.5, %v1527_v41  ;;  %v1727_v41 = vld [vmem:[%s7286_s14 + $0x38] sm:$0xff] }
 0x140   : > { %5461 = vmatpush3.msra.mxu0 %v1727_v41  ;;  %v5656_v41 = vld [vmem:[%s7290_s18 + $0x28] sm:$0xff]  }
 0x141   : > { %v1529_v43 = vmul.f32 1.442695, %v1528_v42  ;;  %v1726_v42 = vld [vmem:[%s7286_s14 + $0x30] sm:$0xff]  ;;  %5462 = vmatprep.subr.mxu0 %v5911_v13 }
 0x142   : > { %5463 = vmatpush3.msra.mxu0 %v1726_v42  ;;  %v5659_v42 = vld [vmem:[%s7290_s18 + $0xa8] sm:$0xff]  }
 0x143   : > { %5863 = vpow2.f32 %v1529_v43  ;;  %5464 = vmatprep.subr.mxu0 %v5911_v13 }
 0x144   : > { %5865 = vpow2.f32 %v4783_v62  ;;  %5465 = vmatpush3.msra.mxu0 %v1725_v44  ;;  %v5661_v44 = vld [vmem:[%s7290_s18 + $0xe0] sm:$0xff]  }
 0x145   : > { %5466 = vmatprep.subr.mxu0 %v5911_v13 }
 0x146   : > { %5467 = vmatpush3.msra.mxu0 %v1724_v45  ;;  %v5660_v45 = vld [vmem:[%s7290_s18 + $0x20] sm:$0xff]  }
 0x147   : > { %5468 = vmatprep.subr.mxu0 %v5911_v13 }
 0x148   : > { %5469 = vmatpush3.msra.mxu0 %v1723_v46  ;;  %v5663_v46 = vld [vmem:[%s7290_s18 + $0xa0] sm:$0xff]  }
 0x149   : > { %5470 = vmatprep.subr.mxu0 %v5911_v13 }
 0x14a   : > { %5471 = vmatpush3.msra.mxu0 %v1722_v47  ;;  %v5662_v47 = vld [vmem:[%s7290_s18 + $0x58] sm:$0xff]  }
 0x14b   : > { %5472 = vmatprep.subr.mxu0 %v5911_v13 }
 0x150   : > { %v5864_v49 = vpop.eup %5863 }
 0x151   : > { %v1532_v52 = vmul.f32 %v5864_v49, %v1531_v48  ;;  %v5866_v9 = vpop.eup %5865  ;;  %v1721_v48 = vld [vmem:[%s7286_s14 + $0x8] sm:$0xff]  ;;  %v1720_v49 = vld [vmem:[%s7286_s14] sm:$0xff] }
 0x152   : > { %v1624_v11 = vadd.f32 1.0, %v5866_v9  ;;  %5473 = vmatpush3.msra.mxu0 %v1721_v48  ;;  %v5665_v48 = vld [vmem:[%s7290_s18 + $0xd8] sm:$0xff]  }
 0x153   : > { %v1533_v56 = vadd.f32 %v1532_v52, %v1178_v51  ;;  %5474 = vmatprep.subr.mxu0 %v5911_v13  ;;  %v1711_v52 = vld [vmem:[%s807_s27] sm:$0x1] }
 0x154   : > { %5867 = vrcp.f32 %v1624_v11  ;;  %5475 = vmatpush3.msra.mxu0 %v1720_v49  ;;  %v5664_v49 = vld [vmem:[%s7290_s18 + $0x18] sm:$0xff]  }
 0x155   : > { %v1534_v60 = vmul.f32 0.18215, %v1533_v56 }
 0x157   : > { %v1536_v63 = vmul.f32 %v1535_v58, %v1534_v60 }
 0x159   : > { %v1540_v0 = vadd.f32 %v1539_v61, %v1536_v63 }
 0x15b   : > { %v1802_v1 = vpack.c.bf16 %v1540_v0, %v1540_v0 }
 0x15d   : > { %v1804_v2 = vshrl.u32 %v1802_v1, 16  ;;  %v1807_v4 = vshll.u32 %v1802_v1, 16 }
 0x15f   : > { %v1806_v3 = vrot.slane %v1804_v2, 7 }
 0x161   : > { %v1809_v6 = vor.u32 %v1807_v4, %v1806_v3  ;;  %v5868_v21 = vpop.eup %5867 }
 0x162   : > { %v1627_v23 = vmul.f32 %v5868_v21, %v1618_v57 }
 0x163   : > { %v1814_v8 = vsel %vm6344_vm6, 0, %v1809_v6 }
 0x164   : > { %v1818_v10 = vsel %vm6348_vm7, %v1814_v8, 0  ;;  %5458 = vmatmul.mubr.msk.f32.vlgmr.msra.gmra.mxu1 %vm1637_vm8, %v1627_v23 }
 0x165   : > { %1820 = vrot.lane.b32.xlu0 %v1818_v10, %s5913_s9  ;;  %1955 = vmatpush1.bf16.msra.mxu1 %v5638_v22  ;;  %s5923_s9 = smov 32  }
 0x166   : > { %1956 = vmatprep.subr.bf16.mxu1 %v5914_v24 }
 0x169   : > { %1957 = vmatpush1.bf16.msra.mxu1 %v5639_v25 }
 0x16a   : > { %1958 = vmatprep.subr.bf16.mxu1 %v5914_v24 }
 0x16d   : > { %1959 = vmatpush1.bf16.msra.mxu1 %v5640_v26 }
 0x16e   : > { %1960 = vmatprep.subr.bf16.mxu1 %v5914_v24 }
 0x171   : > { %1961 = vmatpush1.bf16.msra.mxu1 %v5641_v27 }
 0x172   : > { %1962 = vmatprep.subr.bf16.mxu1 %v5914_v24 }
 0x175   : > { %1963 = vmatpush1.bf16.msra.mxu1 %v5642_v28 }
 0x176   : > { %1964 = vmatprep.subr.bf16.mxu1 %v5914_v24 }
 0x179   : > { %1965 = vmatpush1.bf16.msra.mxu1 %v5643_v29 }
 0x17a   : > { %1966 = vmatprep.subr.bf16.mxu1 %v5914_v24 }
 0x17d   : > { %1967 = vmatpush1.bf16.msra.mxu1 %v5644_v30  ;;  %v5647_v30 = vld [vmem:[%s7290_s18 + $0x78] sm:$0xff]  }
 0x17e   : > { %1968 = vmatprep.subr.bf16.mxu1 %v5914_v24  ;;  %5139 = vmatprep.subr.bf16.mxu0 %v5647_v30 }
 0x181   : > { %1969 = vmatpush1.bf16.msra.mxu1 %v5645_v31  ;;  %v5648_v31 = vld [vmem:[%s7290_s18 + $0x38] sm:$0xff]  }
 0x182   : > { %1984 = vmatprep.subr.bf16.mxu1 %v5914_v24 }
 0x185   : > { %1985 = vmatpush2.bf16.msra.mxu1 %v5646_v34  ;;  %v5650_v34 = vld [vmem:[%s7290_s18 + $0x70] sm:$0xff]  }
 0x1d7   : > { %v1821_v32 = vpop.permute.xlu0 %1820 }
 0x1d8   : > { %v1825_v35 = vsel %vm1822_vm9, 0, %v1821_v32  ;;  %v5649_v32 = vld [vmem:[%s7290_s18 + $0xf8] sm:$0xff]  }
 0x1d9   : > { %v1827_v36 = vsel %vm1826_vm10, %v1825_v35, 0  ;;  %v5651_v35 = vld [vmem:[%s7290_s18 + $0xb8] sm:$0xff]   ;;  %5161 = vmatprep.subr.bf16.mxu1 %v5649_v32  ;;  %v5687_v32 = vld [vmem:[%s7290_s18 + $0x1b0] sm:$0xff]  }
 0x1da   : > { %1831 = vrot.lane.b32.xlu1 %v1827_v36, %s5915_s10  ;;  %1829 = vrot.lane.b32.xlu0 %v1827_v36, %s5916_s23  ;;  %v1835_v37 = vshll.u32 %v1827_v36, 16  ;;  %v1845_v38 = vrot.slane %v1827_v36, 1  ;;  %v1833_v39 = vshrl.u32 %v1827_v36, 16  ;;  %s5921_s23 = smov 120  }
 0x1dc   : > { %v1837_v40 = vrot.slane %v1835_v37, 1  ;;  %v5652_v37 = vld [vmem:[%s7290_s18 + $0x30] sm:$0xff]  }
 0x1de   : > { %1846 = vrot.lane.b32.xlu0 %v1845_v38, %s5917_s8  ;;  %v1838_v43 = vor.u32 %v1837_v40, %v1833_v39  ;;  %v5654_v39 = vld [vmem:[%s7290_s18 + $0x68] sm:$0xff]  }
 0x1df   : > { %v5657_v40 = vld [vmem:[%s7290_s18 + $0xe8] sm:$0xff]  }
 0x1e0   : > { %1839 = vrot.lane.b32.xlu1 %v1838_v43, %s5918_s4  ;;  %s5924_s4 = smov 64  }
 0x1e2   : > { %1841 = vrot.lane.b32.xlu0 %v1838_v43, %s5919_s28 }
 0x1e4   : > { %1843 = vrot.lane.b32.xlu1 %v1838_v43, %s5920_s7  ;;  %v5658_v43 = vld [vmem:[%s7290_s18 + $0x60] sm:$0xff]  }
 0x1e6   : > { %1850 = vrot.lane.b32.xlu0 %v1845_v38, %s5921_s23 }
 0x1e8   : > { %1848 = vrot.lane.b32.xlu1 %v1845_v38, %s5922_s3  ;;  %v5655_v38 = vld [vmem:[%s7290_s18 + $0xb0] sm:$0xff]  }
 0x224   : > { %v1707_v51 = vpop.f32.mrf.mxu1 }
 0x225   : > { %v1708_v53 = vadd.f32 %v1707_v51, %v1636_v50  ;;  %v5667_v50 = vld [vmem:[%s7290_s18 + $0x98] sm:$0xff]   ;;  %v5666_v51 = vld [vmem:[%s7290_s18 + $0x50] sm:$0xff]  }
 0x226   : > { %v5459_v54 = vpop.f32.mrf.mxu1 }
 0x227   : > { %v1712_v55 = vadd.f32 %v1711_v52, %v1708_v53  ;;  %v5669_v52 = vld [vmem:[%s7290_s18 + $0xd0] sm:$0xff]  }
 0x228   : > { %v5668_v53 = vld [vmem:[%s7290_s18 + $0x10] sm:$0xff]  }
 0x229   : > { %v4785_v56 = vmul.f32 -1.442695, %v1712_v55  ;;  %v5671_v54 = vld [vmem:[%s7290_s18 + $0x90] sm:$0xff]  }
 0x22b   : > { %5869 = vpow2.f32 %v4785_v56  ;;  %v5673_v56 = vld [vmem:[%s7290_s18 + $0xc8] sm:$0xff]  }
 0x238   : > { %v5870_v57 = vpop.eup %5869 }
 0x239   : > { %v1716_v59 = vadd.f32 1.0, %v5870_v57  ;;  %v5672_v57 = vld [vmem:[%s7290_s18 + $0x8] sm:$0xff]  }
 0x23b   : > { %5871 = vrcp.f32 %v1716_v59  ;;  %v5674_v59 = vld [vmem:[%s7290_s18 + $0x40] sm:$0xff]  }
 0x248   : > { %v5872_v11 = vpop.eup %5871 }
 0x249   : > { %v1719_v14 = vmul.f32 %v5872_v11, %v1712_v55  ;;  %v5670_v55 = vld [vmem:[%s7290_s18 + $0x48] sm:$0xff]  }
 0x24b   : > { %5477 = vmatmul.mubr.msk.f32.vlgmr.msra.gmra.mxu0 %vm1637_vm8, %v1719_v14 }
 0x24c   : > { %v1830_v58 = vpop.permute.xlu0 %1829  ;;  %v1832_v60 = vpop.permute.xlu1 %1831  ;;  %5140 = vmatpush3.bf16.msra.mxu0 %v5648_v31  ;;  %v5686_v31 = vld [vmem:[%s7290_s18 + $0x168] sm:$0xff]  }
 0x24d   : > { %v1854_v61 = vsel %vm1852_vm11, %v1827_v36, %v1830_v58  ;;  %v5653_v36 = vld [vmem:[%s7290_s18 + $0xf0] sm:$0xff]   ;;  %5141 = vmatprep.subr.bf16.mxu0 %v5650_v34  ;;  %v5675_v58 = vld [vmem:[%s7290_s18 + $0x88] sm:$0xff]  }
 0x24e   : > { %v1856_v63 = vsel %vm1547_vm1, %v1854_v61, %v1832_v60  ;;  %v5676_v60 = vld [vmem:[%s7290_s18] sm:$0xff]  }
 0x24f   : > { %v5677_v61 = vld [vmem:[%s7290_s18 + $0xc0] sm:$0xff]  }
 0x250   : > { %v1847_v62 = vpop.permute.xlu0 %1846  ;;  %5142 = vmatpush3.bf16.msra.mxu0 %v5652_v37  ;;  %v5689_v37 = vld [vmem:[%s7290_s18 + $0x1e8] sm:$0xff]  }
 0x251   : > { %5143 = vmatprep.subr.bf16.mxu0 %v5654_v39  ;;  %v5690_v39 = vld [vmem:[%s7290_s18 + $0x160] sm:$0xff]  }
 0x252   : > { %v1840_v0 = vpop.permute.xlu1 %1839 }
 0x253   : > { %v1859_v1 = vsel %vm1857_vm12, %v1856_v63, %v1840_v0  ;;  %v5679_v63 = vld [vmem:[%s7290_s18 + $0x178] sm:$0xff]  }
 0x254   : > { %v1842_v2 = vpop.permute.xlu0 %1841  ;;  %5144 = vmatpush3.bf16.msra.mxu0 %v5656_v41  ;;  %v5681_v0 = vld [vmem:[%s7290_s18 + $0x1f8] sm:$0xff]  }
 0x255   : > { %v1861_v3 = vsel %vm1637_vm8, %v1859_v1, %v1842_v2  ;;  %5145 = vmatprep.subr.bf16.mxu0 %v5658_v43  ;;  %v5692_v43 = vld [vmem:[%s7290_s18 + $0x120] sm:$0xff]  }
 0x256   : > { %v1844_v4 = vpop.permute.xlu1 %1843 }
 0x257   : > { %v1864_v6 = vsel %vm1862_vm13, %v1861_v3, %v1844_v4 }
 0x258   : > { %v1851_v8 = vpop.permute.xlu0 %1850  ;;  %v1867_v9 = vsel %vm1865_vm14, %v1864_v6, %v1847_v62  ;;  %5146 = vmatpush3.bf16.msra.mxu0 %v5660_v45  ;;  %v5678_v62 = vld [vmem:[%s7290_s18 + $0x80] sm:$0xff]   ;;  %v5694_v45 = vld [vmem:[%s7290_s18 + $0x158] sm:$0xff]  }
 0x259   : > { %4797 = vmatprep.mubr.msk.bf16.mxu1 %vm1852_vm11, %v1851_v8  ;;  %5147 = vmatprep.subr.bf16.mxu0 %v5662_v47 }
 0x25a   : > { %v1849_v10 = vpop.permute.xlu1 %1848 }
 0x25b   : > { %v1870_v12 = vsel %vm1868_vm15, %v1867_v9, %v1849_v10 }
 0x25c   : > { %1987 = vmatmul.mubr.bf16.vlgmr.msra.gmra.mxu1 %v1870_v12  ;;  %5148 = vmatpush3.bf16.msra.mxu0 %v5664_v49  ;;  %v5696_v49 = vld [vmem:[%s7290_s18 + $0x118] sm:$0xff]  }
 0x25d   : > { %5162 = vmatpush3.bf16.msra.mxu1 %v5651_v35  ;;  %5149 = vmatprep.subr.bf16.mxu0 %v5666_v51 }
 0x25e   : > { %5163 = vmatprep.subr.bf16.mxu1 %v5653_v36  ;;  %v5688_v36 = vld [vmem:[%s7290_s18 + $0x128] sm:$0xff]  }
 0x260   : > { %5150 = vmatpush3.bf16.msra.mxu0 %v5668_v53  ;;  %v5699_v53 = vld [vmem:[%s7290_s18 + $0x198] sm:$0xff]  }
 0x261   : > { %5164 = vmatpush3.bf16.msra.mxu1 %v5655_v38  ;;  %5151 = vmatprep.subr.bf16.mxu0 %v5670_v55  ;;  %v5701_v55 = vld [vmem:[%s7290_s18 + $0x1d0] sm:$0xff]  }
 0x262   : > { %5165 = vmatprep.subr.bf16.mxu1 %v5657_v40  ;;  %v5691_v40 = vld [vmem:[%s7290_s18 + $0x1a8] sm:$0xff]  }
 0x264   : > { %5152 = vmatpush3.bf16.msra.mxu0 %v5672_v57  ;;  %v5703_v57 = vld [vmem:[%s7290_s18 + $0x190] sm:$0xff]  }
 0x265   : > { %5166 = vmatpush3.bf16.msra.mxu1 %v5659_v42  ;;  %5153 = vmatprep.subr.bf16.mxu0 %v5674_v59  ;;  %v5705_v59 = vld [vmem:[%s7290_s18 + $0x1c8] sm:$0xff]  }
 0x266   : > { %5167 = vmatprep.subr.bf16.mxu1 %v5661_v44  ;;  %v5693_v44 = vld [vmem:[%s7290_s18 + $0x1e0] sm:$0xff]  }
 0x268   : > { %5154 = vmatpush3.bf16.msra.mxu0 %v5676_v60  ;;  %v5706_v60 = vld [vmem:[%s7290_s18 + $0x140] sm:$0xff]  }
 0x269   : > { %5168 = vmatpush3.bf16.msra.mxu1 %v5663_v46  ;;  %5183 = vmatprep.subr.bf16.mxu0 %v5679_v63  ;;  %v5695_v46 = vld [vmem:[%s7290_s18 + $0x1a0] sm:$0xff]  }
 0x26a   : > { %5169 = vmatprep.subr.bf16.mxu1 %v5665_v48  ;;  %v5709_v63 = vld [vmem:[%s7290_s18 + $0x1c0] sm:$0xff]  }
 0x26d   : > { %5170 = vmatpush3.bf16.msra.mxu1 %v5667_v50  ;;  %v5697_v50 = vld [vmem:[%s7290_s18 + $0x1d8] sm:$0xff]  }
 0x26e   : > { %5171 = vmatprep.subr.bf16.mxu1 %v5669_v52  ;;  %v5698_v52 = vld [vmem:[%s7290_s18 + $0x150] sm:$0xff]  }
 0x271   : > { %5172 = vmatpush3.bf16.msra.mxu1 %v5671_v54  ;;  %v5700_v54 = vld [vmem:[%s7290_s18 + $0x110] sm:$0xff]  }
 0x272   : > { %5173 = vmatprep.subr.bf16.mxu1 %v5673_v56  ;;  %v5702_v56 = vld [vmem:[%s7290_s18 + $0x148] sm:$0xff]  }
 0x275   : > { %5174 = vmatpush3.bf16.msra.mxu1 %v5675_v58  ;;  %v5704_v58 = vld [vmem:[%s7290_s18 + $0x108] sm:$0xff]  }
 0x276   : > { %5175 = vmatprep.subr.bf16.mxu1 %v5677_v61  ;;  %v5707_v61 = vld [vmem:[%s7290_s18 + $0x188] sm:$0xff]  }
 0x279   : > { %5176 = vmatpush3.bf16.msra.mxu1 %v5678_v62  ;;  %v5708_v62 = vld [vmem:[%s7290_s18 + $0x100] sm:$0xff]  }
 0x27a   : > { %5205 = vmatprep.subr.bf16.mxu1 %v5681_v0  ;;  %v5710_v0 = vld [vmem:[%s7290_s18 + $0x180] sm:$0xff]  }
 0x30b   : > { %v6465_v19 = vpop.f32.mrf.mxu0 }
 0x30d   : > { %v5478_v22 = vpop.f32.mrf.mxu0 }
 0x30e   : > { %v5680_v22 = vld [vmem:[%s7290_s18 + $0x138] sm:$0xff]  }
 0x31c   : > { %v1988_v16 = vpop.f32.mrf.mxu1 }
 0x31d   : > { %v6463_v17 = vadd.f32 %v4787_v15, %v1988_v16 }
 0x31e   : > { %v1990_v18 = vpop.f32.mrf.mxu1 }
 0x31f   : > { %v1994_v20 = vpack.c.bf16 %v6463_v17, %v6463_v17 }
 0x320   : > { %v1991_v21 = vpop.f32.mrf.mxu1 }
 0x321   : > { %v1996_v23 = vshrl.u32 %v1994_v20, 16  ;;  %v1999_v26 = vshll.u32 %v1994_v20, 16  ;;  %v5830_v21 = vld [vmem:[%s7294_s22 + $0x168] sm:$0xff]  }
 0x322   : > { %v1992_v24 = vpop.f32.mrf.mxu1 }
 0x323   : > { %v1998_v25 = vrot.slane %v1996_v23, 7  ;;  %v5682_v24 = vld [vmem:[%s7290_s18 + $0x170] sm:$0xff]  }
 0x325   : > { %v2001_v27 = vor.u32 %v1999_v26, %v1998_v25  ;;  %v5683_v25 = vld [vmem:[%s7290_s18 + $0x1b8] sm:$0xff]  }
 0x327   : > { %v2003_v28 = vsel %vm6344_vm6, 0, %v2001_v27 }
 0x328   : > { %v2004_v29 = vsel %vm6348_vm7, %v2003_v28, 0  ;;  %v5684_v28 = vld [vmem:[%s7290_s18 + $0x130] sm:$0xff]  }
 0x329   : > { %2006 = vrot.lane.b32.xlu1 %v2004_v29, %s5923_s9  ;;  %v5685_v29 = vld [vmem:[%s7290_s18 + $0x1f0] sm:$0xff]  }
 0x39b   : > { %v2007_v1 = vpop.permute.xlu1 %2006 }
 0x39c   : > { %v2009_v2 = vsel %vm1547_vm1, 0, %v2007_v1  ;;  %v2011_v3 = vsel %vm1547_vm1, %v2007_v1, 0 }
 0x39d   : > { %2016 = vrot.lane.b32.xlu1 %v2011_v3, %s5917_s8  ;;  %2014 = vrot.lane.b32.xlu0 %v2009_v2, %s5917_s8  ;;  %v2030_v4 = vshll.u32 %v2009_v2, 16  ;;  %v2037_v6 = vshll.u32 %v2011_v3, 16  ;;  %v2028_v8 = vshrl.u32 %v2009_v2, 16  ;;  %v2035_v12 = vshrl.u32 %v2011_v3, 16 }
 0x39e   : > { %v2055_v15 = vrot.slane %v2011_v3, 1  ;;  %v6586_v16 = vrot.slane %v2009_v2, 1 }
 0x39f   : > { %v2032_v9 = vrot.slane %v2030_v4, 1  ;;  %v2039_v10 = vrot.slane %v2037_v6, 1  ;;  %v5713_v4 = vld [vmem:[%s7290_s18 + $0x228] sm:$0xff]   ;;  %v5714_v6 = vld [vmem:[%s7290_s18 + $0x220] sm:$0xff]  }
 0x3a1   : > { %2023 = vrot.lane.b32.xlu1 %v2011_v3, %s5924_s4  ;;  %2021 = vrot.lane.b32.xlu0 %v2009_v2, %s5924_s4  ;;  %v2033_v11 = vor.u32 %v2032_v9, %v2028_v8  ;;  %v2040_v14 = vor.u32 %v2039_v10, %v2035_v12  ;;  %v5712_v3 = vld [vmem:[%s7290_s18 + $0x230] sm:$0xff]   ;;  %v5715_v8 = vld [vmem:[%s7290_s18 + $0x218] sm:$0xff]  }
 0x3a2   : > { %v5716_v9 = vld [vmem:[%s7290_s18 + $0x210] sm:$0xff]   ;;  %v5717_v10 = vld [vmem:[%s7290_s18 + $0x208] sm:$0xff]  }
 0x3a3   : > { %2723 = vmatprep.mubr.bf16.mxu1 %v2033_v11 }
 0x3a5   : > { %2049 = vrot.lane.b32.xlu1 %v2040_v14, %s5924_s4  ;;  %2047 = vrot.lane.b32.xlu0 %v2033_v11, %s5924_s4 }
 0x3a9   : > { %2043 = vrot.lane.b32.xlu1 %v2040_v14, %s5917_s8  ;;  %2041 = vrot.lane.b32.xlu0 %v2033_v11, %s5917_s8  ;;  %v5718_v11 = vld [vmem:[%s7290_s18 + $0x200] sm:$0xff]  }
 0x3ad   : > { %2058 = vrot.lane.b32.xlu1 %v2055_v15, %s5917_s8  ;;  %2056 = vrot.lane.b32.xlu0 %v6586_v16, %s5917_s8 }
 0x3b1   : > { %2064 = vrot.lane.b32.xlu1 %v2055_v15, %s5924_s4  ;;  %2062 = vrot.lane.b32.xlu0 %v6586_v16, %s5924_s4 }
 0x40f   : > { %v2017_v18 = vpop.permute.xlu1 %2016  ;;  %v2015_v20 = vpop.permute.xlu0 %2014 }
 0x410   : > { %v2019_v23 = vsel %vm1865_vm14, %v2015_v20, %v2017_v18 }
 0x411   : > { %2683 = vmatprep.mubr.bf16.mxu0 %v2019_v23 }
 0x412   : > { %4872 = vmatmul.mubr.msk.bf16.vlgmr.msra.gmra.mxu0 %vm6595_vm2, %v2007_v1  ;;  %v5711_v1 = vld [vmem:[%s7290_s18 + $0x238] sm:$0xff]  }
 0x413   : > { %5184 = vmatpush3.bf16.msra.mxu0 %v5680_v22  ;;  %v2024_v26 = vpop.permute.xlu1 %2023  ;;  %v2022_v27 = vpop.permute.xlu0 %2021 }
 0x414   : > { %v2026_v30 = vsel %vm1637_vm8, %v2022_v27, %v2024_v26  ;;  %5185 = vmatprep.subr.bf16.mxu0 %v5682_v24 }
 0x415   : > { %2724 = vmatmul.mubr.bf16.vlgmr.msra.gmra.mxu1 %v2026_v30 }
 0x416   : > { %5206 = vmatpush3.bf16.msra.mxu1 %v5683_v25 }
 0x417   : > { %5186 = vmatpush3.bf16.msra.mxu0 %v5684_v28  ;;  %v2050_v34 = vpop.permute.xlu1 %2049  ;;  %v2048_v35 = vpop.permute.xlu0 %2047  ;;  %5207 = vmatprep.subr.bf16.mxu1 %v5685_v29 }
 0x418   : > { %5187 = vmatprep.subr.bf16.mxu0 %v5686_v31  ;;  %v2051_v38 = vsel %vm1637_vm8, %v2048_v35, %v2050_v34 }
 0x419   : > { %2763 = vmatprep.mubr.bf16.mxu0 %v2051_v38 }
 0x41a   : > { %5208 = vmatpush3.bf16.msra.mxu1 %v5687_v32 }
 0x41b   : > { %5188 = vmatpush3.bf16.msra.mxu0 %v5688_v36  ;;  %v2044_v41 = vpop.permute.xlu1 %2043  ;;  %v2042_v42 = vpop.permute.xlu0 %2041  ;;  %5209 = vmatprep.subr.bf16.mxu1 %v5689_v37  ;;  %v4798_v37 = vld [vmem:[%s7291_s19] ss:$0 sm:$0xff] }
 0x41c   : > { %5189 = vmatprep.subr.bf16.mxu0 %v5690_v39  ;;  %v2045_v2 = vsel %vm1865_vm14, %v2042_v42, %v2044_v41 }
 0x41e   : > { %5210 = vmatpush3.bf16.msra.mxu1 %v5691_v40 }
 0x41f   : > { %5190 = vmatpush3.bf16.msra.mxu0 %v5692_v43  ;;  %v2059_v47 = vpop.permute.xlu1 %2058  ;;  %v2057_v48 = vpop.permute.xlu0 %2056  ;;  %5211 = vmatprep.subr.bf16.mxu1 %v5693_v44 }
 0x420   : > { %5191 = vmatprep.subr.bf16.mxu0 %v5694_v45  ;;  %v2060_v51 = vsel %vm1865_vm14, %v2057_v48, %v2059_v47 }
 0x421   : > { %2803 = vmatprep.mubr.bf16.mxu1 %v2060_v51 }
 0x422   : > { %5212 = vmatpush3.bf16.msra.mxu1 %v5695_v46 }
 0x423   : > { %5192 = vmatpush3.bf16.msra.mxu0 %v5696_v49  ;;  %5213 = vmatprep.subr.bf16.mxu1 %v5697_v50  ;;  %v2065_v12 = vpop.permute.xlu1 %2064  ;;  %v2063_v14 = vpop.permute.xlu0 %2062 }
 0x424   : > { %5193 = vmatprep.subr.bf16.mxu0 %v5698_v52  ;;  %v2066_v15 = vsel %vm1637_vm8, %v2063_v14, %v2065_v12  ;;  %v5729_v12 = vld [vmem:[%s7292_s20 + $0xe8] sm:$0xff]  }
 0x425   : > { %v5728_v14 = vld [vmem:[%s7292_s20 + $0x28] sm:$0xff]  }
 0x426   : > { %5214 = vmatpush3.bf16.msra.mxu1 %v5699_v53  ;;  %v1728_v53 = vld [vmem:[%s7287_s15] sm:$0x1] }
 0x427   : > { %5194 = vmatpush3.bf16.msra.mxu0 %v5700_v54  ;;  %5215 = vmatprep.subr.bf16.mxu1 %v5701_v55  ;;  %v1799_v54 = vadd.f32 %v6465_v19, %v1728_v53  ;;  %v2860_v55 = vsub.s32 0, %v6184_v33  ;;  %v5719_v33 = vld [vmem:[%s7292_s20 + $0x78] sm:$0xff]  }
 0x428   : > { %5195 = vmatprep.subr.bf16.mxu0 %v5702_v56  ;;  %v5720_v19 = vld [vmem:[%s7292_s20 + $0x38] sm:$0xff]  }
 0x42a   : > { %5216 = vmatpush3.bf16.msra.mxu1 %v5703_v57  ;;  %v2861_v57 = vrot.slane %v1799_v54, %v2860_v55 }
 0x42b   : > { %5196 = vmatpush3.bf16.msra.mxu0 %v5704_v58  ;;  %5217 = vmatprep.subr.bf16.mxu1 %v5705_v59 }
 0x42c   : > { %5197 = vmatprep.subr.bf16.mxu0 %v5706_v60 }
 0x42e   : > { %5218 = vmatpush3.bf16.msra.mxu1 %v5707_v61 }
 0x42f   : > { %5198 = vmatpush3.bf16.msra.mxu0 %v5708_v62  ;;  %5219 = vmatprep.subr.bf16.mxu1 %v5709_v63 }
 0x430   : > { %5479 = vmatprep.subr.bf16.mxu0 %v5911_v13 }
 0x432   : > { %2764 = vmatmul.mubr.bf16.vlgmr.msra.gmra.mxu0 %v2045_v2  ;;  %5220 = vmatpush3.bf16.msra.mxu1 %v5710_v0 }
 0x433   : > { %5480 = vmatpush3.bf16.msra.mxu0 %v5711_v1  ;;  %5495 = vmatprep.mubr.msk.bf16.mxu0 %vm5912_vm0, %v5911_v13 }
 0x434   : > { %5481 = vmatprep.subr.bf16.mxu0 %v5911_v13  ;;  %5236 = vmatprep.subr.bf16.mxu1 %v5719_v33  ;;  %v5759_v33 = vld [vmem:[%s7292_s20 + $0x1b0] sm:$0xff]  }
 0x435   : > { %2804 = vmatmul.mubr.bf16.vlgmr.msra.gmra.mxu1 %v6586_v16 }
 0x436   : > { %5237 = vmatpush3.bf16.msra.mxu1 %v5720_v19 }
 0x437   : > { %5482 = vmatpush3.bf16.msra.mxu0 %v5712_v3  ;;  %v5721_v3 = vld [vmem:[%s7292_s20 + $0xf8] sm:$0xff]  }
 0x438   : > { %5483 = vmatprep.subr.bf16.mxu0 %v5911_v13 }
 0x43b   : > { %5484 = vmatpush3.bf16.msra.mxu0 %v5713_v4  ;;  %v5722_v4 = vld [vmem:[%s7292_s20 + $0x70] sm:$0xff]  }
 0x43c   : > { %5485 = vmatprep.subr.bf16.mxu0 %v5911_v13  ;;  %5238 = vmatprep.subr.bf16.mxu1 %v5722_v4  ;;  %v5760_v4 = vld [vmem:[%s7292_s20 + $0x128] sm:$0xff]  }
 0x43f   : > { %5486 = vmatpush3.bf16.msra.mxu0 %v5714_v6  ;;  %v5723_v6 = vld [vmem:[%s7292_s20 + $0xb8] sm:$0xff]  }
 0x440   : > { %5487 = vmatprep.subr.bf16.mxu0 %v5911_v13 }
 0x443   : > { %5488 = vmatpush3.bf16.msra.mxu0 %v5715_v8  ;;  %v5725_v8 = vld [vmem:[%s7292_s20 + $0xf0] sm:$0xff]  }
 0x444   : > { %5489 = vmatprep.subr.bf16.mxu0 %v5911_v13 }
 0x447   : > { %5490 = vmatpush3.bf16.msra.mxu0 %v5716_v9  ;;  %v5724_v9 = vld [vmem:[%s7292_s20 + $0x30] sm:$0xff]  }
 0x448   : > { %5491 = vmatprep.subr.bf16.mxu0 %v5911_v13  ;;  %5239 = vmatpush3.bf16.msra.mxu1 %v5724_v9  ;;  %v5762_v9 = vld [vmem:[%s7292_s20 + $0x160] sm:$0xff]  }
 0x44b   : > { %5492 = vmatpush3.bf16.msra.mxu0 %v5717_v10  ;;  %v5727_v10 = vld [vmem:[%s7292_s20 + $0xb0] sm:$0xff]  }
 0x44c   : > { %5493 = vmatprep.subr.bf16.mxu0 %v5911_v13 }
 0x44f   : > { %5494 = vmatpush3.bf16.msra.mxu0 %v5718_v11  ;;  %v5726_v11 = vld [vmem:[%s7292_s20 + $0x68] sm:$0xff]  }
 0x450   : > { %5258 = vmatprep.subr.bf16.mxu0 %v5721_v3  ;;  %5240 = vmatprep.subr.bf16.mxu1 %v5726_v11 }
 0x451   : > { %5241 = vmatpush3.bf16.msra.mxu1 %v5728_v14  ;;  %v5764_v14 = vld [vmem:[%s7292_s20 + $0x120] sm:$0xff]  }
 0x452   : > { %5496 = vmatmul.mubr.bf16.vlgmr.msra.gmra.mxu0 %v2066_v15  ;;  %v5731_v15 = vld [vmem:[%s7292_s20 + $0xa8] sm:$0xff]  }
 0x453   : > { %5259 = vmatpush3.bf16.msra.mxu0 %v5723_v6  ;;  %v5761_v6 = vld [vmem:[%s7292_s20 + $0x1e8] sm:$0xff]  }
 0x454   : > { %5260 = vmatprep.subr.bf16.mxu0 %v5725_v8 }
 0x457   : > { %5261 = vmatpush3.bf16.msra.mxu0 %v5727_v10  ;;  %v5763_v10 = vld [vmem:[%s7292_s20 + $0x1a8] sm:$0xff]  }
 0x458   : > { %5262 = vmatprep.subr.bf16.mxu0 %v5729_v12 }
 0x45b   : > { %5263 = vmatpush3.bf16.msra.mxu0 %v5731_v15  ;;  %v5765_v15 = vld [vmem:[%s7292_s20 + $0x1e0] sm:$0xff]  }
 0x4d2   : > { %v5155_v16 = vpop.f32.mrf.mxu0 }
 0x4d4   : > { %v5156_v18 = vpop.f32.mrf.mxu0 }
 0x4d5   : > { %v5177_v20 = vpop.f32.mrf.mxu1  ;;  %v5157_v36 = vadd.f32 %v5156_v18, %v5155_v16  ;;  %v5730_v16 = vld [vmem:[%s7292_s20 + $0x60] sm:$0xff]  }
 0x4d6   : > { %v5158_v22 = vpop.f32.mrf.mxu0  ;;  %v5733_v18 = vld [vmem:[%s7292_s20 + $0xe0] sm:$0xff]   ;;  %5242 = vmatprep.subr.bf16.mxu1 %v5730_v16  ;;  %v5766_v16 = vld [vmem:[%s7292_s20 + $0x158] sm:$0xff]  }
 0x4d7   : > { %v5178_v23 = vpop.f32.mrf.mxu1  ;;  %v2686_v38 = vadd.f32 %v5157_v36, %v4798_v37  ;;  %v5735_v22 = vld [vmem:[%s7292_s20 + $0xa0] sm:$0xff]   ;;  %5264 = vmatprep.subr.bf16.mxu0 %v5733_v18 }
 0x4d8   : > { %v5159_v24 = vpop.f32.mrf.mxu0  ;;  %v5179_v39 = vadd.f32 %v5178_v23, %v5177_v20  ;;  %v5732_v20 = vld [vmem:[%s7292_s20 + $0x20] sm:$0xff]   ;;  %v5734_v23 = vld [vmem:[%s7292_s20 + $0x58] sm:$0xff]   ;;  %5265 = vmatpush3.bf16.msra.mxu0 %v5735_v22 }
 0x4d9   : > { %v5180_v25 = vpop.f32.mrf.mxu1  ;;  %v5737_v24 = vld [vmem:[%s7292_s20 + $0xd8] sm:$0xff]   ;;  %5243 = vmatpush3.bf16.msra.mxu1 %v5732_v20  ;;  %v5746_v36 = vld [vmem:[%s7292_s20 + $0x40] sm:$0xff]  }
 0x4da   : > { %v2726_v41 = vadd.f32 %v5179_v39, %v2686_v38  ;;  %v5736_v25 = vld [vmem:[%s7292_s20 + $0x18] sm:$0xff]   ;;  %5244 = vmatprep.subr.bf16.mxu1 %v5734_v23  ;;  %5266 = vmatprep.subr.bf16.mxu0 %v5737_v24  ;;  %v5748_v37 = vld [vmem:[%s7292_s20] sm:$0xff]  }
 0x4db   : > { %v5181_v26 = vpop.f32.mrf.mxu1  ;;  %v5749_v38 = vld [vmem:[%s7292_s20 + $0xc0] sm:$0xff]   ;;  %v5768_v23 = vld [vmem:[%s7292_s20 + $0x118] sm:$0xff]  }
 0x4dc   : > { %v5739_v26 = vld [vmem:[%s7292_s20 + $0x98] sm:$0xff]   ;;  %v5750_v39 = vld [vmem:[%s7292_s20 + $0x80] sm:$0xff]  }
 0x4dd   : > { %5245 = vmatpush3.bf16.msra.mxu1 %v5736_v25  ;;  %5267 = vmatpush3.bf16.msra.mxu0 %v5739_v26  ;;  %v5767_v18 = vld [vmem:[%s7292_s20 + $0x1a0] sm:$0xff]   ;;  %v5769_v24 = vld [vmem:[%s7292_s20 + $0x1d8] sm:$0xff]   ;;  %v5770_v26 = vld [vmem:[%s7292_s20 + $0x150] sm:$0xff]  }
 0x4f2   : > { %v5199_v27 = vpop.f32.mrf.mxu0 }
 0x4f4   : > { %v5200_v28 = vpop.f32.mrf.mxu0 }
 0x4f5   : > { %v5221_v29 = vpop.f32.mrf.mxu1  ;;  %v5201_v40 = vadd.f32 %v5200_v28, %v5199_v27  ;;  %v5738_v27 = vld [vmem:[%s7292_s20 + $0x50] sm:$0xff]  }
 0x4f6   : > { %v5202_v30 = vpop.f32.mrf.mxu0  ;;  %v5741_v28 = vld [vmem:[%s7292_s20 + $0xd0] sm:$0xff]   ;;  %5246 = vmatprep.subr.bf16.mxu1 %v5738_v27  ;;  %v5771_v27 = vld [vmem:[%s7292_s20 + $0x198] sm:$0xff]  }
 0x4f7   : > { %v5222_v31 = vpop.f32.mrf.mxu1  ;;  %v2766_v42 = vadd.f32 %v5201_v40, %v2726_v41  ;;  %v5743_v30 = vld [vmem:[%s7292_s20 + $0x90] sm:$0xff]   ;;  %5268 = vmatprep.subr.bf16.mxu0 %v5741_v28  ;;  %v5751_v40 = vld [vmem:[%s7292_s20 + $0x178] sm:$0xff]  }
 0x4f8   : > { %v5203_v32 = vpop.f32.mrf.mxu0  ;;  %v5223_v43 = vadd.f32 %v5222_v31, %v5221_v29  ;;  %v5740_v29 = vld [vmem:[%s7292_s20 + $0x10] sm:$0xff]   ;;  %v5742_v31 = vld [vmem:[%s7292_s20 + $0x48] sm:$0xff]   ;;  %5269 = vmatpush3.bf16.msra.mxu0 %v5743_v30  ;;  %v5753_v41 = vld [vmem:[%s7292_s20 + $0x1f8] sm:$0xff]  }
 0x4f9   : > { %v5224_v34 = vpop.f32.mrf.mxu1  ;;  %v5745_v32 = vld [vmem:[%s7292_s20 + $0xc8] sm:$0xff]   ;;  %5247 = vmatpush3.bf16.msra.mxu1 %v5740_v29  ;;  %v5772_v28 = vld [vmem:[%s7292_s20 + $0x110] sm:$0xff]  }
 0x4fa   : > { %v2806_v44 = vadd.f32 %v5223_v43, %v2766_v42  ;;  %v5744_v34 = vld [vmem:[%s7292_s20 + $0x8] sm:$0xff]   ;;  %5248 = vmatprep.subr.bf16.mxu1 %v5742_v31  ;;  %5270 = vmatprep.subr.bf16.mxu0 %v5745_v32  ;;  %v5773_v29 = vld [vmem:[%s7292_s20 + $0x1d0] sm:$0xff]  }
 0x4fb   : > { %v5225_v35 = vpop.f32.mrf.mxu1  ;;  %v5774_v30 = vld [vmem:[%s7292_s20 + $0x148] sm:$0xff]   ;;  %v5775_v31 = vld [vmem:[%s7292_s20 + $0x190] sm:$0xff]  }
 0x4fc   : > { %v5747_v35 = vld [vmem:[%s7292_s20 + $0x88] sm:$0xff]  }
 0x4fd   : > { %5249 = vmatpush3.bf16.msra.mxu1 %v5744_v34  ;;  %5271 = vmatpush3.bf16.msra.mxu0 %v5747_v35  ;;  %v5776_v32 = vld [vmem:[%s7292_s20 + $0x108] sm:$0xff]   ;;  %v5778_v35 = vld [vmem:[%s7292_s20 + $0x140] sm:$0xff]  }
 0x4fe   : > { %5250 = vmatprep.subr.bf16.mxu1 %v5746_v36  ;;  %5272 = vmatprep.subr.bf16.mxu0 %v5749_v38  ;;  %v5777_v34 = vld [vmem:[%s7292_s20 + $0x1c8] sm:$0xff]   ;;  %v5781_v38 = vld [vmem:[%s7292_s20 + $0x1c0] sm:$0xff]  }
 0x4ff   : > { %v5779_v36 = vld [vmem:[%s7292_s20 + $0x188] sm:$0xff]  }
 0x501   : > { %5251 = vmatpush3.bf16.msra.mxu1 %v5748_v37  ;;  %5273 = vmatpush3.bf16.msra.mxu0 %v5750_v39  ;;  %v5780_v37 = vld [vmem:[%s7292_s20 + $0x100] sm:$0xff]  }
 0x502   : > { %5280 = vmatprep.subr.bf16.mxu1 %v5751_v40  ;;  %5302 = vmatprep.subr.bf16.mxu0 %v5753_v41  ;;  %v5782_v39 = vld [vmem:[%s7292_s20 + $0x180] sm:$0xff]   ;;  %v5783_v40 = vld [vmem:[%s7292_s20 + $0x238] sm:$0xff]  }
 0x512   : > { %v2845_v45 = vpop.f32.mrf.mxu0 }
 0x513   : > { %v2846_v46 = vadd.f32 %v2845_v45, %v2806_v44 }
 0x514   : > { %v5497_v47 = vpop.f32.mrf.mxu0 }
 0x515   : > { %v4873_v48 = vmul.f32 -1.442695, %v2846_v46 }
 0x516   : > { %v2848_v49 = vpop.f32.mrf.mxu0 }
 0x517   : > { %5873 = vpow2.f32 %v4873_v48 }
 0x518   : > { %v5498_v50 = vpop.f32.mrf.mxu0 }
 0x524   : > { %v5874_v51 = vpop.eup %5873 }
 0x525   : > { %v2854_v52 = vadd.f32 1.0, %v5874_v51 }
 0x527   : > { %5875 = vrcp.f32 %v2854_v52 }
 0x534   : > { %v5876_v56 = vpop.eup %5875 }
 0x535   : > { %v2857_v58 = vmul.f32 %v5876_v56, %v2846_v46 }
 0x537   : > { %v2862_v59 = vadd.f32 %v2861_v57, %v2857_v58  ;;  %v5752_v57 = vld [vmem:[%s7292_s20 + $0x138] sm:$0xff]  }
 0x539   : > { %v2863_v60 = vpack.c.bf16 %v2862_v59, %v2862_v59  ;;  %v5754_v59 = vld [vmem:[%s7292_s20 + $0x170] sm:$0xff]  }
 0x53b   : > { %v2865_v61 = vshrl.u32 %v2863_v60, 16  ;;  %v2868_v63 = vshll.u32 %v2863_v60, 16  ;;  %v5755_v60 = vld [vmem:[%s7292_s20 + $0x1b8] sm:$0xff]  }
 0x53d   : > { %v2867_v62 = vrot.slane %v2865_v61, 7 }
 0x53f   : > { %v2870_v0 = vor.u32 %v2868_v63, %v2867_v62  ;;  %v5756_v63 = vld [vmem:[%s7292_s20 + $0x130] sm:$0xff]  }
 0x541   : > { %v2872_v1 = vsel %vm6344_vm6, 0, %v2870_v0  ;;  %v5757_v0 = vld [vmem:[%s7292_s20 + $0x1f0] sm:$0xff]  }
 0x542   : > { %v2873_v2 = vsel %vm6348_vm7, %v2872_v1, 0 }
 0x543   : > { %2875 = vrot.lane.b32.xlu0 %v2873_v2, %s5923_s9  ;;  %v5758_v2 = vld [vmem:[%s7292_s20 + $0x168] sm:$0xff]  }
 0x5b5   : > { %v2876_v42 = vpop.permute.xlu0 %2875 }
 0x5b6   : > { %v2878_v43 = vsel %vm1547_vm1, 0, %v2876_v42  ;;  %v2880_v44 = vsel %vm1547_vm1, %v2876_v42, 0 }
 0x5b7   : > { %2885 = vrot.lane.b32.xlu0 %v2880_v44, %s5917_s8  ;;  %2883 = vrot.lane.b32.xlu1 %v2878_v43, %s5917_s8  ;;  %v2897_v45 = vshll.u32 %v2878_v43, 16  ;;  %v2904_v46 = vshll.u32 %v2880_v44, 16  ;;  %v2895_v47 = vshrl.u32 %v2878_v43, 16  ;;  %v2902_v51 = vshrl.u32 %v2880_v44, 16 }
 0x5b8   : > { %v2922_v53 = vrot.slane %v2880_v44, 1  ;;  %v6857_v54 = vrot.slane %v2878_v43, 1 }
 0x5b9   : > { %v2899_v48 = vrot.slane %v2897_v45, 1  ;;  %v2906_v49 = vrot.slane %v2904_v46, 1  ;;  %v5787_v45 = vld [vmem:[%s7292_s20 + $0x218] sm:$0xff]   ;;  %v5788_v46 = vld [vmem:[%s7292_s20 + $0x210] sm:$0xff]  }
 0x5bb   : > { %2891 = vrot.lane.b32.xlu0 %v2880_v44, %s5924_s4  ;;  %2889 = vrot.lane.b32.xlu1 %v2878_v43, %s5924_s4  ;;  %v2900_v50 = vor.u32 %v2899_v48, %v2895_v47  ;;  %v2907_v52 = vor.u32 %v2906_v49, %v2902_v51  ;;  %v5785_v43 = vld [vmem:[%s7292_s20 + $0x228] sm:$0xff]   ;;  %v5786_v44 = vld [vmem:[%s7292_s20 + $0x220] sm:$0xff]  }
 0x5bc   : > { %v5789_v47 = vld [vmem:[%s7292_s20 + $0x208] sm:$0xff]   ;;  %v5790_v48 = vld [vmem:[%s7292_s20 + $0x200] sm:$0xff]  }
 0x5bd   : > { %3590 = vmatprep.mubr.bf16.mxu0 %v2900_v50 }
 0x5bf   : > { %2916 = vrot.lane.b32.xlu0 %v2907_v52, %s5924_s4  ;;  %2914 = vrot.lane.b32.xlu1 %v2900_v50, %s5924_s4 }
 0x5c3   : > { %2910 = vrot.lane.b32.xlu0 %v2907_v52, %s5917_s8  ;;  %2908 = vrot.lane.b32.xlu1 %v2900_v50, %s5917_s8 }
 0x5c7   : > { %2925 = vrot.lane.b32.xlu0 %v2922_v53, %s5917_s8  ;;  %2923 = vrot.lane.b32.xlu1 %v6857_v54, %s5917_s8 }
 0x5cb   : > { %2931 = vrot.lane.b32.xlu0 %v2922_v53, %s5924_s4  ;;  %2929 = vrot.lane.b32.xlu1 %v6857_v54, %s5924_s4 }
 0x629   : > { %v2886_v55 = vpop.permute.xlu0 %2885  ;;  %v2884_v56 = vpop.permute.xlu1 %2883 }
 0x62a   : > { %v2887_v58 = vsel %vm1865_vm14, %v2884_v56, %v2886_v55 }
 0x62b   : > { %3550 = vmatprep.mubr.bf16.mxu1 %v2887_v58 }
 0x62c   : > { %4948 = vmatmul.mubr.msk.bf16.vlgmr.msra.gmra.mxu1 %vm6595_vm2, %v2876_v42  ;;  %v5784_v42 = vld [vmem:[%s7292_s20 + $0x230] sm:$0xff]  }
 0x62d   : > { %5281 = vmatpush3.bf16.msra.mxu1 %v5752_v57  ;;  %v2892_v61 = vpop.permute.xlu0 %2891  ;;  %v2890_v62 = vpop.permute.xlu1 %2889 }
 0x62e   : > { %v2893_v1 = vsel %vm1637_vm8, %v2890_v62, %v2892_v61  ;;  %5282 = vmatprep.subr.bf16.mxu1 %v5754_v59 }
 0x62f   : > { %3591 = vmatmul.mubr.bf16.vlgmr.msra.gmra.mxu0 %v2893_v1 }
 0x630   : > { %5303 = vmatpush3.bf16.msra.mxu0 %v5755_v60 }
 0x631   : > { %5283 = vmatpush3.bf16.msra.mxu1 %v5756_v63  ;;  %v2917_v19 = vpop.permute.xlu0 %2916  ;;  %v2915_v3 = vpop.permute.xlu1 %2914  ;;  %5304 = vmatprep.subr.bf16.mxu0 %v5757_v0 }
 0x632   : > { %5284 = vmatprep.subr.bf16.mxu1 %v5758_v2  ;;  %v2918_v8 = vsel %vm1637_vm8, %v2915_v3, %v2917_v19  ;;  %v4874_v3 = vld [vmem:[%s7293_s21] ss:$0 sm:$0xff] }
 0x633   : > { %3630 = vmatprep.mubr.bf16.mxu1 %v2918_v8 }
 0x634   : > { %5305 = vmatpush3.bf16.msra.mxu0 %v5759_v33 }
 0x635   : > { %5285 = vmatpush3.bf16.msra.mxu1 %v5760_v4  ;;  %v2911_v11 = vpop.permute.xlu0 %2910  ;;  %v2909_v12 = vpop.permute.xlu1 %2908  ;;  %5306 = vmatprep.subr.bf16.mxu0 %v5761_v6 }
 0x636   : > { %5286 = vmatprep.subr.bf16.mxu1 %v5762_v9  ;;  %v2912_v41 = vsel %vm1865_vm14, %v2909_v12, %v2911_v11 }
 0x638   : > { %5307 = vmatpush3.bf16.msra.mxu0 %v5763_v10 }
 0x639   : > { %5287 = vmatpush3.bf16.msra.mxu1 %v5764_v14  ;;  %v2926_v20 = vpop.permute.xlu0 %2925  ;;  %v2924_v22 = vpop.permute.xlu1 %2923  ;;  %5308 = vmatprep.subr.bf16.mxu0 %v5765_v15 }
 0x63a   : > { %5288 = vmatprep.subr.bf16.mxu1 %v5766_v16  ;;  %v2927_v25 = vsel %vm1865_vm14, %v2924_v22, %v2926_v20 }
 0x63b   : > { %3670 = vmatprep.mubr.bf16.mxu0 %v2927_v25 }
 0x63c   : > { %5309 = vmatpush3.bf16.msra.mxu0 %v5767_v18 }
 0x63d   : > { %5289 = vmatpush3.bf16.msra.mxu1 %v5768_v23  ;;  %5310 = vmatprep.subr.bf16.mxu0 %v5769_v24  ;;  %v2932_v49 = vpop.permute.xlu0 %2931  ;;  %v2930_v50 = vpop.permute.xlu1 %2929 }
 0x63e   : > { %5290 = vmatprep.subr.bf16.mxu1 %v5770_v26  ;;  %v2933_v51 = vsel %vm1637_vm8, %v2930_v50, %v2932_v49  ;;  %v5806_v49 = vld [vmem:[%s7294_s22 + $0x58] sm:$0xff]  }
 0x63f   : > { %v5809_v50 = vld [vmem:[%s7294_s22 + $0xd8] sm:$0xff]  }
 0x640   : > { %5311 = vmatpush3.bf16.msra.mxu0 %v5771_v27 }
 0x641   : > { %5291 = vmatpush3.bf16.msra.mxu1 %v5772_v28  ;;  %5312 = vmatprep.subr.bf16.mxu0 %v5773_v29 }
 0x642   : > { %5292 = vmatprep.subr.bf16.mxu1 %v5774_v30 }
 0x644   : > { %5313 = vmatpush3.bf16.msra.mxu0 %v5775_v31 }
 0x645   : > { %5293 = vmatpush3.bf16.msra.mxu1 %v5776_v32  ;;  %5314 = vmatprep.subr.bf16.mxu0 %v5777_v34 }
 0x646   : > { %5294 = vmatprep.subr.bf16.mxu1 %v5778_v35  ;;  %v5791_v35 = vld [vmem:[%s7294_s22 + $0x78] sm:$0xff]  }
 0x648   : > { %5315 = vmatpush3.bf16.msra.mxu0 %v5779_v36  ;;  %v5792_v36 = vld [vmem:[%s7294_s22 + $0x38] sm:$0xff]  }
 0x649   : > { %5295 = vmatpush3.bf16.msra.mxu1 %v5780_v37  ;;  %5316 = vmatprep.subr.bf16.mxu0 %v5781_v38  ;;  %v5793_v37 = vld [vmem:[%s7294_s22 + $0xf8] sm:$0xff]   ;;  %v5797_v38 = vld [vmem:[%s7294_s22 + $0xf0] sm:$0xff]  }
 0x64a   : > { %5499 = vmatprep.subr.bf16.mxu1 %v5911_v13 }
 0x64c   : > { %3631 = vmatmul.mubr.bf16.vlgmr.msra.gmra.mxu1 %v2912_v41  ;;  %5317 = vmatpush3.bf16.msra.mxu0 %v5782_v39  ;;  %v5796_v39 = vld [vmem:[%s7294_s22 + $0x30] sm:$0xff]   ;;  %v5798_v41 = vld [vmem:[%s7294_s22 + $0x68] sm:$0xff]  }
 0x64d   : > { %5500 = vmatpush3.bf16.msra.mxu1 %v5783_v40  ;;  %5515 = vmatprep.mubr.msk.bf16.mxu1 %vm5912_vm0, %v5911_v13  ;;  %v5799_v40 = vld [vmem:[%s7294_s22 + $0xb0] sm:$0xff]  }
 0x64e   : > { %5501 = vmatprep.subr.bf16.mxu1 %v5911_v13  ;;  %5333 = vmatprep.subr.bf16.mxu0 %v5791_v35  ;;  %v5833_v35 = vld [vmem:[%s7294_s22 + $0x1e8] sm:$0xff]  }
 0x64f   : > { %3671 = vmatmul.mubr.bf16.vlgmr.msra.gmra.mxu0 %v6857_v54 }
 0x650   : > { %5334 = vmatpush3.bf16.msra.mxu0 %v5792_v36 }
 0x651   : > { %5502 = vmatpush3.bf16.msra.mxu1 %v5784_v42  ;;  %5335 = vmatprep.subr.bf16.mxu0 %v5794_v5  ;;  %v5801_v42 = vld [vmem:[%s7294_s22 + $0xe8] sm:$0xff]  }
 0x652   : > { %5503 = vmatprep.subr.bf16.mxu1 %v5911_v13  ;;  %v5835_v5 = vld [vmem:[%s7294_s22 + $0x1a8] sm:$0xff]  }
 0x654   : > { %5336 = vmatpush3.bf16.msra.mxu0 %v5796_v39  ;;  %v5836_v39 = vld [vmem:[%s7294_s22 + $0x120] sm:$0xff]  }
 0x655   : > { %5504 = vmatpush3.bf16.msra.mxu1 %v5785_v43  ;;  %v5800_v43 = vld [vmem:[%s7294_s22 + $0x28] sm:$0xff]   ;;  %5337 = vmatprep.subr.bf16.mxu0 %v5798_v41  ;;  %v5838_v41 = vld [vmem:[%s7294_s22 + $0x158] sm:$0xff]  }
 0x656   : > { %5505 = vmatprep.subr.bf16.mxu1 %v5911_v13 }
 0x658   : > { %5338 = vmatpush3.bf16.msra.mxu0 %v5800_v43 }
 0x659   : > { %5506 = vmatpush3.bf16.msra.mxu1 %v5786_v44  ;;  %v5803_v44 = vld [vmem:[%s7294_s22 + $0xa8] sm:$0xff]  }
 0x65a   : > { %5507 = vmatprep.subr.bf16.mxu1 %v5911_v13 }
 0x65d   : > { %5508 = vmatpush3.bf16.msra.mxu1 %v5787_v45  ;;  %v5802_v45 = vld [vmem:[%s7294_s22 + $0x60] sm:$0xff]  }
 0x65e   : > { %5509 = vmatprep.subr.bf16.mxu1 %v5911_v13  ;;  %5339 = vmatprep.subr.bf16.mxu0 %v5802_v45  ;;  %v5840_v45 = vld [vmem:[%s7294_s22 + $0x118] sm:$0xff]  }
 0x661   : > { %5510 = vmatpush3.bf16.msra.mxu1 %v5788_v46  ;;  %v5805_v46 = vld [vmem:[%s7294_s22 + $0xe0] sm:$0xff]  }
 0x662   : > { %5511 = vmatprep.subr.bf16.mxu1 %v5911_v13 }
 0x665   : > { %5512 = vmatpush3.bf16.msra.mxu1 %v5789_v47  ;;  %v5804_v47 = vld [vmem:[%s7294_s22 + $0x20] sm:$0xff]  }
 0x666   : > { %5513 = vmatprep.subr.bf16.mxu1 %v5911_v13  ;;  %5340 = vmatpush3.bf16.msra.mxu0 %v5804_v47 }
 0x667   : > { %5341 = vmatprep.subr.bf16.mxu0 %v5806_v49  ;;  %v5843_v49 = vld [vmem:[%s7294_s22 + $0x198] sm:$0xff]  }
 0x669   : > { %5514 = vmatpush3.bf16.msra.mxu1 %v5790_v48  ;;  %v5807_v48 = vld [vmem:[%s7294_s22 + $0xa0] sm:$0xff]  }
 0x66a   : > { %5355 = vmatprep.subr.bf16.mxu1 %v5793_v37  ;;  %v5834_v37 = vld [vmem:[%s7294_s22 + $0x160] sm:$0xff]  }
 0x66c   : > { %5516 = vmatmul.mubr.bf16.vlgmr.msra.gmra.mxu1 %v2933_v51  ;;  %v5808_v51 = vld [vmem:[%s7294_s22 + $0x18] sm:$0xff]  }
 0x66d   : > { %5356 = vmatpush3.bf16.msra.mxu1 %v5795_v7  ;;  %5342 = vmatpush3.bf16.msra.mxu0 %v5808_v51  ;;  %v5845_v51 = vld [vmem:[%s7294_s22 + $0x1d0] sm:$0xff]  }
 0x66e   : > { %5357 = vmatprep.subr.bf16.mxu1 %v5797_v38 }
 0x671   : > { %5358 = vmatpush3.bf16.msra.mxu1 %v5799_v40  ;;  %v5837_v40 = vld [vmem:[%s7294_s22 + $0x1e0] sm:$0xff]  }
 0x672   : > { %5359 = vmatprep.subr.bf16.mxu1 %v5801_v42  ;;  %v5839_v42 = vld [vmem:[%s7294_s22 + $0x1a0] sm:$0xff]  }
 0x675   : > { %5360 = vmatpush3.bf16.msra.mxu1 %v5803_v44 }
 0x676   : > { %5361 = vmatprep.subr.bf16.mxu1 %v5805_v46  ;;  %v5841_v46 = vld [vmem:[%s7294_s22 + $0x1d8] sm:$0xff]  }
 0x679   : > { %5362 = vmatpush3.bf16.msra.mxu1 %v5807_v48  ;;  %v5842_v48 = vld [vmem:[%s7294_s22 + $0x150] sm:$0xff]  }
 0x67a   : > { %5363 = vmatprep.subr.bf16.mxu1 %v5809_v50  ;;  %v5844_v50 = vld [vmem:[%s7294_s22 + $0x110] sm:$0xff]  }
 0x6ec   : > { %v5252_v52 = vpop.f32.mrf.mxu1 }
 0x6ee   : > { %v5253_v53 = vpop.f32.mrf.mxu1 }
 0x6ef   : > { %v5274_v54 = vpop.f32.mrf.mxu0  ;;  %v5254_v19 = vadd.f32 %v5253_v53, %v5252_v52  ;;  %v5811_v52 = vld [vmem:[%s7294_s22 + $0x98] sm:$0xff]   ;;  %v5810_v53 = vld [vmem:[%s7294_s22 + $0x50] sm:$0xff]  }
 0x6f0   : > { %v5255_v55 = vpop.f32.mrf.mxu1  ;;  %5364 = vmatpush3.bf16.msra.mxu1 %v5811_v52  ;;  %5343 = vmatprep.subr.bf16.mxu0 %v5810_v53  ;;  %v5846_v52 = vld [vmem:[%s7294_s22 + $0x148] sm:$0xff]   ;;  %v5847_v53 = vld [vmem:[%s7294_s22 + $0x190] sm:$0xff]  }
 0x6f1   : > { %v5275_v56 = vpop.f32.mrf.mxu0  ;;  %v3553_v4 = vadd.f32 %v5254_v19, %v4874_v3  ;;  %v5812_v55 = vld [vmem:[%s7294_s22 + $0x10] sm:$0xff]  }
 0x6f2   : > { %v5256_v57 = vpop.f32.mrf.mxu1  ;;  %v5276_v6 = vadd.f32 %v5275_v56, %v5274_v54  ;;  %v5813_v54 = vld [vmem:[%s7294_s22 + $0xd0] sm:$0xff]   ;;  %5344 = vmatpush3.bf16.msra.mxu0 %v5812_v55  ;;  %v5849_v55 = vld [vmem:[%s7294_s22 + $0x1c8] sm:$0xff]  }
 0x6f3   : > { %v5277_v58 = vpop.f32.mrf.mxu0  ;;  %v5815_v56 = vld [vmem:[%s7294_s22 + $0x90] sm:$0xff]   ;;  %5365 = vmatprep.subr.bf16.mxu1 %v5813_v54  ;;  %v5814_v57 = vld [vmem:[%s7294_s22 + $0x48] sm:$0xff]  }
 0x6f4   : > { %v3593_v9 = vadd.f32 %v5276_v6, %v3553_v4  ;;  %v5817_v58 = vld [vmem:[%s7294_s22 + $0xc8] sm:$0xff]   ;;  %5366 = vmatpush3.bf16.msra.mxu1 %v5815_v56  ;;  %5345 = vmatprep.subr.bf16.mxu0 %v5814_v57  ;;  %v5850_v56 = vld [vmem:[%s7294_s22 + $0x140] sm:$0xff]  }
 0x6f5   : > { %v5278_v59 = vpop.f32.mrf.mxu0  ;;  %5367 = vmatprep.subr.bf16.mxu1 %v5817_v58  ;;  %v5848_v54 = vld [vmem:[%s7294_s22 + $0x108] sm:$0xff]   ;;  %v5852_v58 = vld [vmem:[%s7294_s22 + $0x100] sm:$0xff]  }
 0x6f6   : > { %v5816_v59 = vld [vmem:[%s7294_s22 + $0x8] sm:$0xff]  }
 0x6f7   : > { %5346 = vmatpush3.bf16.msra.mxu0 %v5816_v59  ;;  %v5851_v57 = vld [vmem:[%s7294_s22 + $0x188] sm:$0xff]   ;;  %v5853_v59 = vld [vmem:[%s7294_s22 + $0x1c0] sm:$0xff]  }
 0x70c   : > { %v5296_v60 = vpop.f32.mrf.mxu1 }
 0x70e   : > { %v5297_v61 = vpop.f32.mrf.mxu1 }
 0x70f   : > { %v5318_v62 = vpop.f32.mrf.mxu0  ;;  %v5298_v8 = vadd.f32 %v5297_v61, %v5296_v60  ;;  %v5819_v60 = vld [vmem:[%s7294_s22 + $0x88] sm:$0xff]   ;;  %v5818_v61 = vld [vmem:[%s7294_s22 + $0x40] sm:$0xff]  }
 0x710   : > { %v5299_v63 = vpop.f32.mrf.mxu1  ;;  %5368 = vmatpush3.bf16.msra.mxu1 %v5819_v60  ;;  %5347 = vmatprep.subr.bf16.mxu0 %v5818_v61  ;;  %v5854_v60 = vld [vmem:[%s7294_s22 + $0x180] sm:$0xff]   ;;  %v5855_v61 = vld [vmem:[%s7294_s22 + $0x238] sm:$0xff]  }
 0x711   : > { %v5319_v0 = vpop.f32.mrf.mxu0  ;;  %v3633_v10 = vadd.f32 %v5298_v8, %v3593_v9  ;;  %v5821_v63 = vld [vmem:[%s7294_s22 + $0xc0] sm:$0xff]  }
 0x712   : > { %v5300_v1 = vpop.f32.mrf.mxu1  ;;  %v5320_v11 = vadd.f32 %v5319_v0, %v5318_v62  ;;  %v5820_v62 = vld [vmem:[%s7294_s22] sm:$0xff]   ;;  %5369 = vmatprep.subr.bf16.mxu1 %v5821_v63  ;;  %v5856_v63 = vld [vmem:[%s7294_s22 + $0x230] sm:$0xff]  }
 0x713   : > { %v5321_v2 = vpop.f32.mrf.mxu0  ;;  %5348 = vmatpush3.bf16.msra.mxu0 %v5820_v62  ;;  %v5822_v0 = vld [vmem:[%s7294_s22 + $0x80] sm:$0xff]   ;;  %v5823_v1 = vld [vmem:[%s7294_s22 + $0x178] sm:$0xff]  }
 0x714   : > { %v3673_v12 = vadd.f32 %v5320_v11, %v3633_v10  ;;  %5370 = vmatpush3.bf16.msra.mxu1 %v5822_v0  ;;  %5377 = vmatprep.subr.bf16.mxu0 %v5823_v1  ;;  %v5825_v2 = vld [vmem:[%s7294_s22 + $0x1f8] sm:$0xff]   ;;  %v5857_v0 = vld [vmem:[%s7294_s22 + $0x228] sm:$0xff]   ;;  %v5858_v1 = vld [vmem:[%s7294_s22 + $0x220] sm:$0xff]  }
 0x715   : > { %v5322_v33 = vpop.f32.mrf.mxu0  ;;  %5399 = vmatprep.subr.bf16.mxu1 %v5825_v2  ;;  %v5859_v2 = vld [vmem:[%s7294_s22 + $0x218] sm:$0xff]  }
 0x72c   : > { %v3712_v14 = vpop.f32.mrf.mxu1 }
 0x72d   : > { %v3713_v15 = vadd.f32 %v3712_v14, %v3673_v12 }
 0x72e   : > { %v5517_v16 = vpop.f32.mrf.mxu1 }
 0x72f   : > { %v3718_v18 = vadd.f32 %v3713_v15, %v6463_v17 }
 0x730   : > { %v3715_v20 = vpop.f32.mrf.mxu1 }
 0x731   : > { %v4949_v22 = vmul.f32 -1.442695, %v3718_v18 }
 0x732   : > { %v5518_v23 = vpop.f32.mrf.mxu1 }
 0x733   : > { %5877 = vpow2.f32 %v4949_v22  ;;  %v5824_v22 = vld [vmem:[%s7294_s22 + $0x138] sm:$0xff]  }
 0x740   : > { %v5878_v24 = vpop.eup %5877 }
 0x741   : > { %v3722_v25 = vadd.f32 1.0, %v5878_v24  ;;  %v5826_v24 = vld [vmem:[%s7294_s22 + $0x170] sm:$0xff]  }
 0x743   : > { %5879 = vrcp.f32 %v3722_v25  ;;  %v5827_v25 = vld [vmem:[%s7294_s22 + $0x1b8] sm:$0xff]  }
 0x750   : > { %v5880_v26 = vpop.eup %5879 }
 0x751   : > { %v3725_v27 = vmul.f32 %v5880_v26, %v3718_v18 }
 0x753   : > { %v3726_v28 = vpack.c.bf16 %v3725_v27, %v3725_v27 }
 0x755   : > { %v3728_v29 = vshrl.u32 %v3726_v28, 16  ;;  %v3731_v31 = vshll.u32 %v3726_v28, 16  ;;  %v5828_v28 = vld [vmem:[%s7294_s22 + $0x130] sm:$0xff]  }
 0x757   : > { %v3730_v30 = vrot.slane %v3728_v29, 7  ;;  %v5829_v29 = vld [vmem:[%s7294_s22 + $0x1f0] sm:$0xff]  }
 0x759   : > { %v3733_v32 = vor.u32 %v3731_v31, %v3730_v30  ;;  %v5831_v31 = vld [vmem:[%s7294_s22 + $0x1b0] sm:$0xff]  }
 0x75b   : > { %v3735_v34 = vsel %vm6344_vm6, 0, %v3733_v32 }
 0x75c   : > { %v3736_v17 = vsel %vm6348_vm7, %v3735_v34, 0 }
 0x75d   : > { %3738 = vrot.lane.b32.xlu1 %v3736_v17, %s5923_s9  ;;  %v5832_v17 = vld [vmem:[%s7294_s22 + $0x128] sm:$0xff]  }
 0x7cf   : > { %v3739_v33 = vpop.permute.xlu1 %3738 }
 0x7d0   : > { %v3741_v19 = vsel %vm1547_vm1, 0, %v3739_v33  ;;  %v3743_v3 = vsel %vm1547_vm1, %v3739_v33, 0  ;;  %vm4587_vm1 = vcmask 1043456  }
 0x7d1   : > { %3748 = vrot.lane.b32.xlu1 %v3743_v3, %s5917_s8  ;;  %3746 = vrot.lane.b32.xlu0 %v3741_v19, %s5917_s8  ;;  %v3760_v4 = vshll.u32 %v3741_v19, 16  ;;  %v3767_v6 = vshll.u32 %v3743_v3, 16  ;;  %v3758_v8 = vshrl.u32 %v3741_v19, 16  ;;  %v3765_v12 = vshrl.u32 %v3743_v3, 16 }
 0x7d2   : > { %v3785_v15 = vrot.slane %v3743_v3, 1  ;;  %v7119_v16 = vrot.slane %v3741_v19, 1 }
 0x7d3   : > { %v3762_v9 = vrot.slane %v3760_v4, 1  ;;  %v3769_v10 = vrot.slane %v3767_v6, 1 }
 0x7d5   : > { %3754 = vrot.lane.b32.xlu1 %v3743_v3, %s5924_s4  ;;  %3752 = vrot.lane.b32.xlu0 %v3741_v19, %s5924_s4  ;;  %v3763_v11 = vor.u32 %v3762_v9, %v3758_v8  ;;  %v3770_v14 = vor.u32 %v3769_v10, %v3765_v12  ;;  %v5861_v19 = vld [vmem:[%s7294_s22 + $0x208] sm:$0xff]   ;;  %v5862_v3 = vld [vmem:[%s7294_s22 + $0x200] sm:$0xff]  }
 0x7d7   : > { %4453 = vmatprep.mubr.bf16.mxu1 %v3763_v11 }
 0x7d9   : > { %3779 = vrot.lane.b32.xlu1 %v3770_v14, %s5924_s4  ;;  %3777 = vrot.lane.b32.xlu0 %v3763_v11, %s5924_s4 }
 0x7dd   : > { %3773 = vrot.lane.b32.xlu1 %v3770_v14, %s5917_s8  ;;  %3771 = vrot.lane.b32.xlu0 %v3763_v11, %s5917_s8 }
 0x7e1   : > { %3788 = vrot.lane.b32.xlu1 %v3785_v15, %s5917_s8  ;;  %3786 = vrot.lane.b32.xlu0 %v7119_v16, %s5917_s8 }
 0x7e5   : > { %3794 = vrot.lane.b32.xlu1 %v3785_v15, %s5924_s4  ;;  %3792 = vrot.lane.b32.xlu0 %v7119_v16, %s5924_s4 }
 0x843   : > { %v3749_v18 = vpop.permute.xlu1 %3748  ;;  %v3747_v20 = vpop.permute.xlu0 %3746 }
 0x844   : > { %v3750_v23 = vsel %vm1865_vm14, %v3747_v20, %v3749_v18 }
 0x845   : > { %4413 = vmatprep.mubr.bf16.mxu0 %v3750_v23 }
 0x846   : > { %5024 = vmatmul.mubr.msk.bf16.vlgmr.msra.gmra.mxu0 %vm6595_vm2, %v3739_v33  ;;  %v5860_v33 = vld [vmem:[%s7294_s22 + $0x210] sm:$0xff]  }
 0x847   : > { %5378 = vmatpush3.bf16.msra.mxu0 %v5824_v22  ;;  %v3755_v26 = vpop.permute.xlu1 %3754  ;;  %v3753_v27 = vpop.permute.xlu0 %3752 }
 0x848   : > { %v3756_v30 = vsel %vm1637_vm8, %v3753_v27, %v3755_v26  ;;  %5379 = vmatprep.subr.bf16.mxu0 %v5826_v24 }
 0x849   : > { %4454 = vmatmul.mubr.bf16.vlgmr.msra.gmra.mxu1 %v3756_v30 }
 0x84a   : > { %5400 = vmatpush3.bf16.msra.mxu1 %v5827_v25 }
 0x84b   : > { %5380 = vmatpush3.bf16.msra.mxu0 %v5828_v28  ;;  %v3780_v32 = vpop.permute.xlu1 %3779  ;;  %v3778_v34 = vpop.permute.xlu0 %3777  ;;  %5401 = vmatprep.subr.bf16.mxu1 %v5829_v29  ;;  %v4950_v29 = vld [vmem:[%s7335_s2] ss:$0 sm:$0xff] }
 0x84c   : > { %5381 = vmatprep.subr.bf16.mxu0 %v5830_v21  ;;  %v3781_v36 = vsel %vm1637_vm8, %v3778_v34, %v3780_v32 }
 0x84d   : > { %4493 = vmatprep.mubr.bf16.mxu0 %v3781_v36 }
 0x84e   : > { %5402 = vmatpush3.bf16.msra.mxu1 %v5831_v31 }
 0x84f   : > { %5382 = vmatpush3.bf16.msra.mxu0 %v5832_v17  ;;  %v3774_v7 = vpop.permute.xlu1 %3773  ;;  %v3772_v38 = vpop.permute.xlu0 %3771  ;;  %5403 = vmatprep.subr.bf16.mxu1 %v5833_v35 }
 0x850   : > { %5383 = vmatprep.subr.bf16.mxu0 %v5834_v37  ;;  %v3775_v62 = vsel %vm1865_vm14, %v3772_v38, %v3774_v7  ;;  %v5881_v7 = vld [vmem:[%s6338_s26] sm:$0xf]  ;;  %s7337_s26 = sld [smem:[#allocation18_spill]] }
 0x852   : > { %5404 = vmatpush3.bf16.msra.mxu1 %v5835_v5 }
 0x853   : > { %5384 = vmatpush3.bf16.msra.mxu0 %v5836_v39  ;;  %v3789_v43 = vpop.permute.xlu1 %3788  ;;  %v3787_v44 = vpop.permute.xlu0 %3786  ;;  %5405 = vmatprep.subr.bf16.mxu1 %v5837_v40 }
 0x854   : > { %5385 = vmatprep.subr.bf16.mxu0 %v5838_v41  ;;  %v3790_v47 = vsel %vm1865_vm14, %v3787_v44, %v3789_v43 }
 0x855   : > { %4533 = vmatprep.mubr.bf16.mxu1 %v3790_v47 }
 0x856   : > { %5406 = vmatpush3.bf16.msra.mxu1 %v5839_v42  ;;  %s811_s23 = scalar_lea.vmem %s7337_s26, %s7336_s29 }
 0x857   : > { %5386 = vmatpush3.bf16.msra.mxu0 %v5840_v45  ;;  %5407 = vmatprep.subr.bf16.mxu1 %v5841_v46  ;;  %v3795_v4 = vpop.permute.xlu1 %3794  ;;  %v3793_v6 = vpop.permute.xlu0 %3792 }
 0x858   : > { %5387 = vmatprep.subr.bf16.mxu0 %v5842_v48  ;;  %v3796_v8 = vsel %vm1637_vm8, %v3793_v6, %v3795_v4 }
 0x85a   : > { %5408 = vmatpush3.bf16.msra.mxu1 %v5843_v49 }
 0x85b   : > { %5388 = vmatpush3.bf16.msra.mxu0 %v5844_v50  ;;  %5409 = vmatprep.subr.bf16.mxu1 %v5845_v51 }
 0x85c   : > { %5389 = vmatprep.subr.bf16.mxu0 %v5846_v52 }
 0x85e   : > { %5410 = vmatpush3.bf16.msra.mxu1 %v5847_v53 }
 0x85f   : > { %5390 = vmatpush3.bf16.msra.mxu0 %v5848_v54  ;;  %5411 = vmatprep.subr.bf16.mxu1 %v5849_v55 }
 0x860   : > { %5391 = vmatprep.subr.bf16.mxu0 %v5850_v56 }
 0x862   : > { %5412 = vmatpush3.bf16.msra.mxu1 %v5851_v57 }
 0x863   : > { %5392 = vmatpush3.bf16.msra.mxu0 %v5852_v58  ;;  %5413 = vmatprep.subr.bf16.mxu1 %v5853_v59 }
 0x864   : > { %5519 = vmatprep.subr.bf16.mxu0 %v5911_v13 }
 0x866   : > { %4494 = vmatmul.mubr.bf16.vlgmr.msra.gmra.mxu0 %v3775_v62  ;;  %5414 = vmatpush3.bf16.msra.mxu1 %v5854_v60 }
 0x867   : > { %5520 = vmatpush3.bf16.msra.mxu0 %v5855_v61  ;;  %5535 = vmatprep.mubr.msk.bf16.mxu0 %vm5912_vm0, %v5911_v13  ;;  %vm4583_vm0 = vcmask 125952  }
 0x868   : > { %5521 = vmatprep.subr.bf16.mxu0 %v5911_v13 }
 0x869   : > { %4534 = vmatmul.mubr.bf16.vlgmr.msra.gmra.mxu1 %v7119_v16 }
 0x86b   : > { %5522 = vmatpush3.bf16.msra.mxu0 %v5856_v63 }
 0x86c   : > { %5523 = vmatprep.subr.bf16.mxu0 %v5911_v13 }
 0x86f   : > { %5524 = vmatpush3.bf16.msra.mxu0 %v5857_v0 }
 0x870   : > { %5525 = vmatprep.subr.bf16.mxu0 %v5911_v13 }
 0x873   : > { %5526 = vmatpush3.bf16.msra.mxu0 %v5858_v1 }
 0x874   : > { %5527 = vmatprep.subr.bf16.mxu0 %v5911_v13 }
 0x877   : > { %5528 = vmatpush3.bf16.msra.mxu0 %v5859_v2 }
 0x878   : > { %5529 = vmatprep.subr.bf16.mxu0 %v5911_v13 }
 0x87b   : > { %5530 = vmatpush3.bf16.msra.mxu0 %v5860_v33 }
 0x87c   : > { %5531 = vmatprep.subr.bf16.mxu0 %v5911_v13 }
 0x87f   : > { %5532 = vmatpush3.bf16.msra.mxu0 %v5861_v19 }
 0x880   : > { %5533 = vmatprep.subr.bf16.mxu0 %v5911_v13 }
 0x883   : > { %5534 = vmatpush3.bf16.msra.mxu0 %v5862_v3 }
 0x886   : > { %5536 = vmatmul.mubr.bf16.vlgmr.msra.gmra.mxu0 %v3796_v8 }
 0x906   : > { %v5349_v9 = vpop.f32.mrf.mxu0 }
 0x908   : > { %v5350_v10 = vpop.f32.mrf.mxu0 }
 0x909   : > { %v5371_v11 = vpop.f32.mrf.mxu1  ;;  %v5351_v28 = vadd.f32 %v5350_v10, %v5349_v9 }
 0x90a   : > { %v5352_v12 = vpop.f32.mrf.mxu0 }
 0x90b   : > { %v5372_v14 = vpop.f32.mrf.mxu1  ;;  %v4416_v30 = vadd.f32 %v5351_v28, %v4950_v29 }
 0x90c   : > { %v5353_v15 = vpop.f32.mrf.mxu0  ;;  %v5373_v21 = vadd.f32 %v5372_v14, %v5371_v11 }
 0x90d   : > { %v5374_v16 = vpop.f32.mrf.mxu1 }
 0x90e   : > { %v4456_v32 = vadd.f32 %v5373_v21, %v4416_v30 }
 0x90f   : > { %v5375_v18 = vpop.f32.mrf.mxu1 }
 0x926   : > { %v5393_v20 = vpop.f32.mrf.mxu0 }
 0x928   : > { %v5394_v22 = vpop.f32.mrf.mxu0 }
 0x929   : > { %v5415_v23 = vpop.f32.mrf.mxu1  ;;  %v5395_v31 = vadd.f32 %v5394_v22, %v5393_v20 }
 0x92a   : > { %v5396_v24 = vpop.f32.mrf.mxu0 }
 0x92b   : > { %v5416_v25 = vpop.f32.mrf.mxu1  ;;  %v4496_v34 = vadd.f32 %v5395_v31, %v4456_v32 }
 0x92c   : > { %v5397_v13 = vpop.f32.mrf.mxu0  ;;  %v5417_v17 = vadd.f32 %v5416_v25, %v5415_v23 }
 0x92d   : > { %v5418_v26 = vpop.f32.mrf.mxu1 }
 0x92e   : > { %v4536_v35 = vadd.f32 %v5417_v17, %v4496_v34 }
 0x92f   : > { %v5419_v27 = vpop.f32.mrf.mxu1 }
 0x946   : > { %v4575_v36 = vpop.f32.mrf.mxu0 }
 0x947   : > { %v4576_v37 = vadd.f32 %v4575_v36, %v4536_v35 }
 0x948   : > { %v5537_v5 = vpop.f32.mrf.mxu0 }
 0x949   : > { %v4581_v38 = vsub.f32 %v4576_v37, %v5881_v7 }
 0x94a   : > { %v4578_v39 = vpop.f32.mrf.mxu0 }
 0x94b   : > { %v4582_v40 = vmul.f32 %v4581_v38, %v4581_v38 }
 0x94c   : > { %v5538_v41 = vpop.f32.mrf.mxu0 }
 0x94d   : > { %v4584_v42 = vsel %vm4583_vm0, %v4582_v40, 0.0 }
 0x94e   : > { %4585 = vadd.xlane.f32.xlu0 %v4584_v42 }
 0x9d7   : > { %v4586_v43 = vpop.xlane.xlu0 %4585 }
 0x9d8   : > { %v4588_v44 = vsel %vm4587_vm1, %v4586_v43, 0.0 }
 0x9d9   : > { %v4589_v45 = vrot.slane %v4588_v44, 4 }
 0x9db   : > { %v4590_v46 = vadd.f32 %v4589_v45, %v4588_v44 }
 0x9dd   : > { %v4591_v47 = vrot.slane %v4590_v46, 2 }
 0x9df   : > { %v4592_v48 = vadd.f32 %v4591_v47, %v4590_v46 }
 0x9e1   : > { %v4593_v49 = vrot.slane %v4592_v48, 1 }
 0x9e3   : > { %v4594_v50 = vadd.f32 %v4593_v49, %v4592_v48 }
 0x9e5   : > { %4595 = vst [vmem:[%s811_s23] sm:$0xff] %v4594_v50 }
 0x9e6 PF: > { %s7338_s25 = sld [smem:[#allocation5_spill]] }
 0x9ec   : > { %s35_s5 = sadd.s32 1, %s7338_s25  }
 0x9ed   : > { %p32_p1 = scmp.ge.s32.totalorder %s35_s5, 4  }
 0x9ef   :  { %34 = sbr.rel (!%p32_p1) target bundleno = 15 (0xf), region = 163 }
 0x9f4   :  { %4615 = vsyncpa [#allocation3], 1 }
 0x9f5   :  { %4617 = vsyncpa [#allocation3 + $0x1], 1 }

</bundles_post_ra>
